<compile_context>
chip_gen: v7x
topology: tpu7x:2x2x1
jax: 0.10.0
libtpu: 0.0.40
codegen_flags: <defaults>
</compile_context>

<pallas_src>
import functools

import numpy as np
import jax
import jax.numpy as jnp
from jax import lax
from jax.experimental import pallas as pl
from jax.experimental.pallas import tpu as pltpu

BN_EPS = 1e-5
LN_EPS = 1e-5
BN_SCALE = float(1.0 / np.sqrt(1.0 + BN_EPS))  # eval-mode BatchNorm2d, default stats


# --------------------------------------------------------------------------- #
# Static constants (numpy, built once per geometry, passed as kernel inputs)
# --------------------------------------------------------------------------- #
def _interp_matrix(n_in, n_out):
    """Bilinear interpolation matrix, align_corners=True (UpsamplingBilinear2d)."""
    m = np.zeros((n_out, n_in), np.float32)
    for i in range(n_out):
        src = i * (n_in - 1) / (n_out - 1)
        i0 = min(int(np.floor(src)), n_in - 1)
        frac = src - i0
        m[i, i0] += 1.0 - frac
        if i0 + 1 < n_in:
            m[i, i0 + 1] += frac
    return m


@functools.lru_cache(maxsize=None)
def _static_constants(H, W, E2, num_heads):
    T = H * W
    Hh, Wh = H // 2, W // 2
    To = Hh * Wh
    Wf = Wh // 2 + 1
    F2 = Hh * Wf

    # per-tap in-bounds mask for the 3x3 / stride-1 / pad-1 neighborhoods
    hh = np.arange(H)[:, None]
    ww = np.arange(W)[None, :]
    tap_mask = np.zeros((9, T), np.float32)
    for kh in range(3):
        for kw in range(3):
            ok = ((hh + kh - 1 >= 0) & (hh + kh - 1 < H)
                  & (ww + kw - 1 >= 0) & (ww + kw - 1 < W))
            tap_mask[kh * 3 + kw] = ok.reshape(T).astype(np.float32)

    # stride-2 decimation matrix: keep tokens (2*ho, 2*wo)
    dmat = np.zeros((T, To), np.float32)
    for ho in range(Hh):
        for wo in range(Wh):
            dmat[(2 * ho) * W + 2 * wo, ho * Wh + wo] = 1.0

    # rfft2 / irfft2 (ortho) of Hh x Wh images expressed as dense real matmuls.
    # Exact by linearity (probed with numpy.fft on basis vectors).
    dft_r = np.zeros((To, F2), np.float32)
    dft_i = np.zeros((To, F2), np.float32)
    for t in range(To):
        e = np.zeros((Hh, Wh), np.float64)
        e[t // Wh, t % Wh] = 1.0
        f = np.fft.rfft2(e, norm="ortho").reshape(F2)
        dft_r[t] = f.real
        dft_i[t] = f.imag
    idft_r = np.zeros((F2, To), np.float32)
    idft_i = np.zeros((F2, To), np.float32)
    for f in range(F2):
        zr = np.zeros((Hh, Wf), np.complex128)
        zr[f // Wf, f % Wf] = 1.0
        idft_r[f] = np.fft.irfft2(zr, s=(Hh, Wh), norm="ortho").reshape(To)
        zi = np.zeros((Hh, Wf), np.complex128)
        zi[f // Wf, f % Wf] = 1.0j
        idft_i[f] = np.fft.irfft2(zi, s=(Hh, Wh), norm="ortho").reshape(To)

    # bilinear x2 upsample (align_corners=True) as one (To, T) matmul
    Uh = _interp_matrix(Hh, H)          # (H, Hh)
    Uw = _interp_matrix(Wh, W)          # (W, Wh)
    ups = np.einsum("Hh,Ww->hwHW", Uh, Uw).reshape(To, T).astype(np.float32)

    # block-diagonal head mask for XCiT channel attention
    dph = E2 // num_heads
    heads = np.arange(E2) // dph
    head_mask = (heads[:, None] == heads[None, :]).astype(np.float32)

    arrs = dict(tap_mask=tap_mask, dmat=dmat, dft_r=dft_r, dft_i=dft_i,
                idft_r=idft_r, idft_i=idft_i, ups=ups, head_mask=head_mask)
    return {k: jnp.asarray(v) for k, v in arrs.items()}


# --------------------------------------------------------------------------- #
# In-kernel helpers
# --------------------------------------------------------------------------- #
def _channel_attention(q, k, v, hmask, temp_col):
    """XCiT-style channel attention, channel-major (C, Ttok).

    Matches the PyTorch reference exactly:
      F.normalize(q.transpose(-2, -1), dim=-1) -> L2 norm over the TOKEN axis,
      F.normalize(k, dim=-1)                   -> L2 norm over the in-head CHANNELS
    (the asymmetry is in the reference).  Heads are expressed with a block-diagonal
    (C, C) mask so all heads run as a single set of matmuls.
    """
    f32 = jnp.float32
    bf16 = jnp.bfloat16
    qn = q * lax.rsqrt(jnp.maximum(jnp.sum(q * q, axis=1, keepdims=True), 1e-24))
    kden = jnp.dot(hmask, k * k, preferred_element_type=f32)   # per-token, per-head sum
    kn = k * lax.rsqrt(jnp.maximum(kden, 1e-24))
    a = lax.dot_general(qn.astype(bf16), kn.astype(bf16),
                        (((1,), (1,)), ((), ())),
                        preferred_element_type=f32)            # (C, C) logits
    a = a * temp_col                                           # temperature per head
    a = jnp.where(hmask > 0.0, a, -1e30)                       # keep in-head block only
    a = a - jnp.max(a, axis=-1, keepdims=True)
    e = jnp.exp(a)
    p = e * pl.reciprocal(jnp.sum(e, axis=-1, keepdims=True), approx=True)
    return jnp.dot(p.astype(bf16), v.astype(bf16), preferred_element_type=f32)


def _mish(h):
    """mish(h) = h * tanh(softplus(h)) with a single exp + one approx reciprocal.

    tanh(ln(1+e^h)) = 1 - 2/((1+e^h)^2 + 1); rewritten with t = exp(-|h|) so both
    tails are numerically stable.
    """
    t = jnp.exp(-jnp.abs(h))
    a = (1.0 + t) * (1.0 + t)
    pos = h >= 0.0
    numer = jnp.where(pos, 2.0 * t * t, 2.0)
    denom = jnp.where(pos, a + t * t, a + 1.0)
    return h * (1.0 - numer * pl.reciprocal(denom, approx=True))


# --------------------------------------------------------------------------- #
# The single fused kernel (one grid step per batch element)
# --------------------------------------------------------------------------- #
def _fused_encoder_kernel(
        x_ref, ln1g_ref, ln1b_ref, tapm_ref, qkvw_ref, qkvb_ref, dmat_ref,
        kv2w_ref, kv2b_ref, st1w_ref, dftr_ref, dfti_ref, fuw_ref,
        idftr_ref, idfti_ref, st2w_ref, hmask_ref, temp_ref, ups_ref,
        projw_ref, projb_ref, rpew_ref, rpeb_ref, ln2g_ref, ln2b_ref,
        fc1w_ref, fc1b_ref, fc2w_ref, fc2b_ref,
        out_ref, ahup_ref, attnl_ref, *, H, W, dim):
    E = dim
    E2 = E // 2
    half = E2 // 2
    T = H * W
    bf16 = jnp.bfloat16
    f32 = jnp.float32

    x = x_ref[0]                                            # (E, T) residual input
    # ----- norm1: LayerNorm over channels (per token column) -----
    mu = jnp.mean(x, axis=0, keepdims=True)
    xc = x - mu
    var = jnp.mean(xc * xc, axis=0, keepdims=True)
    xn = xc * lax.rsqrt(var + LN_EPS) * ln1g_ref[...] + ln1b_ref[...]

    # ----- 3x3 (stride 1, pad 1) neighborhoods: VMEM-only flat pad + 9 shifted,
    #       masked reads (masks precomputed host-side; no HBM pad buffer) -----
    tapm = tapm_ref[...]                                    # (9, T)
    zpad = jnp.zeros((E, W + 1), f32)
    xnp = jnp.concatenate([zpad, xn, zpad], axis=1)         # (E, T + 2W + 2)
    patches = []
    for kh in range(3):
        for kw in range(3):
            idx = kh * 3 + kw
            start = kh * W + kw
            patches.append(xnp[:, start:start + T] * tapm[idx:idx + 1, :])

    # depthwise 3x3 rpe on xn (all E channels) -- 9 VPU FMAs
    rpew = rpew_ref[...]
    rpe = rpeb_ref[...]
    for idx in range(9):
        rpe = rpe + patches[idx] * rpew[:, idx:idx + 1]

    cols_lo = jnp.concatenate([p[0:E2] for p in patches], axis=0)   # (9*E2, T)
    cols_hi = jnp.concatenate([p[E2:E] for p in patches], axis=0)   # (9*E2, T)

    # ----- low path: fused q|k|v 3x3 conv (BN folded), one K = 9*E2 MXU dot -----
    qkv = jnp.dot(qkvw_ref[...].astype(bf16), cols_lo.astype(bf16),
                  preferred_element_type=f32) + qkvb_ref[...]       # (3*E2, T)
    q_l, k_l, v_l = qkv[0:E2], qkv[E2:2 * E2], qkv[2 * E2:3 * E2]

    # ----- high path: stride-2 k2|v2 conv + 2x2 avg-pool + SpectralTransform -----
    cols2 = jnp.dot(cols_hi, dmat_ref[...], preferred_element_type=f32)   # (9*E2, To)
    kv2 = jnp.dot(kv2w_ref[...].astype(bf16), cols2.astype(bf16),
                  preferred_element_type=f32) + kv2b_ref[...]             # (2*E2, To)
    k_h, v_h = kv2[0:E2], kv2[E2:2 * E2]
    # avg-pool(2,2) of x2 = mean of taps (1,1),(1,2),(2,1),(2,2) of the decimated cols
    pooled = 0.25 * (cols2[4 * E2:5 * E2] + cols2[5 * E2:6 * E2]
                     + cols2[7 * E2:8 * E2] + cols2[8 * E2:9 * E2])        # (E2, To)
    y = jnp.maximum(jnp.dot(st1w_ref[...].astype(bf16), pooled.astype(bf16),
                            preferred_element_type=f32), 0.0)              # (half, To)
    # FourierUnit: rfft2 -> 1x1 spectral conv + ReLU -> irfft2, all as DFT matmuls
    fr = jnp.dot(y, dftr_ref[...], preferred_element_type=f32)             # (half, F2)
    fi = jnp.dot(y, dfti_ref[...], preferred_element_type=f32)
    feat = jnp.maximum(jnp.dot(fuw_ref[...],
                               jnp.concatenate([fr, fi], axis=0),
                               preferred_element_type=f32), 0.0)           # (2*half, F2)
    fu = (jnp.dot(feat[0:half], idftr_ref[...], preferred_element_type=f32)
          + jnp.dot(feat[half:2 * half], idfti_ref[...],
                    preferred_element_type=f32))                           # (half, To)
    # SpectralTransform conv2 (q_h projection), outer BN of inv_q folded in
    q_h = jnp.dot(st2w_ref[...], y + fu, preferred_element_type=f32)       # (E2, To)

    # ----- XCiT channel attention (heads batched via block-diagonal mask) -----
    hmask = hmask_ref[...]
    temp = temp_ref[...]
    attn_h = _channel_attention(q_h, k_h, v_h, hmask, temp)                # (E2, To)
    attn_l = _channel_attention(q_l, k_l, v_l, hmask, temp)                # (E2, T)
    # bilinear x2 upsample (align_corners) folded in as one matmul
    ah_up = jnp.dot(attn_h, ups_ref[...], preferred_element_type=f32)      # (E2, T)

    # ----- conv1x1(cat(attn_h_up, attn_l)) + rpe + residual -----
    projw = projw_ref[...]
    proj = (jnp.dot(projw[:, 0:E2].astype(bf16), ah_up.astype(bf16),
                    preferred_element_type=f32)
            + jnp.dot(projw[:, E2:E].astype(bf16), attn_l.astype(bf16),
                      preferred_element_type=f32)
            + projb_ref[...])
    xm = x + proj + rpe                                                    # (E, T)

    # ----- norm2 + fc1 + Mish + fc2 + residual -----
    mu2 = jnp.mean(xm, axis=0, keepdims=True)
    xc2 = xm - mu2
    var2 = jnp.mean(xc2 * xc2, axis=0, keepdims=True)
    xn2 = xc2 * lax.rsqrt(var2 + LN_EPS) * ln2g_ref[...] + ln2b_ref[...]
    h = jnp.dot(fc1w_ref[...].astype(bf16), xn2.astype(bf16),
                preferred_element_type=f32) + fc1b_ref[...]                # (hidden, T)
    h = _mish(h)
    y2 = jnp.dot(fc2w_ref[...].astype(bf16), h.astype(bf16),
                 preferred_element_type=f32) + fc2b_ref[...]               # (E, T)

    out_ref[0] = (xm + y2).astype(out_ref.dtype)
    ahup_ref[0] = ah_up.astype(ahup_ref.dtype)
    attnl_ref[0] = attn_l.astype(attnl_ref.dtype)


# --------------------------------------------------------------------------- #
# FourierEncoder forward (single pallas_call)
# --------------------------------------------------------------------------- #
def fourier_encoder_forward(x_nchw, params, *, num_heads):
    B, E, H, W = x_nchw.shape
    E2 = E // 2
    T = H * W
    d = E2 // num_heads

    x = x_nchw.reshape(B, E, T).astype(jnp.float32)          # channel-major tokens
    c = _static_constants(H, W, E2, num_heads)
    temp_col = jnp.repeat(params["temperature"].astype(jnp.float32), d).reshape(E2, 1)

    weights = (params["ln1_g"], params["ln1_b"], c["tap_mask"],
               params["qkv_w"], params["qkv_b"], c["dmat"],
               params["kv2_w"], params["kv2_b"], params["st_conv1_w"],
               c["dft_r"], c["dft_i"], params["st_fu_w"],
               c["idft_r"], c["idft_i"], params["st_conv2_w"],
               c["head_mask"], temp_col, c["ups"],
               params["proj_w"], params["proj_b"],
               params["rpe_w"], params["rpe_b"],
               params["ln2_g"], params["ln2_b"],
               params["fc1_w"], params["fc1_b"],
               params["fc2_w"], params["fc2_b"])

    in_specs = ([pl.BlockSpec((1, E, T), lambda i: (i, 0, 0))]
                + [pl.BlockSpec(tuple(w.shape), lambda i: (0, 0)) for w in weights])
    out_specs = (pl.BlockSpec((1, E, T), lambda i: (i, 0, 0)),
                 pl.BlockSpec((1, E2, T), lambda i: (i, 0, 0)),
                 pl.BlockSpec((1, E2, T), lambda i: (i, 0, 0)))
    out_shape = (jax.ShapeDtypeStruct((B, E, T), jnp.float32),
                 jax.ShapeDtypeStruct((B, E2, T), jnp.float32),
                 jax.ShapeDtypeStruct((B, E2, T), jnp.float32))

    kern = functools.partial(_fused_encoder_kernel, H=H, W=W, dim=E)
    out, ah_up, attn_l = pl.pallas_call(
        kern,
        out_shape=out_shape,
        grid=(B,),
        in_specs=in_specs,
        out_specs=out_specs,
        compiler_params=pltpu.CompilerParams(
            dimension_semantics=("parallel",)),
    )(x, *weights)

    ah_img = ah_up.reshape(B, E2, H, W)
    interms = [ah_img, attn_l.reshape(B, E2, H, W), ah_img]  # reference appends attn_h twice
    return out.reshape(B, E, H, W), interms


# --------------------------------------------------------------------------- #
# Deterministic synthetic parameters (kernel-ready, channel-major layouts)
# --------------------------------------------------------------------------- #
def init_params(key, dim, num_heads, mlp_ratio=4):
    E2 = dim // 2
    half = E2 // 2
    hidden = int(dim * mlp_ratio)
    keys = iter(jax.random.split(key, 24))

    def rnd(shape, scale):
        return jax.random.normal(next(keys), shape, jnp.float32) * scale

    return {
        "ln1_g": jnp.ones((dim, 1), jnp.float32), "ln1_b": jnp.zeros((dim, 1), jnp.float32),
        "ln2_g": jnp.ones((dim, 1), jnp.float32), "ln2_b": jnp.zeros((dim, 1), jnp.float32),
        "temperature": jnp.ones((num_heads,), jnp.float32),
        # fused q|k|v 3x3 convs (eval-mode BN folded): (out=3*E2, tap-major 9*E2)
        "qkv_w": rnd((3 * E2, 9 * E2), 0.08) * BN_SCALE,
        "qkv_b": rnd((3 * E2, 1), 0.02) * BN_SCALE,
        # fused k2|v2 stride-2 3x3 convs: (out=2*E2, tap-major 9*E2)
        "kv2_w": rnd((2 * E2, 9 * E2), 0.08) * BN_SCALE,
        "kv2_b": rnd((2 * E2, 1), 0.02) * BN_SCALE,
        # SpectralTransform (FFC-style, bias-free convs, BN scales folded)
        "st_conv1_w": rnd((half, E2), 0.15) * BN_SCALE,
        "st_fu_w": rnd((2 * half, 2 * half), 0.15) * BN_SCALE,
        "st_conv2_w": rnd((E2, half), 0.15) * BN_SCALE,   # includes inv_q outer BN
        # rpe depthwise 3x3 (C, tap), projection 1x1 (out, in), MLP
        "rpe_w": rnd((dim, 9), 0.1), "rpe_b": rnd((dim, 1), 0.02),
        "proj_w": rnd((dim, dim), 0.1), "proj_b": rnd((dim, 1), 0.02),
        "fc1_w": rnd((hidden, dim), 0.1), "fc1_b": rnd((hidden, 1), 0.02),
        "fc2_w": rnd((dim, hidden), 0.1), "fc2_b": rnd((dim, 1), 0.02),
    }


if __name__ == "__main__":
    B, dim, H, W = 2, 32, 16, 16
    num_heads = 4

    key = jax.random.PRNGKey(0)
    kx, kp = jax.random.split(key)
    x = jax.random.normal(kx, (B, dim, H, W), jnp.float32)       # NCHW, like PyTorch
    params = init_params(kp, dim, num_heads)

    fwd = jax.jit(functools.partial(fourier_encoder_forward, num_heads=num_heads))
    out, interms = fwd(x, params)
    jax.block_until_ready((out, interms))

    assert out.shape == (B, dim, H, W)
    assert interms[0].shape == (B, dim // 2, H, W)
    assert interms[1].shape == (B, dim // 2, H, W)
    assert interms[2].shape == (B, dim // 2, H, W)
    assert jnp.all(jnp.isfinite(out))
    print("KERNEL_OK")
</pallas_src>

<mosaic_0001>
module attributes {stable_mosaic.version = 11 : i64} {
  func.func @_fused_encoder_kernel(%arg0: i32, %arg1: memref<1x32x256xf32, #tpu.memory_space<vmem>>, %arg2: memref<32x1xf32, #tpu.memory_space<vmem>>, %arg3: memref<32x1xf32, #tpu.memory_space<vmem>>, %arg4: memref<9x256xf32, #tpu.memory_space<vmem>>, %arg5: memref<48x144xf32, #tpu.memory_space<vmem>>, %arg6: memref<48x1xf32, #tpu.memory_space<vmem>>, %arg7: memref<256x64xf32, #tpu.memory_space<vmem>>, %arg8: memref<32x144xf32, #tpu.memory_space<vmem>>, %arg9: memref<32x1xf32, #tpu.memory_space<vmem>>, %arg10: memref<8x16xf32, #tpu.memory_space<vmem>>, %arg11: memref<64x40xf32, #tpu.memory_space<vmem>>, %arg12: memref<64x40xf32, #tpu.memory_space<vmem>>, %arg13: memref<16x16xf32, #tpu.memory_space<vmem>>, %arg14: memref<40x64xf32, #tpu.memory_space<vmem>>, %arg15: memref<40x64xf32, #tpu.memory_space<vmem>>, %arg16: memref<16x8xf32, #tpu.memory_space<vmem>>, %arg17: memref<16x16xf32, #tpu.memory_space<vmem>>, %arg18: memref<16x1xf32, #tpu.memory_space<vmem>>, %arg19: memref<64x256xf32, #tpu.memory_space<vmem>>, %arg20: memref<32x32xf32, #tpu.memory_space<vmem>>, %arg21: memref<32x1xf32, #tpu.memory_space<vmem>>, %arg22: memref<32x9xf32, #tpu.memory_space<vmem>>, %arg23: memref<32x1xf32, #tpu.memory_space<vmem>>, %arg24: memref<32x1xf32, #tpu.memory_space<vmem>>, %arg25: memref<32x1xf32, #tpu.memory_space<vmem>>, %arg26: memref<128x32xf32, #tpu.memory_space<vmem>>, %arg27: memref<128x1xf32, #tpu.memory_space<vmem>>, %arg28: memref<32x128xf32, #tpu.memory_space<vmem>>, %arg29: memref<32x1xf32, #tpu.memory_space<vmem>>, %arg30: memref<1x32x256xf32, #tpu.memory_space<vmem>>, %arg31: memref<1x16x256xf32, #tpu.memory_space<vmem>>, %arg32: memref<1x16x256xf32, #tpu.memory_space<vmem>>) attributes {dimension_semantics = [#tpu.dimension_semantics<parallel>], iteration_bounds = array<i64: 2>, scalar_prefetch = 0 : i64, scratch_operands = 0 : i64, tpu.core_type = #tpu.core_type<tc>, window_params = [{transform_indices = @transform_0, window_bounds = array<i64: 1, 32, 256>}, {pipeline_mode = #tpu.pipeline_mode<synchronous>, transform_indices = @transform_1, window_bounds = array<i64: 32, 1>}, {pipeline_mode = #tpu.pipeline_mode<synchronous>, transform_indices = @transform_2, window_bounds = array<i64: 32, 1>}, {pipeline_mode = #tpu.pipeline_mode<synchronous>, transform_indices = @transform_3, window_bounds = array<i64: 9, 256>}, {pipeline_mode = #tpu.pipeline_mode<synchronous>, transform_indices = @transform_4, window_bounds = array<i64: 48, 144>}, {pipeline_mode = #tpu.pipeline_mode<synchronous>, transform_indices = @transform_5, window_bounds = array<i64: 48, 1>}, {pipeline_mode = #tpu.pipeline_mode<synchronous>, transform_indices = @transform_6, window_bounds = array<i64: 256, 64>}, {pipeline_mode = #tpu.pipeline_mode<synchronous>, transform_indices = @transform_7, window_bounds = array<i64: 32, 144>}, {pipeline_mode = #tpu.pipeline_mode<synchronous>, transform_indices = @transform_8, window_bounds = array<i64: 32, 1>}, {pipeline_mode = #tpu.pipeline_mode<synchronous>, transform_indices = @transform_9, window_bounds = array<i64: 8, 16>}, {pipeline_mode = #tpu.pipeline_mode<synchronous>, transform_indices = @transform_10, window_bounds = array<i64: 64, 40>}, {pipeline_mode = #tpu.pipeline_mode<synchronous>, transform_indices = @transform_11, window_bounds = array<i64: 64, 40>}, {pipeline_mode = #tpu.pipeline_mode<synchronous>, transform_indices = @transform_12, window_bounds = array<i64: 16, 16>}, {pipeline_mode = #tpu.pipeline_mode<synchronous>, transform_indices = @transform_13, window_bounds = array<i64: 40, 64>}, {pipeline_mode = #tpu.pipeline_mode<synchronous>, transform_indices = @transform_14, window_bounds = array<i64: 40, 64>}, {pipeline_mode = #tpu.pipeline_mode<synchronous>, transform_indices = @transform_15, window_bounds = array<i64: 16, 8>}, {pipeline_mode = #tpu.pipeline_mode<synchronous>, transform_indices = @transform_16, window_bounds = array<i64: 16, 16>}, {pipeline_mode = #tpu.pipeline_mode<synchronous>, transform_indices = @transform_17, window_bounds = array<i64: 16, 1>}, {pipeline_mode = #tpu.pipeline_mode<synchronous>, transform_indices = @transform_18, window_bounds = array<i64: 64, 256>}, {pipeline_mode = #tpu.pipeline_mode<synchronous>, transform_indices = @transform_19, window_bounds = array<i64: 32, 32>}, {pipeline_mode = #tpu.pipeline_mode<synchronous>, transform_indices = @transform_20, window_bounds = array<i64: 32, 1>}, {pipeline_mode = #tpu.pipeline_mode<synchronous>, transform_indices = @transform_21, window_bounds = array<i64: 32, 9>}, {pipeline_mode = #tpu.pipeline_mode<synchronous>, transform_indices = @transform_22, window_bounds = array<i64: 32, 1>}, {pipeline_mode = #tpu.pipeline_mode<synchronous>, transform_indices = @transform_23, window_bounds = array<i64: 32, 1>}, {pipeline_mode = #tpu.pipeline_mode<synchronous>, transform_indices = @transform_24, window_bounds = array<i64: 32, 1>}, {pipeline_mode = #tpu.pipeline_mode<synchronous>, transform_indices = @transform_25, window_bounds = array<i64: 128, 32>}, {pipeline_mode = #tpu.pipeline_mode<synchronous>, transform_indices = @transform_26, window_bounds = array<i64: 128, 1>}, {pipeline_mode = #tpu.pipeline_mode<synchronous>, transform_indices = @transform_27, window_bounds = array<i64: 32, 128>}, {pipeline_mode = #tpu.pipeline_mode<synchronous>, transform_indices = @transform_28, window_bounds = array<i64: 32, 1>}, {transform_indices = @transform_29, window_bounds = array<i64: 1, 32, 256>}, {transform_indices = @transform_30, window_bounds = array<i64: 1, 16, 256>}, {transform_indices = @transform_31, window_bounds = array<i64: 1, 16, 256>}]} {
    %c0 = arith.constant 0 : index
    %c0_0 = arith.constant 0 : index
    %c0_1 = arith.constant 0 : index
    %0 = vector.load %arg1[%c0, %c0_0, %c0_1] : memref<1x32x256xf32, #tpu.memory_space<vmem>>, vector<1x32x256xf32>
    %1 = vector.shape_cast %0 : vector<1x32x256xf32> to vector<32x256xf32>
    %cst = arith.constant dense<0.000000e+00> : vector<256xf32>
    %2 = vector.multi_reduction <add>, %1, %cst [0] : vector<32x256xf32> to vector<256xf32>
    %3 = vector.shape_cast %2 : vector<256xf32> to vector<1x256xf32>
    %cst_2 = arith.constant 3.200000e+01 : f32
    %4 = vector.broadcast %cst_2 : f32 to vector<1x256xf32>
    %5 = arith.divf %3, %4 : vector<1x256xf32>
    %6 = vector.broadcast %5 : vector<1x256xf32> to vector<32x256xf32>
    %7 = arith.subf %1, %6 : vector<32x256xf32>
    %8 = arith.mulf %7, %7 : vector<32x256xf32>
    %cst_3 = arith.constant dense<0.000000e+00> : vector<256xf32>
    %9 = vector.multi_reduction <add>, %8, %cst_3 [0] : vector<32x256xf32> to vector<256xf32>
    %10 = vector.shape_cast %9 : vector<256xf32> to vector<1x256xf32>
    %cst_4 = arith.constant 3.200000e+01 : f32
    %11 = vector.broadcast %cst_4 : f32 to vector<1x256xf32>
    %12 = arith.divf %10, %11 : vector<1x256xf32>
    %cst_5 = arith.constant 9.99999974E-6 : f32
    %13 = vector.broadcast %cst_5 : f32 to vector<1x256xf32>
    %14 = arith.addf %12, %13 : vector<1x256xf32>
    %15 = math.rsqrt %14 : vector<1x256xf32>
    %16 = vector.broadcast %15 : vector<1x256xf32> to vector<32x256xf32>
    %17 = arith.mulf %7, %16 : vector<32x256xf32>
    %c0_6 = arith.constant 0 : index
    %c0_7 = arith.constant 0 : index
    %18 = vector.load %arg2[%c0_6, %c0_7] : memref<32x1xf32, #tpu.memory_space<vmem>>, vector<32x1xf32>
    %19 = vector.broadcast %18 : vector<32x1xf32> to vector<32x256xf32>
    %20 = arith.mulf %17, %19 : vector<32x256xf32>
    %c0_8 = arith.constant 0 : index
    %c0_9 = arith.constant 0 : index
    %21 = vector.load %arg3[%c0_8, %c0_9] : memref<32x1xf32, #tpu.memory_space<vmem>>, vector<32x1xf32>
    %22 = vector.broadcast %21 : vector<32x1xf32> to vector<32x256xf32>
    %23 = arith.addf %20, %22 : vector<32x256xf32>
    %c0_10 = arith.constant 0 : index
    %c0_11 = arith.constant 0 : index
    %24 = vector.load %arg4[%c0_10, %c0_11] : memref<9x256xf32, #tpu.memory_space<vmem>>, vector<9x256xf32>
    %cst_12 = arith.constant 0.000000e+00 : f32
    %25 = vector.broadcast %cst_12 : f32 to vector<32x17xf32>
    %26 = tpu.concatenate %25, %23, %25 in 1 : vector<32x17xf32>, vector<32x256xf32>, vector<32x17xf32> -> vector<32x290xf32>
    %27 = vector.extract_strided_slice %26 {offsets = [0, 0], sizes = [32, 256], strides = [1, 1]} : vector<32x290xf32> to vector<32x256xf32>
    %28 = vector.extract_strided_slice %24 {offsets = [0, 0], sizes = [1, 256], strides = [1, 1]} : vector<9x256xf32> to vector<1x256xf32>
    %29 = vector.broadcast %28 : vector<1x256xf32> to vector<32x256xf32>
    %30 = arith.mulf %27, %29 : vector<32x256xf32>
    %31 = vector.extract_strided_slice %26 {offsets = [0, 1], sizes = [32, 256], strides = [1, 1]} : vector<32x290xf32> to vector<32x256xf32>
    %32 = vector.extract_strided_slice %24 {offsets = [1, 0], sizes = [1, 256], strides = [1, 1]} : vector<9x256xf32> to vector<1x256xf32>
    %33 = vector.broadcast %32 : vector<1x256xf32> to vector<32x256xf32>
    %34 = arith.mulf %31, %33 : vector<32x256xf32>
    %35 = vector.extract_strided_slice %26 {offsets = [0, 2], sizes = [32, 256], strides = [1, 1]} : vector<32x290xf32> to vector<32x256xf32>
    %36 = vector.extract_strided_slice %24 {offsets = [2, 0], sizes = [1, 256], strides = [1, 1]} : vector<9x256xf32> to vector<1x256xf32>
    %37 = vector.broadcast %36 : vector<1x256xf32> to vector<32x256xf32>
    %38 = arith.mulf %35, %37 : vector<32x256xf32>
    %39 = vector.extract_strided_slice %26 {offsets = [0, 16], sizes = [32, 256], strides = [1, 1]} : vector<32x290xf32> to vector<32x256xf32>
    %40 = vector.extract_strided_slice %24 {offsets = [3, 0], sizes = [1, 256], strides = [1, 1]} : vector<9x256xf32> to vector<1x256xf32>
    %41 = vector.broadcast %40 : vector<1x256xf32> to vector<32x256xf32>
    %42 = arith.mulf %39, %41 : vector<32x256xf32>
    %43 = vector.extract_strided_slice %26 {offsets = [0, 17], sizes = [32, 256], strides = [1, 1]} : vector<32x290xf32> to vector<32x256xf32>
    %44 = vector.extract_strided_slice %24 {offsets = [4, 0], sizes = [1, 256], strides = [1, 1]} : vector<9x256xf32> to vector<1x256xf32>
    %45 = vector.broadcast %44 : vector<1x256xf32> to vector<32x256xf32>
    %46 = arith.mulf %43, %45 : vector<32x256xf32>
    %47 = vector.extract_strided_slice %26 {offsets = [0, 18], sizes = [32, 256], strides = [1, 1]} : vector<32x290xf32> to vector<32x256xf32>
    %48 = vector.extract_strided_slice %24 {offsets = [5, 0], sizes = [1, 256], strides = [1, 1]} : vector<9x256xf32> to vector<1x256xf32>
    %49 = vector.broadcast %48 : vector<1x256xf32> to vector<32x256xf32>
    %50 = arith.mulf %47, %49 : vector<32x256xf32>
    %51 = vector.extract_strided_slice %26 {offsets = [0, 32], sizes = [32, 256], strides = [1, 1]} : vector<32x290xf32> to vector<32x256xf32>
    %52 = vector.extract_strided_slice %24 {offsets = [6, 0], sizes = [1, 256], strides = [1, 1]} : vector<9x256xf32> to vector<1x256xf32>
    %53 = vector.broadcast %52 : vector<1x256xf32> to vector<32x256xf32>
    %54 = arith.mulf %51, %53 : vector<32x256xf32>
    %55 = vector.extract_strided_slice %26 {offsets = [0, 33], sizes = [32, 256], strides = [1, 1]} : vector<32x290xf32> to vector<32x256xf32>
    %56 = vector.extract_strided_slice %24 {offsets = [7, 0], sizes = [1, 256], strides = [1, 1]} : vector<9x256xf32> to vector<1x256xf32>
    %57 = vector.broadcast %56 : vector<1x256xf32> to vector<32x256xf32>
    %58 = arith.mulf %55, %57 : vector<32x256xf32>
    %59 = vector.extract_strided_slice %26 {offsets = [0, 34], sizes = [32, 256], strides = [1, 1]} : vector<32x290xf32> to vector<32x256xf32>
    %60 = vector.extract_strided_slice %24 {offsets = [8, 0], sizes = [1, 256], strides = [1, 1]} : vector<9x256xf32> to vector<1x256xf32>
    %61 = vector.broadcast %60 : vector<1x256xf32> to vector<32x256xf32>
    %62 = arith.mulf %59, %61 : vector<32x256xf32>
    %c0_13 = arith.constant 0 : index
    %c0_14 = arith.constant 0 : index
    %63 = vector.load %arg22[%c0_13, %c0_14] : memref<32x9xf32, #tpu.memory_space<vmem>>, vector<32x9xf32>
    %c0_15 = arith.constant 0 : index
    %c0_16 = arith.constant 0 : index
    %64 = vector.load %arg23[%c0_15, %c0_16] : memref<32x1xf32, #tpu.memory_space<vmem>>, vector<32x1xf32>
    %65 = vector.extract_strided_slice %63 {offsets = [0, 0], sizes = [32, 1], strides = [1, 1]} : vector<32x9xf32> to vector<32x1xf32>
    %66 = vector.broadcast %65 : vector<32x1xf32> to vector<32x256xf32>
    %67 = arith.mulf %30, %66 : vector<32x256xf32>
    %68 = vector.broadcast %64 : vector<32x1xf32> to vector<32x256xf32>
    %69 = arith.addf %68, %67 : vector<32x256xf32>
    %70 = vector.extract_strided_slice %63 {offsets = [0, 1], sizes = [32, 1], strides = [1, 1]} : vector<32x9xf32> to vector<32x1xf32>
    %71 = vector.broadcast %70 : vector<32x1xf32> to vector<32x256xf32>
    %72 = arith.mulf %34, %71 : vector<32x256xf32>
    %73 = arith.addf %69, %72 : vector<32x256xf32>
    %74 = vector.extract_strided_slice %63 {offsets = [0, 2], sizes = [32, 1], strides = [1, 1]} : vector<32x9xf32> to vector<32x1xf32>
    %75 = vector.broadcast %74 : vector<32x1xf32> to vector<32x256xf32>
    %76 = arith.mulf %38, %75 : vector<32x256xf32>
    %77 = arith.addf %73, %76 : vector<32x256xf32>
    %78 = vector.extract_strided_slice %63 {offsets = [0, 3], sizes = [32, 1], strides = [1, 1]} : vector<32x9xf32> to vector<32x1xf32>
    %79 = vector.broadcast %78 : vector<32x1xf32> to vector<32x256xf32>
    %80 = arith.mulf %42, %79 : vector<32x256xf32>
    %81 = arith.addf %77, %80 : vector<32x256xf32>
    %82 = vector.extract_strided_slice %63 {offsets = [0, 4], sizes = [32, 1], strides = [1, 1]} : vector<32x9xf32> to vector<32x1xf32>
    %83 = vector.broadcast %82 : vector<32x1xf32> to vector<32x256xf32>
    %84 = arith.mulf %46, %83 : vector<32x256xf32>
    %85 = arith.addf %81, %84 : vector<32x256xf32>
    %86 = vector.extract_strided_slice %63 {offsets = [0, 5], sizes = [32, 1], strides = [1, 1]} : vector<32x9xf32> to vector<32x1xf32>
    %87 = vector.broadcast %86 : vector<32x1xf32> to vector<32x256xf32>
    %88 = arith.mulf %50, %87 : vector<32x256xf32>
    %89 = arith.addf %85, %88 : vector<32x256xf32>
    %90 = vector.extract_strided_slice %63 {offsets = [0, 6], sizes = [32, 1], strides = [1, 1]} : vector<32x9xf32> to vector<32x1xf32>
    %91 = vector.broadcast %90 : vector<32x1xf32> to vector<32x256xf32>
    %92 = arith.mulf %54, %91 : vector<32x256xf32>
    %93 = arith.addf %89, %92 : vector<32x256xf32>
    %94 = vector.extract_strided_slice %63 {offsets = [0, 7], sizes = [32, 1], strides = [1, 1]} : vector<32x9xf32> to vector<32x1xf32>
    %95 = vector.broadcast %94 : vector<32x1xf32> to vector<32x256xf32>
    %96 = arith.mulf %58, %95 : vector<32x256xf32>
    %97 = arith.addf %93, %96 : vector<32x256xf32>
    %98 = vector.extract_strided_slice %63 {offsets = [0, 8], sizes = [32, 1], strides = [1, 1]} : vector<32x9xf32> to vector<32x1xf32>
    %99 = vector.broadcast %98 : vector<32x1xf32> to vector<32x256xf32>
    %100 = arith.mulf %62, %99 : vector<32x256xf32>
    %101 = arith.addf %97, %100 : vector<32x256xf32>
    %102 = vector.extract_strided_slice %30 {offsets = [0, 0], sizes = [16, 256], strides = [1, 1]} : vector<32x256xf32> to vector<16x256xf32>
    %103 = vector.extract_strided_slice %34 {offsets = [0, 0], sizes = [16, 256], strides = [1, 1]} : vector<32x256xf32> to vector<16x256xf32>
    %104 = vector.extract_strided_slice %38 {offsets = [0, 0], sizes = [16, 256], strides = [1, 1]} : vector<32x256xf32> to vector<16x256xf32>
    %105 = vector.extract_strided_slice %42 {offsets = [0, 0], sizes = [16, 256], strides = [1, 1]} : vector<32x256xf32> to vector<16x256xf32>
    %106 = vector.extract_strided_slice %46 {offsets = [0, 0], sizes = [16, 256], strides = [1, 1]} : vector<32x256xf32> to vector<16x256xf32>
    %107 = vector.extract_strided_slice %50 {offsets = [0, 0], sizes = [16, 256], strides = [1, 1]} : vector<32x256xf32> to vector<16x256xf32>
    %108 = vector.extract_strided_slice %54 {offsets = [0, 0], sizes = [16, 256], strides = [1, 1]} : vector<32x256xf32> to vector<16x256xf32>
    %109 = vector.extract_strided_slice %58 {offsets = [0, 0], sizes = [16, 256], strides = [1, 1]} : vector<32x256xf32> to vector<16x256xf32>
    %110 = vector.extract_strided_slice %62 {offsets = [0, 0], sizes = [16, 256], strides = [1, 1]} : vector<32x256xf32> to vector<16x256xf32>
    %111 = tpu.concatenate %102, %103, %104, %105, %106, %107, %108, %109, %110 in 0 : vector<16x256xf32>, vector<16x256xf32>, vector<16x256xf32>, vector<16x256xf32>, vector<16x256xf32>, vector<16x256xf32>, vector<16x256xf32>, vector<16x256xf32>, vector<16x256xf32> -> vector<144x256xf32>
    %112 = vector.extract_strided_slice %30 {offsets = [16, 0], sizes = [16, 256], strides = [1, 1]} : vector<32x256xf32> to vector<16x256xf32>
    %113 = vector.extract_strided_slice %34 {offsets = [16, 0], sizes = [16, 256], strides = [1, 1]} : vector<32x256xf32> to vector<16x256xf32>
    %114 = vector.extract_strided_slice %38 {offsets = [16, 0], sizes = [16, 256], strides = [1, 1]} : vector<32x256xf32> to vector<16x256xf32>
    %115 = vector.extract_strided_slice %42 {offsets = [16, 0], sizes = [16, 256], strides = [1, 1]} : vector<32x256xf32> to vector<16x256xf32>
    %116 = vector.extract_strided_slice %46 {offsets = [16, 0], sizes = [16, 256], strides = [1, 1]} : vector<32x256xf32> to vector<16x256xf32>
    %117 = vector.extract_strided_slice %50 {offsets = [16, 0], sizes = [16, 256], strides = [1, 1]} : vector<32x256xf32> to vector<16x256xf32>
    %118 = vector.extract_strided_slice %54 {offsets = [16, 0], sizes = [16, 256], strides = [1, 1]} : vector<32x256xf32> to vector<16x256xf32>
    %119 = vector.extract_strided_slice %58 {offsets = [16, 0], sizes = [16, 256], strides = [1, 1]} : vector<32x256xf32> to vector<16x256xf32>
    %120 = vector.extract_strided_slice %62 {offsets = [16, 0], sizes = [16, 256], strides = [1, 1]} : vector<32x256xf32> to vector<16x256xf32>
    %121 = tpu.concatenate %112, %113, %114, %115, %116, %117, %118, %119, %120 in 0 : vector<16x256xf32>, vector<16x256xf32>, vector<16x256xf32>, vector<16x256xf32>, vector<16x256xf32>, vector<16x256xf32>, vector<16x256xf32>, vector<16x256xf32>, vector<16x256xf32> -> vector<144x256xf32>
    %c0_17 = arith.constant 0 : index
    %c0_18 = arith.constant 0 : index
    %122 = vector.load %arg5[%c0_17, %c0_18] : memref<48x144xf32, #tpu.memory_space<vmem>>, vector<48x144xf32>
    %123 = arith.truncf %122 : vector<48x144xf32> to vector<48x144xbf16>
    %124 = arith.truncf %111 : vector<144x256xf32> to vector<144x256xbf16>
    %cst_19 = arith.constant dense<0.000000e+00> : vector<48x256xf32>
    %125 = tpu.matmul %123, %124, %cst_19 {dimension_numbers = #tpu.dot_dimension_numbers<[1], [0], [0], [1], [0, 0, 1, 1], [], []>} : vector<48x144xbf16>, vector<144x256xbf16>, vector<48x256xf32> -> vector<48x256xf32>
    %c0_20 = arith.constant 0 : index
    %c0_21 = arith.constant 0 : index
    %126 = vector.load %arg6[%c0_20, %c0_21] : memref<48x1xf32, #tpu.memory_space<vmem>>, vector<48x1xf32>
    %127 = vector.broadcast %126 : vector<48x1xf32> to vector<48x256xf32>
    %128 = arith.addf %125, %127 : vector<48x256xf32>
    %129 = vector.extract_strided_slice %128 {offsets = [0, 0], sizes = [16, 256], strides = [1, 1]} : vector<48x256xf32> to vector<16x256xf32>
    %130 = vector.extract_strided_slice %128 {offsets = [16, 0], sizes = [16, 256], strides = [1, 1]} : vector<48x256xf32> to vector<16x256xf32>
    %131 = vector.extract_strided_slice %128 {offsets = [32, 0], sizes = [16, 256], strides = [1, 1]} : vector<48x256xf32> to vector<16x256xf32>
    %c0_22 = arith.constant 0 : index
    %c0_23 = arith.constant 0 : index
    %132 = vector.load %arg7[%c0_22, %c0_23] : memref<256x64xf32, #tpu.memory_space<vmem>>, vector<256x64xf32>
    %cst_24 = arith.constant dense<0.000000e+00> : vector<144x64xf32>
    %133 = tpu.matmul %121, %132, %cst_24 {dimension_numbers = #tpu.dot_dimension_numbers<[1], [0], [0], [1], [0, 0, 1, 1], [], []>} : vector<144x256xf32>, vector<256x64xf32>, vector<144x64xf32> -> vector<144x64xf32>
    %c0_25 = arith.constant 0 : index
    %c0_26 = arith.constant 0 : index
    %134 = vector.load %arg8[%c0_25, %c0_26] : memref<32x144xf32, #tpu.memory_space<vmem>>, vector<32x144xf32>
    %135 = arith.truncf %134 : vector<32x144xf32> to vector<32x144xbf16>
    %136 = arith.truncf %133 : vector<144x64xf32> to vector<144x64xbf16>
    %cst_27 = arith.constant dense<0.000000e+00> : vector<32x64xf32>
    %137 = tpu.matmul %135, %136, %cst_27 {dimension_numbers = #tpu.dot_dimension_numbers<[1], [0], [0], [1], [0, 0, 1, 1], [], []>} : vector<32x144xbf16>, vector<144x64xbf16>, vector<32x64xf32> -> vector<32x64xf32>
    %c0_28 = arith.constant 0 : index
    %c0_29 = arith.constant 0 : index
    %138 = vector.load %arg9[%c0_28, %c0_29] : memref<32x1xf32, #tpu.memory_space<vmem>>, vector<32x1xf32>
    %139 = vector.broadcast %138 : vector<32x1xf32> to vector<32x64xf32>
    %140 = arith.addf %137, %139 : vector<32x64xf32>
    %141 = vector.extract_strided_slice %140 {offsets = [0, 0], sizes = [16, 64], strides = [1, 1]} : vector<32x64xf32> to vector<16x64xf32>
    %142 = vector.extract_strided_slice %140 {offsets = [16, 0], sizes = [16, 64], strides = [1, 1]} : vector<32x64xf32> to vector<16x64xf32>
    %143 = vector.extract_strided_slice %133 {offsets = [64, 0], sizes = [16, 64], strides = [1, 1]} : vector<144x64xf32> to vector<16x64xf32>
    %144 = vector.extract_strided_slice %133 {offsets = [80, 0], sizes = [16, 64], strides = [1, 1]} : vector<144x64xf32> to vector<16x64xf32>
    %145 = arith.addf %143, %144 : vector<16x64xf32>
    %146 = vector.extract_strided_slice %133 {offsets = [112, 0], sizes = [16, 64], strides = [1, 1]} : vector<144x64xf32> to vector<16x64xf32>
    %147 = arith.addf %145, %146 : vector<16x64xf32>
    %148 = vector.extract_strided_slice %133 {offsets = [128, 0], sizes = [16, 64], strides = [1, 1]} : vector<144x64xf32> to vector<16x64xf32>
    %149 = arith.addf %147, %148 : vector<16x64xf32>
    %cst_30 = arith.constant 2.500000e-01 : f32
    %150 = vector.broadcast %cst_30 : f32 to vector<16x64xf32>
    %151 = arith.mulf %150, %149 : vector<16x64xf32>
    %c0_31 = arith.constant 0 : index
    %c0_32 = arith.constant 0 : index
    %152 = vector.load %arg10[%c0_31, %c0_32] : memref<8x16xf32, #tpu.memory_space<vmem>>, vector<8x16xf32>
    %153 = arith.truncf %152 : vector<8x16xf32> to vector<8x16xbf16>
    %154 = arith.truncf %151 : vector<16x64xf32> to vector<16x64xbf16>
    %cst_33 = arith.constant dense<0.000000e+00> : vector<8x64xf32>
    %155 = tpu.matmul %153, %154, %cst_33 {dimension_numbers = #tpu.dot_dimension_numbers<[1], [0], [0], [1], [0, 0, 1, 1], [], []>} : vector<8x16xbf16>, vector<16x64xbf16>, vector<8x64xf32> -> vector<8x64xf32>
    %cst_34 = arith.constant 0.000000e+00 : f32
    %156 = vector.broadcast %cst_34 : f32 to vector<8x64xf32>
    %157 = arith.maximumf %155, %156 : vector<8x64xf32>
    %c0_35 = arith.constant 0 : index
    %c0_36 = arith.constant 0 : index
    %158 = vector.load %arg11[%c0_35, %c0_36] : memref<64x40xf32, #tpu.memory_space<vmem>>, vector<64x40xf32>
    %cst_37 = arith.constant dense<0.000000e+00> : vector<8x40xf32>
    %159 = tpu.matmul %157, %158, %cst_37 {dimension_numbers = #tpu.dot_dimension_numbers<[1], [0], [0], [1], [0, 0, 1, 1], [], []>} : vector<8x64xf32>, vector<64x40xf32>, vector<8x40xf32> -> vector<8x40xf32>
    %c0_38 = arith.constant 0 : index
    %c0_39 = arith.constant 0 : index
    %160 = vector.load %arg12[%c0_38, %c0_39] : memref<64x40xf32, #tpu.memory_space<vmem>>, vector<64x40xf32>
    %cst_40 = arith.constant dense<0.000000e+00> : vector<8x40xf32>
    %161 = tpu.matmul %157, %160, %cst_40 {dimension_numbers = #tpu.dot_dimension_numbers<[1], [0], [0], [1], [0, 0, 1, 1], [], []>} : vector<8x64xf32>, vector<64x40xf32>, vector<8x40xf32> -> vector<8x40xf32>
    %c0_41 = arith.constant 0 : index
    %c0_42 = arith.constant 0 : index
    %162 = vector.load %arg13[%c0_41, %c0_42] : memref<16x16xf32, #tpu.memory_space<vmem>>, vector<16x16xf32>
    %163 = tpu.concatenate %159, %161 in 0 : vector<8x40xf32>, vector<8x40xf32> -> vector<16x40xf32>
    %cst_43 = arith.constant dense<0.000000e+00> : vector<16x40xf32>
    %164 = tpu.matmul %162, %163, %cst_43 {dimension_numbers = #tpu.dot_dimension_numbers<[1], [0], [0], [1], [0, 0, 1, 1], [], []>} : vector<16x16xf32>, vector<16x40xf32>, vector<16x40xf32> -> vector<16x40xf32>
    %cst_44 = arith.constant 0.000000e+00 : f32
    %165 = vector.broadcast %cst_44 : f32 to vector<16x40xf32>
    %166 = arith.maximumf %164, %165 : vector<16x40xf32>
    %167 = vector.extract_strided_slice %166 {offsets = [0, 0], sizes = [8, 40], strides = [1, 1]} : vector<16x40xf32> to vector<8x40xf32>
    %c0_45 = arith.constant 0 : index
    %c0_46 = arith.constant 0 : index
    %168 = vector.load %arg14[%c0_45, %c0_46] : memref<40x64xf32, #tpu.memory_space<vmem>>, vector<40x64xf32>
    %cst_47 = arith.constant dense<0.000000e+00> : vector<8x64xf32>
    %169 = tpu.matmul %167, %168, %cst_47 {dimension_numbers = #tpu.dot_dimension_numbers<[1], [0], [0], [1], [0, 0, 1, 1], [], []>} : vector<8x40xf32>, vector<40x64xf32>, vector<8x64xf32> -> vector<8x64xf32>
    %170 = vector.extract_strided_slice %166 {offsets = [8, 0], sizes = [8, 40], strides = [1, 1]} : vector<16x40xf32> to vector<8x40xf32>
    %c0_48 = arith.constant 0 : index
    %c0_49 = arith.constant 0 : index
    %171 = vector.load %arg15[%c0_48, %c0_49] : memref<40x64xf32, #tpu.memory_space<vmem>>, vector<40x64xf32>
    %cst_50 = arith.constant dense<0.000000e+00> : vector<8x64xf32>
    %172 = tpu.matmul %170, %171, %cst_50 {dimension_numbers = #tpu.dot_dimension_numbers<[1], [0], [0], [1], [0, 0, 1, 1], [], []>} : vector<8x40xf32>, vector<40x64xf32>, vector<8x64xf32> -> vector<8x64xf32>
    %173 = arith.addf %169, %172 : vector<8x64xf32>
    %c0_51 = arith.constant 0 : index
    %c0_52 = arith.constant 0 : index
    %174 = vector.load %arg16[%c0_51, %c0_52] : memref<16x8xf32, #tpu.memory_space<vmem>>, vector<16x8xf32>
    %175 = arith.addf %157, %173 : vector<8x64xf32>
    %cst_53 = arith.constant dense<0.000000e+00> : vector<16x64xf32>
    %176 = tpu.matmul %174, %175, %cst_53 {dimension_numbers = #tpu.dot_dimension_numbers<[1], [0], [0], [1], [0, 0, 1, 1], [], []>} : vector<16x8xf32>, vector<8x64xf32>, vector<16x64xf32> -> vector<16x64xf32>
    %c0_54 = arith.constant 0 : index
    %c0_55 = arith.constant 0 : index
    %177 = vector.load %arg17[%c0_54, %c0_55] : memref<16x16xf32, #tpu.memory_space<vmem>>, vector<16x16xf32>
    %c0_56 = arith.constant 0 : index
    %c0_57 = arith.constant 0 : index
    %178 = vector.load %arg18[%c0_56, %c0_57] : memref<16x1xf32, #tpu.memory_space<vmem>>, vector<16x1xf32>
    %179 = arith.mulf %176, %176 : vector<16x64xf32>
    %cst_58 = arith.constant dense<0.000000e+00> : vector<16xf32>
    %180 = vector.multi_reduction <add>, %179, %cst_58 [1] : vector<16x64xf32> to vector<16xf32>
    %181 = vector.shape_cast %180 : vector<16xf32> to vector<16x1xf32>
    %cst_59 = arith.constant 1.000000e-24 : f32
    %182 = vector.broadcast %cst_59 : f32 to vector<16x1xf32>
    %183 = arith.maximumf %181, %182 : vector<16x1xf32>
    %184 = math.rsqrt %183 : vector<16x1xf32>
    %185 = vector.broadcast %184 : vector<16x1xf32> to vector<16x64xf32>
    %186 = arith.mulf %176, %185 : vector<16x64xf32>
    %187 = arith.mulf %141, %141 : vector<16x64xf32>
    %cst_60 = arith.constant dense<0.000000e+00> : vector<16x64xf32>
    %188 = tpu.matmul %177, %187, %cst_60 {dimension_numbers = #tpu.dot_dimension_numbers<[1], [0], [0], [1], [0, 0, 1, 1], [], []>} : vector<16x16xf32>, vector<16x64xf32>, vector<16x64xf32> -> vector<16x64xf32>
    %cst_61 = arith.constant 1.000000e-24 : f32
    %189 = vector.broadcast %cst_61 : f32 to vector<16x64xf32>
    %190 = arith.maximumf %188, %189 : vector<16x64xf32>
    %191 = math.rsqrt %190 : vector<16x64xf32>
    %192 = arith.mulf %141, %191 : vector<16x64xf32>
    %193 = arith.truncf %186 : vector<16x64xf32> to vector<16x64xbf16>
    %194 = arith.truncf %192 : vector<16x64xf32> to vector<16x64xbf16>
    %cst_62 = arith.constant dense<0.000000e+00> : vector<16x16xf32>
    %195 = tpu.matmul %193, %194, %cst_62 {dimension_numbers = #tpu.dot_dimension_numbers<[1], [1], [0], [0], [0, 0, 1, 0], [], []>} : vector<16x64xbf16>, vector<16x64xbf16>, vector<16x16xf32> -> vector<16x16xf32>
    %196 = vector.broadcast %178 : vector<16x1xf32> to vector<16x16xf32>
    %197 = arith.mulf %195, %196 : vector<16x16xf32>
    %cst_63 = arith.constant 0.000000e+00 : f32
    %198 = vector.broadcast %cst_63 : f32 to vector<16x16xf32>
    %199 = arith.cmpf ogt, %177, %198 : vector<16x16xf32>
    %cst_64 = arith.constant -1.000000e+30 : f32
    %200 = vector.broadcast %cst_64 : f32 to vector<16x16xf32>
    %201 = arith.select %199, %197, %200 : vector<16x16xi1>, vector<16x16xf32>
    %cst_65 = arith.constant dense<0xFF800000> : vector<16xf32>
    %202 = vector.multi_reduction <maximumf>, %201, %cst_65 [1] : vector<16x16xf32> to vector<16xf32>
    %203 = vector.shape_cast %202 : vector<16xf32> to vector<16x1xf32>
    %204 = vector.broadcast %203 : vector<16x1xf32> to vector<16x16xf32>
    %205 = arith.subf %201, %204 : vector<16x16xf32>
    %206 = math.exp %205 : vector<16x16xf32>
    %cst_66 = arith.constant dense<0.000000e+00> : vector<16xf32>
    %207 = vector.multi_reduction <add>, %206, %cst_66 [1] : vector<16x16xf32> to vector<16xf32>
    %208 = vector.shape_cast %207 : vector<16xf32> to vector<16x1xf32>
    %209 = tpu.reciprocal %208 {approx = true} : vector<16x1xf32> -> vector<16x1xf32>
    %210 = vector.broadcast %209 : vector<16x1xf32> to vector<16x16xf32>
    %211 = arith.mulf %206, %210 : vector<16x16xf32>
    %212 = arith.truncf %211 : vector<16x16xf32> to vector<16x16xbf16>
    %213 = arith.truncf %142 : vector<16x64xf32> to vector<16x64xbf16>
    %cst_67 = arith.constant dense<0.000000e+00> : vector<16x64xf32>
    %214 = tpu.matmul %212, %213, %cst_67 {dimension_numbers = #tpu.dot_dimension_numbers<[1], [0], [0], [1], [0, 0, 1, 1], [], []>} : vector<16x16xbf16>, vector<16x64xbf16>, vector<16x64xf32> -> vector<16x64xf32>
    %215 = arith.mulf %129, %129 : vector<16x256xf32>
    %cst_68 = arith.constant dense<0.000000e+00> : vector<16xf32>
    %216 = vector.multi_reduction <add>, %215, %cst_68 [1] : vector<16x256xf32> to vector<16xf32>
    %217 = vector.shape_cast %216 : vector<16xf32> to vector<16x1xf32>
    %cst_69 = arith.constant 1.000000e-24 : f32
    %218 = vector.broadcast %cst_69 : f32 to vector<16x1xf32>
    %219 = arith.maximumf %217, %218 : vector<16x1xf32>
    %220 = math.rsqrt %219 : vector<16x1xf32>
    %221 = vector.broadcast %220 : vector<16x1xf32> to vector<16x256xf32>
    %222 = arith.mulf %129, %221 : vector<16x256xf32>
    %223 = arith.mulf %130, %130 : vector<16x256xf32>
    %cst_70 = arith.constant dense<0.000000e+00> : vector<16x256xf32>
    %224 = tpu.matmul %177, %223, %cst_70 {dimension_numbers = #tpu.dot_dimension_numbers<[1], [0], [0], [1], [0, 0, 1, 1], [], []>} : vector<16x16xf32>, vector<16x256xf32>, vector<16x256xf32> -> vector<16x256xf32>
    %cst_71 = arith.constant 1.000000e-24 : f32
    %225 = vector.broadcast %cst_71 : f32 to vector<16x256xf32>
    %226 = arith.maximumf %224, %225 : vector<16x256xf32>
    %227 = math.rsqrt %226 : vector<16x256xf32>
    %228 = arith.mulf %130, %227 : vector<16x256xf32>
    %229 = arith.truncf %222 : vector<16x256xf32> to vector<16x256xbf16>
    %230 = arith.truncf %228 : vector<16x256xf32> to vector<16x256xbf16>
    %cst_72 = arith.constant dense<0.000000e+00> : vector<16x16xf32>
    %231 = tpu.matmul %229, %230, %cst_72 {dimension_numbers = #tpu.dot_dimension_numbers<[1], [1], [0], [0], [0, 0, 1, 0], [], []>} : vector<16x256xbf16>, vector<16x256xbf16>, vector<16x16xf32> -> vector<16x16xf32>
    %232 = vector.broadcast %178 : vector<16x1xf32> to vector<16x16xf32>
    %233 = arith.mulf %231, %232 : vector<16x16xf32>
    %cst_73 = arith.constant 0.000000e+00 : f32
    %234 = vector.broadcast %cst_73 : f32 to vector<16x16xf32>
    %235 = arith.cmpf ogt, %177, %234 : vector<16x16xf32>
    %cst_74 = arith.constant -1.000000e+30 : f32
    %236 = vector.broadcast %cst_74 : f32 to vector<16x16xf32>
    %237 = arith.select %235, %233, %236 : vector<16x16xi1>, vector<16x16xf32>
    %cst_75 = arith.constant dense<0xFF800000> : vector<16xf32>
    %238 = vector.multi_reduction <maximumf>, %237, %cst_75 [1] : vector<16x16xf32> to vector<16xf32>
    %239 = vector.shape_cast %238 : vector<16xf32> to vector<16x1xf32>
    %240 = vector.broadcast %239 : vector<16x1xf32> to vector<16x16xf32>
    %241 = arith.subf %237, %240 : vector<16x16xf32>
    %242 = math.exp %241 : vector<16x16xf32>
    %cst_76 = arith.constant dense<0.000000e+00> : vector<16xf32>
    %243 = vector.multi_reduction <add>, %242, %cst_76 [1] : vector<16x16xf32> to vector<16xf32>
    %244 = vector.shape_cast %243 : vector<16xf32> to vector<16x1xf32>
    %245 = tpu.reciprocal %244 {approx = true} : vector<16x1xf32> -> vector<16x1xf32>
    %246 = vector.broadcast %245 : vector<16x1xf32> to vector<16x16xf32>
    %247 = arith.mulf %242, %246 : vector<16x16xf32>
    %248 = arith.truncf %247 : vector<16x16xf32> to vector<16x16xbf16>
    %249 = arith.truncf %131 : vector<16x256xf32> to vector<16x256xbf16>
    %cst_77 = arith.constant dense<0.000000e+00> : vector<16x256xf32>
    %250 = tpu.matmul %248, %249, %cst_77 {dimension_numbers = #tpu.dot_dimension_numbers<[1], [0], [0], [1], [0, 0, 1, 1], [], []>} : vector<16x16xbf16>, vector<16x256xbf16>, vector<16x256xf32> -> vector<16x256xf32>
    %c0_78 = arith.constant 0 : index
    %c0_79 = arith.constant 0 : index
    %251 = vector.load %arg19[%c0_78, %c0_79] : memref<64x256xf32, #tpu.memory_space<vmem>>, vector<64x256xf32>
    %cst_80 = arith.constant dense<0.000000e+00> : vector<16x256xf32>
    %252 = tpu.matmul %214, %251, %cst_80 {dimension_numbers = #tpu.dot_dimension_numbers<[1], [0], [0], [1], [0, 0, 1, 1], [], []>} : vector<16x64xf32>, vector<64x256xf32>, vector<16x256xf32> -> vector<16x256xf32>
    %c0_81 = arith.constant 0 : index
    %c0_82 = arith.constant 0 : index
    %253 = vector.load %arg20[%c0_81, %c0_82] : memref<32x32xf32, #tpu.memory_space<vmem>>, vector<32x32xf32>
    %254 = vector.extract_strided_slice %253 {offsets = [0, 0], sizes = [32, 16], strides = [1, 1]} : vector<32x32xf32> to vector<32x16xf32>
    %255 = arith.truncf %254 : vector<32x16xf32> to vector<32x16xbf16>
    %256 = arith.truncf %252 : vector<16x256xf32> to vector<16x256xbf16>
    %cst_83 = arith.constant dense<0.000000e+00> : vector<32x256xf32>
    %257 = tpu.matmul %255, %256, %cst_83 {dimension_numbers = #tpu.dot_dimension_numbers<[1], [0], [0], [1], [0, 0, 1, 1], [], []>} : vector<32x16xbf16>, vector<16x256xbf16>, vector<32x256xf32> -> vector<32x256xf32>
    %258 = vector.extract_strided_slice %253 {offsets = [0, 16], sizes = [32, 16], strides = [1, 1]} : vector<32x32xf32> to vector<32x16xf32>
    %259 = arith.truncf %258 : vector<32x16xf32> to vector<32x16xbf16>
    %260 = arith.truncf %250 : vector<16x256xf32> to vector<16x256xbf16>
    %cst_84 = arith.constant dense<0.000000e+00> : vector<32x256xf32>
    %261 = tpu.matmul %259, %260, %cst_84 {dimension_numbers = #tpu.dot_dimension_numbers<[1], [0], [0], [1], [0, 0, 1, 1], [], []>} : vector<32x16xbf16>, vector<16x256xbf16>, vector<32x256xf32> -> vector<32x256xf32>
    %262 = arith.addf %257, %261 : vector<32x256xf32>
    %c0_85 = arith.constant 0 : index
    %c0_86 = arith.constant 0 : index
    %263 = vector.load %arg21[%c0_85, %c0_86] : memref<32x1xf32, #tpu.memory_space<vmem>>, vector<32x1xf32>
    %264 = vector.broadcast %263 : vector<32x1xf32> to vector<32x256xf32>
    %265 = arith.addf %262, %264 : vector<32x256xf32>
    %266 = arith.addf %1, %265 : vector<32x256xf32>
    %267 = arith.addf %266, %101 : vector<32x256xf32>
    %cst_87 = arith.constant dense<0.000000e+00> : vector<256xf32>
    %268 = vector.multi_reduction <add>, %267, %cst_87 [0] : vector<32x256xf32> to vector<256xf32>
    %269 = vector.shape_cast %268 : vector<256xf32> to vector<1x256xf32>
    %cst_88 = arith.constant 3.200000e+01 : f32
    %270 = vector.broadcast %cst_88 : f32 to vector<1x256xf32>
    %271 = arith.divf %269, %270 : vector<1x256xf32>
    %272 = vector.broadcast %271 : vector<1x256xf32> to vector<32x256xf32>
    %273 = arith.subf %267, %272 : vector<32x256xf32>
    %274 = arith.mulf %273, %273 : vector<32x256xf32>
    %cst_89 = arith.constant dense<0.000000e+00> : vector<256xf32>
    %275 = vector.multi_reduction <add>, %274, %cst_89 [0] : vector<32x256xf32> to vector<256xf32>
    %276 = vector.shape_cast %275 : vector<256xf32> to vector<1x256xf32>
    %cst_90 = arith.constant 3.200000e+01 : f32
    %277 = vector.broadcast %cst_90 : f32 to vector<1x256xf32>
    %278 = arith.divf %276, %277 : vector<1x256xf32>
    %cst_91 = arith.constant 9.99999974E-6 : f32
    %279 = vector.broadcast %cst_91 : f32 to vector<1x256xf32>
    %280 = arith.addf %278, %279 : vector<1x256xf32>
    %281 = math.rsqrt %280 : vector<1x256xf32>
    %282 = vector.broadcast %281 : vector<1x256xf32> to vector<32x256xf32>
    %283 = arith.mulf %273, %282 : vector<32x256xf32>
    %c0_92 = arith.constant 0 : index
    %c0_93 = arith.constant 0 : index
    %284 = vector.load %arg24[%c0_92, %c0_93] : memref<32x1xf32, #tpu.memory_space<vmem>>, vector<32x1xf32>
    %285 = vector.broadcast %284 : vector<32x1xf32> to vector<32x256xf32>
    %286 = arith.mulf %283, %285 : vector<32x256xf32>
    %c0_94 = arith.constant 0 : index
    %c0_95 = arith.constant 0 : index
    %287 = vector.load %arg25[%c0_94, %c0_95] : memref<32x1xf32, #tpu.memory_space<vmem>>, vector<32x1xf32>
    %288 = vector.broadcast %287 : vector<32x1xf32> to vector<32x256xf32>
    %289 = arith.addf %286, %288 : vector<32x256xf32>
    %c0_96 = arith.constant 0 : index
    %c0_97 = arith.constant 0 : index
    %290 = vector.load %arg26[%c0_96, %c0_97] : memref<128x32xf32, #tpu.memory_space<vmem>>, vector<128x32xf32>
    %291 = arith.truncf %290 : vector<128x32xf32> to vector<128x32xbf16>
    %292 = arith.truncf %289 : vector<32x256xf32> to vector<32x256xbf16>
    %cst_98 = arith.constant dense<0.000000e+00> : vector<128x256xf32>
    %293 = tpu.matmul %291, %292, %cst_98 {dimension_numbers = #tpu.dot_dimension_numbers<[1], [0], [0], [1], [0, 0, 1, 1], [], []>} : vector<128x32xbf16>, vector<32x256xbf16>, vector<128x256xf32> -> vector<128x256xf32>
    %c0_99 = arith.constant 0 : index
    %c0_100 = arith.constant 0 : index
    %294 = vector.load %arg27[%c0_99, %c0_100] : memref<128x1xf32, #tpu.memory_space<vmem>>, vector<128x1xf32>
    %295 = vector.broadcast %294 : vector<128x1xf32> to vector<128x256xf32>
    %296 = arith.addf %293, %295 : vector<128x256xf32>
    %297 = math.absf %296 : vector<128x256xf32>
    %cst_101 = arith.constant 0.000000e+00 : f32
    %298 = vector.broadcast %cst_101 : f32 to vector<128x256xf32>
    %299 = arith.subf %298, %297 : vector<128x256xf32>
    %300 = math.exp %299 : vector<128x256xf32>
    %cst_102 = arith.constant 1.000000e+00 : f32
    %301 = vector.broadcast %cst_102 : f32 to vector<128x256xf32>
    %302 = arith.addf %301, %300 : vector<128x256xf32>
    %cst_103 = arith.constant 1.000000e+00 : f32
    %303 = vector.broadcast %cst_103 : f32 to vector<128x256xf32>
    %304 = arith.addf %303, %300 : vector<128x256xf32>
    %305 = arith.mulf %302, %304 : vector<128x256xf32>
    %cst_104 = arith.constant 0.000000e+00 : f32
    %306 = vector.broadcast %cst_104 : f32 to vector<128x256xf32>
    %307 = arith.cmpf oge, %296, %306 : vector<128x256xf32>
    %cst_105 = arith.constant 2.000000e+00 : f32
    %308 = vector.broadcast %cst_105 : f32 to vector<128x256xf32>
    %309 = arith.mulf %308, %300 : vector<128x256xf32>
    %310 = arith.mulf %309, %300 : vector<128x256xf32>
    %cst_106 = arith.constant 2.000000e+00 : f32
    %311 = vector.broadcast %cst_106 : f32 to vector<128x256xf32>
    %312 = arith.select %307, %310, %311 : vector<128x256xi1>, vector<128x256xf32>
    %313 = arith.mulf %300, %300 : vector<128x256xf32>
    %314 = arith.addf %305, %313 : vector<128x256xf32>
    %cst_107 = arith.constant 1.000000e+00 : f32
    %315 = vector.broadcast %cst_107 : f32 to vector<128x256xf32>
    %316 = arith.addf %305, %315 : vector<128x256xf32>
    %317 = arith.select %307, %314, %316 : vector<128x256xi1>, vector<128x256xf32>
    %318 = tpu.reciprocal %317 {approx = true} : vector<128x256xf32> -> vector<128x256xf32>
    %319 = arith.mulf %312, %318 : vector<128x256xf32>
    %cst_108 = arith.constant 1.000000e+00 : f32
    %320 = vector.broadcast %cst_108 : f32 to vector<128x256xf32>
    %321 = arith.subf %320, %319 : vector<128x256xf32>
    %322 = arith.mulf %296, %321 : vector<128x256xf32>
    %c0_109 = arith.constant 0 : index
    %c0_110 = arith.constant 0 : index
    %323 = vector.load %arg28[%c0_109, %c0_110] : memref<32x128xf32, #tpu.memory_space<vmem>>, vector<32x128xf32>
    %324 = arith.truncf %323 : vector<32x128xf32> to vector<32x128xbf16>
    %325 = arith.truncf %322 : vector<128x256xf32> to vector<128x256xbf16>
    %cst_111 = arith.constant dense<0.000000e+00> : vector<32x256xf32>
    %326 = tpu.matmul %324, %325, %cst_111 {dimension_numbers = #tpu.dot_dimension_numbers<[1], [0], [0], [1], [0, 0, 1, 1], [], []>} : vector<32x128xbf16>, vector<128x256xbf16>, vector<32x256xf32> -> vector<32x256xf32>
    %c0_112 = arith.constant 0 : index
    %c0_113 = arith.constant 0 : index
    %327 = vector.load %arg29[%c0_112, %c0_113] : memref<32x1xf32, #tpu.memory_space<vmem>>, vector<32x1xf32>
    %328 = vector.broadcast %327 : vector<32x1xf32> to vector<32x256xf32>
    %329 = arith.addf %326, %328 : vector<32x256xf32>
    %330 = arith.addf %267, %329 : vector<32x256xf32>
    %c0_114 = arith.constant 0 : index
    %c0_115 = arith.constant 0 : index
    %c0_116 = arith.constant 0 : index
    %331 = vector.load %arg30[%c0_114, %c0_115, %c0_116] : memref<1x32x256xf32, #tpu.memory_space<vmem>>, vector<1x32x256xf32>
    %332 = vector.shape_cast %331 : vector<1x32x256xf32> to vector<32x256xf32>
    %333 = vector.shape_cast %330 : vector<32x256xf32> to vector<1x32x256xf32>
    tpu.vector_store %arg30[%c0_114, %c0_115, %c0_116], %333 {strides = array<i32>} : memref<1x32x256xf32, #tpu.memory_space<vmem>>, vector<1x32x256xf32>,
    %c0_117 = arith.constant 0 : index
    %c0_118 = arith.constant 0 : index
    %c0_119 = arith.constant 0 : index
    %334 = vector.load %arg31[%c0_117, %c0_118, %c0_119] : memref<1x16x256xf32, #tpu.memory_space<vmem>>, vector<1x16x256xf32>
    %335 = vector.shape_cast %334 : vector<1x16x256xf32> to vector<16x256xf32>
    %336 = vector.shape_cast %252 : vector<16x256xf32> to vector<1x16x256xf32>
    tpu.vector_store %arg31[%c0_117, %c0_118, %c0_119], %336 {strides = array<i32>} : memref<1x16x256xf32, #tpu.memory_space<vmem>>, vector<1x16x256xf32>,
    %c0_120 = arith.constant 0 : index
    %c0_121 = arith.constant 0 : index
    %c0_122 = arith.constant 0 : index
    %337 = vector.load %arg32[%c0_120, %c0_121, %c0_122] : memref<1x16x256xf32, #tpu.memory_space<vmem>>, vector<1x16x256xf32>
    %338 = vector.shape_cast %337 : vector<1x16x256xf32> to vector<16x256xf32>
    %339 = vector.shape_cast %250 : vector<16x256xf32> to vector<1x16x256xf32>
    tpu.vector_store %arg32[%c0_120, %c0_121, %c0_122], %339 {strides = array<i32>} : memref<1x16x256xf32, #tpu.memory_space<vmem>>, vector<1x16x256xf32>,
    return
  }
  func.func @transform_0(%arg0: i32) -> (i32, i32, i32) {
    %c0_i32 = arith.constant 0 : i32
    %c0_i32_0 = arith.constant 0 : i32
    %c0_i32_1 = arith.constant 0 : i32
    return %arg0, %c0_i32, %c0_i32_0 : i32, i32, i32
  }
  func.func @transform_1(%arg0: i32) -> (i32, i32) {
    %c0_i32 = arith.constant 0 : i32
    %c0_i32_0 = arith.constant 0 : i32
    %c0_i32_1 = arith.constant 0 : i32
    return %c0_i32, %c0_i32_0 : i32, i32
  }
  func.func @transform_2(%arg0: i32) -> (i32, i32) {
    %c0_i32 = arith.constant 0 : i32
    %c0_i32_0 = arith.constant 0 : i32
    %c0_i32_1 = arith.constant 0 : i32
    return %c0_i32, %c0_i32_0 : i32, i32
  }
  func.func @transform_3(%arg0: i32) -> (i32, i32) {
    %c0_i32 = arith.constant 0 : i32
    %c0_i32_0 = arith.constant 0 : i32
    %c0_i32_1 = arith.constant 0 : i32
    return %c0_i32, %c0_i32_0 : i32, i32
  }
  func.func @transform_4(%arg0: i32) -> (i32, i32) {
    %c0_i32 = arith.constant 0 : i32
    %c0_i32_0 = arith.constant 0 : i32
    %c0_i32_1 = arith.constant 0 : i32
    return %c0_i32, %c0_i32_0 : i32, i32
  }
  func.func @transform_5(%arg0: i32) -> (i32, i32) {
    %c0_i32 = arith.constant 0 : i32
    %c0_i32_0 = arith.constant 0 : i32
    %c0_i32_1 = arith.constant 0 : i32
    return %c0_i32, %c0_i32_0 : i32, i32
  }
  func.func @transform_6(%arg0: i32) -> (i32, i32) {
    %c0_i32 = arith.constant 0 : i32
    %c0_i32_0 = arith.constant 0 : i32
    %c0_i32_1 = arith.constant 0 : i32
    return %c0_i32, %c0_i32_0 : i32, i32
  }
  func.func @transform_7(%arg0: i32) -> (i32, i32) {
    %c0_i32 = arith.constant 0 : i32
    %c0_i32_0 = arith.constant 0 : i32
    %c0_i32_1 = arith.constant 0 : i32
    return %c0_i32, %c0_i32_0 : i32, i32
  }
  func.func @transform_8(%arg0: i32) -> (i32, i32) {
    %c0_i32 = arith.constant 0 : i32
    %c0_i32_0 = arith.constant 0 : i32
    %c0_i32_1 = arith.constant 0 : i32
    return %c0_i32, %c0_i32_0 : i32, i32
  }
  func.func @transform_9(%arg0: i32) -> (i32, i32) {
    %c0_i32 = arith.constant 0 : i32
    %c0_i32_0 = arith.constant 0 : i32
    %c0_i32_1 = arith.constant 0 : i32
    return %c0_i32, %c0_i32_0 : i32, i32
  }
  func.func @transform_10(%arg0: i32) -> (i32, i32) {
    %c0_i32 = arith.constant 0 : i32
    %c0_i32_0 = arith.constant 0 : i32
    %c0_i32_1 = arith.constant 0 : i32
    return %c0_i32, %c0_i32_0 : i32, i32
  }
  func.func @transform_11(%arg0: i32) -> (i32, i32) {
    %c0_i32 = arith.constant 0 : i32
    %c0_i32_0 = arith.constant 0 : i32
    %c0_i32_1 = arith.constant 0 : i32
    return %c0_i32, %c0_i32_0 : i32, i32
  }
  func.func @transform_12(%arg0: i32) -> (i32, i32) {
    %c0_i32 = arith.constant 0 : i32
    %c0_i32_0 = arith.constant 0 : i32
    %c0_i32_1 = arith.constant 0 : i32
    return %c0_i32, %c0_i32_0 : i32, i32
  }
  func.func @transform_13(%arg0: i32) -> (i32, i32) {
    %c0_i32 = arith.constant 0 : i32
    %c0_i32_0 = arith.constant 0 : i32
    %c0_i32_1 = arith.constant 0 : i32
    return %c0_i32, %c0_i32_0 : i32, i32
  }
  func.func @transform_14(%arg0: i32) -> (i32, i32) {
    %c0_i32 = arith.constant 0 : i32
    %c0_i32_0 = arith.constant 0 : i32
    %c0_i32_1 = arith.constant 0 : i32
    return %c0_i32, %c0_i32_0 : i32, i32
  }
  func.func @transform_15(%arg0: i32) -> (i32, i32) {
    %c0_i32 = arith.constant 0 : i32
    %c0_i32_0 = arith.constant 0 : i32
    %c0_i32_1 = arith.constant 0 : i32
    return %c0_i32, %c0_i32_0 : i32, i32
  }
  func.func @transform_16(%arg0: i32) -> (i32, i32) {
    %c0_i32 = arith.constant 0 : i32
    %c0_i32_0 = arith.constant 0 : i32
    %c0_i32_1 = arith.constant 0 : i32
    return %c0_i32, %c0_i32_0 : i32, i32
  }
  func.func @transform_17(%arg0: i32) -> (i32, i32) {
    %c0_i32 = arith.constant 0 : i32
    %c0_i32_0 = arith.constant 0 : i32
    %c0_i32_1 = arith.constant 0 : i32
    return %c0_i32, %c0_i32_0 : i32, i32
  }
  func.func @transform_18(%arg0: i32) -> (i32, i32) {
    %c0_i32 = arith.constant 0 : i32
    %c0_i32_0 = arith.constant 0 : i32
    %c0_i32_1 = arith.constant 0 : i32
    return %c0_i32, %c0_i32_0 : i32, i32
  }
  func.func @transform_19(%arg0: i32) -> (i32, i32) {
    %c0_i32 = arith.constant 0 : i32
    %c0_i32_0 = arith.constant 0 : i32
    %c0_i32_1 = arith.constant 0 : i32
    return %c0_i32, %c0_i32_0 : i32, i32
  }
  func.func @transform_20(%arg0: i32) -> (i32, i32) {
    %c0_i32 = arith.constant 0 : i32
    %c0_i32_0 = arith.constant 0 : i32
    %c0_i32_1 = arith.constant 0 : i32
    return %c0_i32, %c0_i32_0 : i32, i32
  }
  func.func @transform_21(%arg0: i32) -> (i32, i32) {
    %c0_i32 = arith.constant 0 : i32
    %c0_i32_0 = arith.constant 0 : i32
    %c0_i32_1 = arith.constant 0 : i32
    return %c0_i32, %c0_i32_0 : i32, i32
  }
  func.func @transform_22(%arg0: i32) -> (i32, i32) {
    %c0_i32 = arith.constant 0 : i32
    %c0_i32_0 = arith.constant 0 : i32
    %c0_i32_1 = arith.constant 0 : i32
    return %c0_i32, %c0_i32_0 : i32, i32
  }
  func.func @transform_23(%arg0: i32) -> (i32, i32) {
    %c0_i32 = arith.constant 0 : i32
    %c0_i32_0 = arith.constant 0 : i32
    %c0_i32_1 = arith.constant 0 : i32
    return %c0_i32, %c0_i32_0 : i32, i32
  }
  func.func @transform_24(%arg0: i32) -> (i32, i32) {
    %c0_i32 = arith.constant 0 : i32
    %c0_i32_0 = arith.constant 0 : i32
    %c0_i32_1 = arith.constant 0 : i32
    return %c0_i32, %c0_i32_0 : i32, i32
  }
  func.func @transform_25(%arg0: i32) -> (i32, i32) {
    %c0_i32 = arith.constant 0 : i32
    %c0_i32_0 = arith.constant 0 : i32
    %c0_i32_1 = arith.constant 0 : i32
    return %c0_i32, %c0_i32_0 : i32, i32
  }
  func.func @transform_26(%arg0: i32) -> (i32, i32) {
    %c0_i32 = arith.constant 0 : i32
    %c0_i32_0 = arith.constant 0 : i32
    %c0_i32_1 = arith.constant 0 : i32
    return %c0_i32, %c0_i32_0 : i32, i32
  }
  func.func @transform_27(%arg0: i32) -> (i32, i32) {
    %c0_i32 = arith.constant 0 : i32
    %c0_i32_0 = arith.constant 0 : i32
    %c0_i32_1 = arith.constant 0 : i32
    return %c0_i32, %c0_i32_0 : i32, i32
  }
  func.func @transform_28(%arg0: i32) -> (i32, i32) {
    %c0_i32 = arith.constant 0 : i32
    %c0_i32_0 = arith.constant 0 : i32
    %c0_i32_1 = arith.constant 0 : i32
    return %c0_i32, %c0_i32_0 : i32, i32
  }
  func.func @transform_29(%arg0: i32) -> (i32, i32, i32) {
    %c0_i32 = arith.constant 0 : i32
    %c0_i32_0 = arith.constant 0 : i32
    %c0_i32_1 = arith.constant 0 : i32
    return %arg0, %c0_i32, %c0_i32_0 : i32, i32, i32
  }
  func.func @transform_30(%arg0: i32) -> (i32, i32, i32) {
    %c0_i32 = arith.constant 0 : i32
    %c0_i32_0 = arith.constant 0 : i32
    %c0_i32_1 = arith.constant 0 : i32
    return %arg0, %c0_i32, %c0_i32_0 : i32, i32, i32
  }
  func.func @transform_31(%arg0: i32) -> (i32, i32, i32) {
    %c0_i32 = arith.constant 0 : i32
    %c0_i32_0 = arith.constant 0 : i32
    %c0_i32_1 = arith.constant 0 : i32
    return %arg0, %c0_i32, %c0_i32_0 : i32, i32, i32
  }
}

</mosaic_0001>

<bundles_post_ra>
// kernel: fourier_encoder_forward.1
= control target key start
LH: loop header
LB: loop body
LE: loop exit
PB: predicated region body
PF: predicated region fallthrough
CT: control target
= control target key end

     0   :  { %s6453_s6 = smov 1   ;;  %s6454_s10 = smov 2   ;;  %s9402_s0 = inlined_call_operand.smem [shape: u32[32], index: -1, kind: input, shape index: {}] }
   0x1   :  { %s6520_s5 = sld [smem:[%s9402_s0]]   ;;  %s6455_s14 = smov 3  }
   0x2   :  { %s6525_s9 = sld [smem:[%s9402_s0 + %s6453_s6]]   ;;  %s6456_s18 = smov 4  }
   0x3   :  { %s6530_s13 = sld [smem:[%s9402_s0 + %s6454_s10]]   ;;  %s6457_s22 = smov 5  }
   0x4   :  { %s6535_s17 = sld [smem:[%s9402_s0 + %s6455_s14]]   ;;  %s6458_s26 = smov 6  }
   0x5   :  { %s6540_s21 = sld [smem:[%s9402_s0 + %s6456_s18]]   ;;  %s6459_s30 = smov 7  }
   0x6   :  { %s6545_s25 = sld [smem:[%s9402_s0 + %s6457_s22]]   ;;  %s6460_s4 = smov 8  }
   0x7   :  { %s6550_s29 = sld [smem:[%s9402_s0 + %s6458_s26]]   ;;  %s6461_s10 = smov 9  }
   0x8   :  { %s6555_s3 = sld [smem:[%s9402_s0 + %s6459_s30]]   ;;  %s6462_s15 = smov 10  }
   0x9   :  { %s6560_s8 = sld [smem:[%s9402_s0 + %s6460_s4]]   ;;  %s6463_s20 = smov 11  }
   0xa   :  { %s6565_s14 = sld [smem:[%s9402_s0 + %s6461_s10]]   ;;  %s6464_s26 = smov 12  }
   0xb   :  { %s6570_s19 = sld [smem:[%s9402_s0 + %s6462_s15]]   ;;  %s6465_s1 = smov 13  }
   0xc   :  { %9535 = sst [smem:[#allocation2_spill]] %s6545_s25  ;;  %s6466_s7 = smov 14  }
   0xd   :  { %s6575_s24 = sld [smem:[%s9402_s0 + %s6463_s20]]   ;;  %s6467_s15 = smov 15  }
   0xe   :  { %9536 = sst [smem:[#allocation3_spill]] %s6555_s3  ;;  %s6468_s22 = smov 16  }
   0xf   :  { %s6580_s30 = sld [smem:[%s9402_s0 + %s6464_s26]]   ;;  %s6469_s28 = smov 17  }
  0x10   :  { %s6585_s6 = sld [smem:[%s9402_s0 + %s6465_s1]]  }
  0x11   :  { %s6590_s12 = sld [smem:[%s9402_s0 + %s6466_s7]]   ;;  %s6470_s7 = smov 18  }
  0x12   :  { %s6595_s20 = sld [smem:[%s9402_s0 + %s6467_s15]]   ;;  %s6471_s15 = smov 19  }
  0x13   :  { %s6600_s27 = sld [smem:[%s9402_s0 + %s6468_s22]]   ;;  %s6472_s22 = smov 20  }
  0x14   :  { %s6605_s4 = sld [smem:[%s9402_s0 + %s6469_s28]]   ;;  %s6473_s28 = smov 21  }
  0x15   :  { %s6610_s25 = sld [smem:[%s9402_s0 + %s6470_s7]]   ;;  %s6474_s7 = smov 22  }
  0x18   :  { %9537 = sst [smem:[#allocation4_spill]] %s6595_s20 }
  0x19   :  { %9538 = sst [smem:[#allocation5_spill]] %s6600_s27 }
  0x1a   :  { %9539 = sst [smem:[#allocation6_spill]] %s6605_s4 }
  0x1b   :  { %9540 = sst [smem:[#allocation7_spill]] %s6610_s25 }
  0x1c   :  { %s6615_s20 = sld [smem:[%s9402_s0 + %s6471_s15]]   ;;  %s6475_s15 = smov 23  }
  0x1d   :  { %s6620_s27 = sld [smem:[%s9402_s0 + %s6472_s22]]   ;;  %s6476_s22 = smov 24  }
  0x1e   :  { %s6625_s4 = sld [smem:[%s9402_s0 + %s6473_s28]]   ;;  %s6477_s28 = smov 25  }
  0x1f   :  { %s6630_s25 = sld [smem:[%s9402_s0 + %s6474_s7]]   ;;  %s6478_s7 = smov 26  }
  0x22   :  { %9541 = sst [smem:[#allocation8_spill]] %s6615_s20 }
  0x23   :  { %9542 = sst [smem:[#allocation9_spill]] %s6620_s27 }
  0x24   :  { %9543 = sst [smem:[#allocation10_spill]] %s6625_s4 }
  0x25   :  { %9544 = sst [smem:[#allocation11_spill]] %s6630_s25 }
  0x26   :  { %s6635_s20 = sld [smem:[%s9402_s0 + %s6475_s15]]   ;;  %s6479_s15 = smov 27  }
  0x27   :  { %s6640_s27 = sld [smem:[%s9402_s0 + %s6476_s22]]   ;;  %s6480_s22 = smov 28  }
  0x28   :  { %s6645_s4 = sld [smem:[%s9402_s0 + %s6477_s28]]   ;;  %s6481_s28 = smov 29  }
  0x29   :  { %s6650_s25 = sld [smem:[%s9402_s0 + %s6478_s7]]   ;;  %s6482_s7 = smov 30  }
  0x2c   :  { %9545 = sst [smem:[#allocation12_spill]] %s6635_s20 }
  0x2d   :  { %9546 = sst [smem:[#allocation13_spill]] %s6640_s27 }
  0x2e   :  { %9547 = sst [smem:[#allocation14_spill]] %s6645_s4 }
  0x2f   :  { %9548 = sst [smem:[#allocation15_spill]] %s6650_s25 }
  0x30   :  { %s6655_s20 = sld [smem:[%s9402_s0 + %s6479_s15]]   ;;  %s6483_s15 = smov 31  }
  0x31   :  { %s6660_s27 = sld [smem:[%s9402_s0 + %s6480_s22]]   ;;  %s6677_s22 = smov 0  }
  0x32   :  { %s6665_s4 = sld [smem:[%s9402_s0 + %s6481_s28]]  }
  0x33   :  { %s6670_s25 = sld [smem:[%s9402_s0 + %s6482_s7]]  }
  0x36   :  { %9549 = sst [smem:[#allocation16_spill]] %s6655_s20 }
  0x37   :  { %s6675_s20 = sld [smem:[%s9402_s0 + %s6483_s15]]  }
  0x38 LB: > { %s9550_s3 = sld [smem:[#allocation3_spill]]  ;;  %s5603_s23 = sadd.s32 4294967295, %s6451_s22   ;;  %s6451_s22 = sphi %s6677_s22, %s74_s22  }
  0x39   : > { %p5607_p0 = scmp.ge.s32.totalorder %s6451_s22, 1  ;;  %p874_p1 = scmp.lt.s32.totalorder %s6451_s22, 3 }
  0x3b   : > { %p875_p2 = pnand %p5607_p0, %p874_p1 }
  0x3d   : > { %878 = sbr.rel (%p875_p2) target bundleno = 4586 (0x11ea), region = 136 }
  0x44   : > { %v1065_v0 = vld [vmem:[%s6525_s9 + $0x18] sm:$0xff]  ;;  %v1064_v1 = vld [vmem:[%s6525_s9 + $0x10] sm:$0xff]  ;;  %v1179_v2 = vlaneseq  ;;  %v9419_v3 = vmov 0   ;;  %v6694_v7 = vld [vmem:[%s6535_s17 + $0x8] sm:$0xff]  ;;  %p964_p3 = scmp.lt.s32.totalorder %s5603_s23, 1  ;;  %s6485_s0 = smov 1  }
  0x45   : > { %5995 = vset.pattern.permute.xlu1 %v9419_v3  ;;  %5994 = vset.pattern.permute.xlu0 %v9419_v3  ;;  %v1097_v4 = vld [vmem:[%s6530_s13 + $0x18] sm:$0xff]  ;;  %v1096_v6 = vld [vmem:[%s6530_s13 + $0x10] sm:$0xff]  ;;  %v6697_v8 = vld [vmem:[%s6535_s17] sm:$0xff]  ;;  %v9417_v33 = vmov 0.0|0.0   ;;  %s6487_s1 = smov 17   ;;  %s6488_s2 = smov 2  }
  0x46   : > { %1083 = vperm.xlu1 %5995, %v1065_v0   ;;  %1078 = vperm.xlu0 %5994, %v1064_v1   ;;  %v6690_v5 = vshrl.u32 %v1179_v2, 7  ;;  %s9791_s23 = smov (!%p964_p3, %s5603_s23), 1  ;;  %v2778_v30 = vld [vmem:[%s6550_s29] sm:$0xff]  ;;  %v2779_v31 = vld [vmem:[%s6550_s29 + $0x8] sm:$0xff]  ;;  %v2780_v32 = vld [vmem:[%s6550_s29 + $0x10] sm:$0xff]  ;;  %s6489_s7 = smov 16  }
  0x47   : > { %s9504_s26 = sshll.u32 %s9791_s23, 6  ;;  %5807 = vmatprep.subr.bf16.mxu1 %v9417_v33  ;;  %v5808_v34 = vpack.c.bf16 %v2779_v31, %v2778_v30  ;;  %v2781_v35 = vld [vmem:[%s6550_s29 + $0x18] sm:$0xff]  ;;  %v2782_v39 = vld [vmem:[%s6550_s29 + $0x20] sm:$0xff]  ;;  %v2783_v40 = vld [vmem:[%s6550_s29 + $0x28] sm:$0xff]  ;;  %s6490_s10 = smov 18   ;;  %vm1154_vm0 = vcmask 138240  }
  0x48   : > { %v1197_v9 = vsub.s32 1, %v6690_v5  ;;  %s6708_s28 = scalar_lea.vmem %s6520_s5, %s9504_s26  ;;  %v5811_v38 = vpack.c.bf16 %v2781_v35, %v2780_v32  ;;  %v5814_v43 = vpack.c.bf16 %v2783_v40, %v2782_v39  ;;  %v2784_v44 = vld [vmem:[%s6550_s29 + $0x30] sm:$0xff]  ;;  %v2785_v45 = vld [vmem:[%s6550_s29 + $0x38] sm:$0xff]  ;;  %v2786_v49 = vld [vmem:[%s6550_s29 + $0x40] sm:$0xff]  ;;  %s6491_s11 = smov 32   ;;  %vm1209_vm1 = vcmask 7168  }
  0x49   : > { %v985_v12 = vld [vmem:[%s6708_s28] sm:$0xff]  ;;  %v987_v13 = vld [vmem:[%s6708_s28 + $0x10] sm:$0xff]  ;;  %v986_v14 = vld [vmem:[%s6708_s28 + $0x8] sm:$0xff]  ;;  %5809 = vmatpush1.bf16.msra.mxu1 %v5808_v34  ;;  %v5817_v48 = vpack.c.bf16 %v2785_v45, %v2784_v44  ;;  %s6492_s15 = smov 33   ;;  %s6493_s16 = smov 34   ;;  %vm1240_vm2 = vcmask 15360  }
  0x4a   : > { %1115 = vperm.xlu1 %5995, %v1097_v4   ;;  %1110 = vperm.xlu0 %5994, %v1096_v6   ;;  %v1202_v10 = vrot.slane %v6694_v7, %v1197_v9  ;;  %v1198_v11 = vrot.slane %v6697_v8, %v1197_v9  ;;  %v988_v15 = vld [vmem:[%s6708_s28 + $0x18] sm:$0xff]  ;;  %v993_v16 = vadd.f32 %v987_v13, %v985_v12  ;;  %v6715_v17 = vld [vmem:[%s6708_s28 + $0x20] sm:$0xff]  ;;  %v6718_v19 = vld [vmem:[%s6708_s28 + $0x28] sm:$0xff]  ;;  %s6494_s18 = smov 127   ;;  %vm1271_vm3 = vcmask 130048   ;;  %s9646_s26 = sld [smem:[#allocation5_spill]] }
  0x4b   : > { %v1002_v18 = vadd.f32 %v988_v15, %v986_v14  ;;  %v6722_v21 = vld [vmem:[%s6708_s28 + $0x30] sm:$0xff]  ;;  %v6726_v23 = vld [vmem:[%s6708_s28 + $0x38] sm:$0xff]  ;;  %5810 = vmatprep.subr.bf16.mxu1 %v9417_v33  ;;  %v2787_v50 = vld [vmem:[%s6550_s29 + $0x48] sm:$0xff]  ;;  %vm1332_vm4 = vcmask 146432   ;;  %vm1363_vm5 = vcmask 261120   ;;  %vm1394_vm6 = vcmask 269312  }
  0x4c   : > { %v994_v20 = vadd.f32 %v993_v16, %v6715_v17  ;;  %v5820_v53 = vpack.c.bf16 %v2787_v50, %v2786_v49  ;;  %v2788_v54 = vld [vmem:[%s6550_s29 + $0x50] sm:$0xff]  ;;  %v2789_v55 = vld [vmem:[%s6550_s29 + $0x58] sm:$0xff]  ;;  %v2790_v59 = vld [vmem:[%s6550_s29 + $0x60] sm:$0xff]  ;;  %vm1425_vm7 = vcmask 277504   ;;  %vm1570_vm8 = vcmask 1039360  }
  0x4d   : > { %v1003_v22 = vadd.f32 %v1002_v18, %v6718_v19  ;;  %5812 = vmatpush1.bf16.msra.mxu1 %v5811_v38  ;;  %v5823_v58 = vpack.c.bf16 %v2789_v55, %v2788_v54  ;;  %v2791_v60 = vld [vmem:[%s6550_s29 + $0x68] sm:$0xff]  ;;  %v2792_v2 = vld [vmem:[%s6550_s29 + $0x70] sm:$0xff]  ;;  %v2793_v4 = vld [vmem:[%s6550_s29 + $0x78] sm:$0xff]  ;;  %vm1659_vm9 = vcmask 1031168   ;;  %vm1748_vm10 = vcmask 916480  }
  0x4e   : > { %1207 = vrot.lane.b32.xlu1 %v1202_v10, %s6485_s0  ;;  %1205 = vrot.lane.b32.xlu0 %v1198_v11, %s6485_s0  ;;  %v995_v24 = vadd.f32 %v994_v20, %v6722_v21  ;;  %v5826_v1 = vpack.c.bf16 %v2791_v60, %v2790_v59  ;;  %v2795_v16 = vld [vmem:[%s6550_s29 + $0x88] sm:$0xff]  ;;  %v2798_v31 = vld [vmem:[%s6550_s29 + $0xa0] sm:$0xff]  ;;  %s6495_s0 = smov 126   ;;  %vm1837_vm11 = vcmask 908288   ;;  %vm1926_vm12 = vcmask 900096  }
  0x4f   : > { %v1004_v25 = vadd.f32 %v1003_v22, %v6726_v23  ;;  %5813 = vmatprep.subr.bf16.mxu1 %v9417_v33  ;;  %v2799_v32 = vld [vmem:[%s6550_s29 + $0xa8] sm:$0xff]  ;;  %v2801_v38 = vld [vmem:[%s6550_s29 + $0xb8] sm:$0xff]  ;;  %vm2015_vm13 = vcmask 785408   ;;  %vm2104_vm14 = vcmask 777216   ;;  %vm2193_vm15 = vcmask 769024  }
  0x50   : > { %v996_v26 = vrot.slane %v995_v24, 4 }
  0x51   : > { %v1005_v27 = vrot.slane %v1004_v25, 4  ;;  %5815 = vmatpush1.bf16.msra.mxu1 %v5814_v43  ;;  %v2803_v43 = vld [vmem:[%s6550_s29 + $0xc8] sm:$0xff] }
  0x52   : > { %v997_v28 = vadd.f32 %v996_v26, %v995_v24  ;;  %5816 = vmatprep.subr.bf16.mxu1 %v9417_v33  ;;  %v2796_v26 = vld [vmem:[%s6550_s29 + $0x90] sm:$0xff] }
  0x53   : > { %v1006_v29 = vadd.f32 %v1005_v27, %v1004_v25 }
  0x54   : > { %v998_v36 = vrot.slane %v997_v28, 2 }
  0x55   : > { %v1007_v37 = vrot.slane %v1006_v29, 2  ;;  %5818 = vmatpush1.bf16.msra.mxu1 %v5817_v48  ;;  %v2805_v48 = vld [vmem:[%s6550_s29 + $0xd8] sm:$0xff] }
  0x56   : > { %v999_v41 = vadd.f32 %v998_v36, %v997_v28  ;;  %5819 = vmatprep.subr.bf16.mxu1 %v9417_v33  ;;  %v5838_v36 = vpack.c.bf16 %v2799_v32, %v2798_v31 }
  0x57   : > { %v1008_v42 = vadd.f32 %v1007_v37, %v1006_v29  ;;  %v2800_v37 = vld [vmem:[%s6550_s29 + $0xb0] sm:$0xff] }
  0x58   : > { %v1000_v46 = vrot.slane %v999_v41, 1 }
  0x59   : > { %v1009_v47 = vrot.slane %v1008_v42, 1  ;;  %5821 = vmatpush1.bf16.msra.mxu1 %v5820_v53  ;;  %v2807_v53 = vld [vmem:[%s6550_s29 + $0xe8] sm:$0xff] }
  0x5a   : > { %v1001_v51 = vadd.f32 %v1000_v46, %v999_v41  ;;  %5822 = vmatprep.subr.bf16.mxu1 %v9417_v33  ;;  %v5841_v41 = vpack.c.bf16 %v2801_v38, %v2800_v37  ;;  %v1290_v37 = vsub.s32 4, %v6690_v5 }
  0x5b   : > { %v1010_v52 = vadd.f32 %v1009_v47, %v1008_v42  ;;  %v2802_v42 = vld [vmem:[%s6550_s29 + $0xc0] sm:$0xff]  ;;  %v2804_v47 = vld [vmem:[%s6550_s29 + $0xd0] sm:$0xff] }
  0x5c   : > { %v1012_v56 = vmul.f32 0.03125, %v1001_v51  ;;  %v5844_v46 = vpack.c.bf16 %v2803_v43, %v2802_v42  ;;  %v5847_v51 = vpack.c.bf16 %v2805_v48, %v2804_v47  ;;  %v1295_v38 = vrot.slane %v6694_v7, %v1290_v37 }
  0x5d   : > { %v1013_v57 = vmul.f32 0.03125, %v1010_v52  ;;  %5824 = vmatpush1.bf16.msra.mxu1 %v5823_v58  ;;  %v2806_v52 = vld [vmem:[%s6550_s29 + $0xe0] sm:$0xff]  ;;  %v1351_v43 = vsub.s32 6, %v6690_v5 }
  0x5e   : > { %v6750_v61 = vsub.f32 %v985_v12, %v1012_v56  ;;  %v6752_v62 = vsub.f32 %v987_v13, %v1012_v56  ;;  %5825 = vmatprep.subr.bf16.mxu1 %v9417_v33  ;;  %v6762_v6 = vsub.f32 %v6715_v17, %v1012_v56  ;;  %v6779_v17 = vsub.f32 %v6722_v21, %v1012_v56  ;;  %v2797_v21 = vld [vmem:[%s6550_s29 + $0x98] sm:$0xff] }
  0x5f   : > { %v6754_v63 = vsub.f32 %v986_v14, %v1013_v57  ;;  %v6756_v0 = vsub.f32 %v988_v15, %v1013_v57  ;;  %v6769_v11 = vsub.f32 %v6718_v19, %v1013_v57  ;;  %v5829_v14 = vpack.c.bf16 %v2793_v4, %v2792_v2  ;;  %v2794_v15 = vld [vmem:[%s6550_s29 + $0x80] sm:$0xff] }
  0x60   : > { %v1022_v9 = vmul.f32 %v6750_v61, %v6750_v61  ;;  %v1024_v10 = vmul.f32 %v6752_v62, %v6752_v62  ;;  %v1026_v18 = vmul.f32 %v6762_v6, %v6762_v6  ;;  %v6784_v20 = vsub.f32 %v6726_v23, %v1013_v57 }
  0x61   : > { %v1023_v12 = vmul.f32 %v6754_v63, %v6754_v63  ;;  %v1025_v13 = vmul.f32 %v6756_v0, %v6756_v0  ;;  %5827 = vmatpush1.bf16.msra.mxu1 %v5826_v1  ;;  %v1027_v22 = vmul.f32 %v6769_v11, %v6769_v11  ;;  %v5832_v25 = vpack.c.bf16 %v2795_v16, %v2794_v15 }
  0x62   : > { %5828 = vmatprep.subr.bf16.mxu1 %v9417_v33  ;;  %v1030_v19 = vadd.f32 %v1024_v10, %v1022_v9  ;;  %v1028_v27 = vmul.f32 %v6779_v17, %v6779_v17  ;;  %v1029_v23 = vmul.f32 %v6784_v20, %v6784_v20  ;;  %v5835_v30 = vpack.c.bf16 %v2797_v21, %v2796_v26  ;;  %v2808_v10 = vld [vmem:[%s6550_s29 + $0xf0] sm:$0xff] }
  0x63   : > { %v1039_v24 = vadd.f32 %v1025_v13, %v1023_v12  ;;  %v5850_v56 = vpack.c.bf16 %v2807_v53, %v2806_v52  ;;  %v2809_v12 = vld [vmem:[%s6550_s29 + $0xf8] sm:$0xff]  ;;  %v1181_v53 = vsub.s32 0, %v6690_v5 }
  0x64   : > { %v1031_v28 = vadd.f32 %v1030_v19, %v1026_v18  ;;  %v5853_v13 = vpack.c.bf16 %v2809_v12, %v2808_v10 }
  0x65   : > { %5830 = vmatpush1.bf16.msra.mxu1 %v5829_v14  ;;  %v1040_v29 = vadd.f32 %v1039_v24, %v1027_v22 }
  0x66   : > { %5831 = vmatprep.subr.bf16.mxu1 %v9417_v33  ;;  %v1032_v34 = vadd.f32 %v1031_v28, %v1028_v27 }
  0x67   : > { %v1041_v35 = vadd.f32 %v1040_v29, %v1029_v23 }
  0x68   : > { %v1033_v39 = vrot.slane %v1032_v34, 4 }
  0x69   : > { %5833 = vmatpush1.bf16.msra.mxu1 %v5832_v25  ;;  %v1042_v40 = vrot.slane %v1041_v35, 4 }
  0x6a   : > { %5834 = vmatprep.subr.bf16.mxu1 %v9417_v33  ;;  %v1034_v44 = vadd.f32 %v1033_v39, %v1032_v34  ;;  %v1259_v34 = vsub.s32 3, %v6690_v5  ;;  %v1291_v39 = vrot.slane %v6697_v8, %v1290_v37 }
  0x6b   : > { %v1043_v45 = vadd.f32 %v1042_v40, %v1041_v35  ;;  %v1320_v40 = vsub.s32 5, %v6690_v5 }
  0x6c   : > { %v1035_v49 = vrot.slane %v1034_v44, 2  ;;  %v1264_v35 = vrot.slane %v6694_v7, %v1259_v34 }
  0x6d   : > { %5836 = vmatpush1.bf16.msra.mxu1 %v5835_v30  ;;  %v1044_v50 = vrot.slane %v1043_v45, 2  ;;  %v1321_v42 = vrot.slane %v6697_v8, %v1320_v40 }
  0x6e   : > { %5837 = vmatprep.subr.bf16.mxu1 %v9417_v33  ;;  %v1036_v54 = vadd.f32 %v1035_v49, %v1034_v44  ;;  %v1356_v44 = vrot.slane %v6694_v7, %v1351_v43  ;;  %v5617_v49 = vld [vmem:[%s6535_s17 + $0x18] ss:$0 sm:$0xff] }
  0x6f   : > { %v1045_v55 = vadd.f32 %v1044_v50, %v1043_v45  ;;  %v1352_v45 = vrot.slane %v6697_v8, %v1351_v43  ;;  %v5616_v50 = vld [vmem:[%s6535_s17 + $0x10] ss:$0 sm:$0xff] }
  0x70   : > { %v1037_v57 = vrot.slane %v1036_v54, 1 }
  0x71   : > { %5839 = vmatpush1.bf16.msra.mxu1 %v5838_v36  ;;  %v1046_v58 = vrot.slane %v1045_v55, 1  ;;  %v1260_v36 = vrot.slane %v6697_v8, %v1259_v34 }
  0x72   : > { %5840 = vmatprep.subr.bf16.mxu1 %v9417_v33  ;;  %v1038_v59 = vadd.f32 %v1037_v57, %v1036_v54  ;;  %v6859_v54 = vrot.slane %v6694_v7, %v1181_v53 }
  0x73   : > { %v1047_v60 = vadd.f32 %v1046_v58, %v1045_v55  ;;  %v6862_v55 = vrot.slane %v6697_v8, %v1181_v53 }
  0x74   : > { %v1048_v1 = vmul.f32 0.03125, %v1038_v59 }
  0x75   : > { %5842 = vmatpush1.bf16.msra.mxu1 %v5841_v41  ;;  %v1049_v2 = vmul.f32 0.03125, %v1047_v60  ;;  %v1325_v41 = vrot.slane %v6694_v7, %v1320_v40 }
  0x76   : > { %5843 = vmatprep.subr.bf16.mxu1 %v9417_v33  ;;  %v1050_v4 = vadd.f32 1e-05, %v1048_v1 }
  0x77   : > { %v1051_v9 = vadd.f32 1e-05, %v1049_v2 }
  0x78   : > { %6265 = vrsqrt.f32 %v1050_v4 }
  0x79   : > { %5845 = vmatpush1.bf16.msra.mxu1 %v5844_v46  ;;  %6267 = vrsqrt.f32 %v1051_v9  ;;  %v1382_v46 = vsub.s32 7, %v6690_v5 }
  0x7a   : > { %5846 = vmatprep.subr.bf16.mxu1 %v9417_v33 }
  0x7b   : > { %v1387_v47 = vrot.slane %v6694_v7, %v1382_v46  ;;  %v1383_v48 = vrot.slane %v6697_v8, %v1382_v46 }
  0x7d   : > { %5848 = vmatpush1.bf16.msra.mxu1 %v5847_v51 }
  0x7e   : > { %5849 = vmatprep.subr.bf16.mxu1 %v9417_v33 }
  0x81   : > { %5851 = vmatpush1.bf16.msra.mxu1 %v5850_v56 }
  0x82   : > { %5852 = vmatprep.subr.bf16.mxu1 %v9417_v33  ;;  %v6814_v14 = vpop.eup %6265 }
  0x83   : > { %v6816_v15 = vpop.eup %6267  ;;  %v1058_v16 = vmul.f32 %v6814_v14, %v6762_v6  ;;  %v1060_v24 = vmul.f32 %v6814_v14, %v6779_v17  ;;  %v1228_v6 = vsub.s32 2, %v6690_v5 }
  0x84   : > { %v1059_v18 = vmul.f32 %v6816_v15, %v6769_v11  ;;  %v1061_v25 = vmul.f32 %v6816_v15, %v6784_v20 }
  0x85   : > { %5854 = vmatpush1.bf16.msra.mxu1 %v5853_v13  ;;  %v1233_v20 = vrot.slane %v6694_v7, %v1228_v6  ;;  %v1229_v32 = vrot.slane %v6697_v8, %v1228_v6 }
  0x86   : > { %5889 = vmatprep.subr.bf16.mxu1 %v9417_v33 }
  0xc5   : > { %v1084_v19 = vpop.permute.xlu1 %1083  ;;  %v1079_v22 = vpop.permute.xlu0 %1078 }
  0xc6   : > { %v1090_v26 = vmul.f32 %v1079_v22, %v1058_v16  ;;  %v1091_v21 = vmul.f32 %v1079_v22, %v1059_v18  ;;  %v1092_v28 = vmul.f32 %v1084_v19, %v1060_v24  ;;  %v1093_v23 = vmul.f32 %v1084_v19, %v1061_v25 }
  0xc9   : > { %v1111_v27 = vpop.permute.xlu0 %1110  ;;  %v1116_v31 = vpop.permute.xlu1 %1115 }
  0xca   : > { %v1122_v29 = vadd.f32 %v1111_v27, %v1090_v26  ;;  %v1123_v30 = vadd.f32 %v1111_v27, %v1091_v21  ;;  %v1124_v11 = vadd.f32 %v1116_v31, %v1092_v28  ;;  %v1125_v17 = vadd.f32 %v1116_v31, %v1093_v23 }
  0xcc   : > { %1148 = vrot.lane.b32.xlu1 %v1123_v30, %s6487_s1  ;;  %1146 = vrot.lane.b32.xlu0 %v1122_v29, %s6487_s1 }
  0xcd   : > { %v6853_v51 = vpop.permute.xlu1 %1207  ;;  %v6855_v52 = vpop.permute.xlu0 %1205 }
  0xce   : > { %v6875_v5 = vsel %vm1209_vm1, %v6855_v52, %v6853_v51  ;;  %vm3128_vm1 = vcmask 523264  }
  0xd0   : > { %1152 = vrot.lane.b32.xlu1 %v1125_v17, %s6487_s1  ;;  %1150 = vrot.lane.b32.xlu0 %v1124_v11, %s6487_s1 }
  0xd4   : > { %1238 = vrot.lane.b32.xlu1 %v1233_v20, %s6488_s2  ;;  %1236 = vrot.lane.b32.xlu0 %v1229_v32, %s6488_s2  ;;  %s9516_s2 = smov 112  }
  0xd8   : > { %1269 = vrot.lane.b32.xlu1 %v1264_v35, %s6489_s7  ;;  %1267 = vrot.lane.b32.xlu0 %v1260_v36, %s6489_s7  ;;  %s9513_s7 = smov 111  }
  0xdc   : > { %1300 = vrot.lane.b32.xlu1 %v1295_v38, %s6487_s1  ;;  %1298 = vrot.lane.b32.xlu0 %v1291_v39, %s6487_s1 }
  0xe0   : > { %1330 = vrot.lane.b32.xlu1 %v1325_v41, %s6490_s10  ;;  %1328 = vrot.lane.b32.xlu0 %v1321_v42, %s6490_s10  ;;  %s9511_s10 = smov 110  }
  0xe4   : > { %1361 = vrot.lane.b32.xlu1 %v1356_v44, %s6491_s11  ;;  %1359 = vrot.lane.b32.xlu0 %v1352_v45, %s6491_s11  ;;  %s9509_s11 = smov 96  }
  0xe8   : > { %1392 = vrot.lane.b32.xlu1 %v1387_v47, %s6492_s15  ;;  %1390 = vrot.lane.b32.xlu0 %v1383_v48, %s6492_s15  ;;  %s9507_s15 = smov 95  }
  0xec   : > { %1423 = vrot.lane.b32.xlu1 %v5617_v49, %s6493_s16  ;;  %1421 = vrot.lane.b32.xlu0 %v5616_v50, %s6493_s16  ;;  %s9505_s16 = smov 94  }
 0x13e   : > { %v1149_v56 = vpop.permute.xlu1 %1148  ;;  %v1147_v57 = vpop.permute.xlu0 %1146 }
 0x13f   : > { %v6865_v58 = vsel %vm1154_vm0, %v1149_v56, 0.0  ;;  %v6868_v59 = vsel %vm1154_vm0, %v1147_v57, %v1149_v56  ;;  %v6871_v60 = vsel %vm1154_vm0, 0.0, %v1147_v57 }
 0x140   : > { %v6879_v7 = vmul.f32 %v6859_v54, %v6868_v59  ;;  %v6883_v8 = vmul.f32 %v6862_v55, %v6871_v60  ;;  %v6887_v1 = vmul.f32 %v6875_v5, %v6868_v59  ;;  %v6891_v2 = vmul.f32 %v6853_v51, %v6865_v58 }
 0x141   : > { %v6925_v25 = vmul.f32 %v6855_v52, %v6871_v60 }
 0x142   : > { %9551 = vst [vmem:[#allocation17_spill] sm:$0xff] %v6879_v7  ;;  %9552 = vst [vmem:[#allocation18_spill] sm:$0xff] %v6883_v8  ;;  %v1153_v4 = vpop.permute.xlu1 %1152  ;;  %2874 = vmatprep.mubr.f32.mxu1 %v6879_v7  ;;  %v1151_v9 = vpop.permute.xlu0 %1150  ;;  %v5996_v10 = vpack.i.bf16 %v6891_v2, %v6887_v1 }
 0x143   : > { %v6897_v12 = vsel %vm1154_vm0, %v1153_v4, 0.0  ;;  %v6900_v13 = vsel %vm1154_vm0, %v1151_v9, %v1153_v4  ;;  %v6903_v16 = vsel %vm1154_vm0, 0.0, %v1151_v9  ;;  %2875 = vmatmul.mubr.f32.vlgmr.msra.gmra.mrb[0].mxu1 %v6883_v8 }
 0x144   : > { %5997 = vrot.lane.b32.xlu0 %v5996_v10, %s6494_s18  ;;  %v6909_v18 = vmul.f32 %v6859_v54, %v6900_v13  ;;  %v6913_v19 = vmul.f32 %v6862_v55, %v6903_v16  ;;  %v6917_v22 = vmul.f32 %v6855_v52, %v6903_v16  ;;  %v6921_v24 = vmul.f32 %v6853_v51, %v6897_v12 }
 0x145   : > { %v6929_v26 = vmul.f32 %v6875_v5, %v6900_v13 }
 0x146   : > { %9553 = vst [vmem:[#allocation19_spill] sm:$0xff] %v6909_v18  ;;  %9554 = vst [vmem:[#allocation20_spill] sm:$0xff] %v6913_v19  ;;  %v6931_v21 = vpop.permute.xlu1 %1238  ;;  %2879 = vmatprep.mubr.f32.mxu1 %v6909_v18  ;;  %v6934_v27 = vpop.permute.xlu0 %1236  ;;  %v6006_v28 = vpack.i.bf16 %v6917_v22, %v6921_v24 }
 0x147   : > { %9555 = vst [vmem:[#allocation21_spill] sm:$0xff] %v6917_v22  ;;  %2880 = vmatmul.mubr.f32.gmra.mrb[2].mxu1 %v6913_v19  ;;  %v6001_v23 = vpack.i.bf16 %v6929_v26, %v6925_v25  ;;  %v6943_v29 = vsel %vm1240_vm2, %v6934_v27, %v6931_v21  ;;  %v6947_v30 = vmul.f32 %v6934_v27, %v6871_v60  ;;  %vm3375_vm2 = vcmask 326656  }
 0x148   : > { %v6951_v31 = vmul.f32 %v6931_v21, %v6865_v58  ;;  %6007 = vrot.lane.b32.xlu0 %v6006_v28, %s6494_s18  ;;  %v6956_v6 = vmul.f32 %v6943_v29, %v6900_v13  ;;  %v6960_v11 = vmul.f32 %v6943_v29, %v6868_v59  ;;  %v6973_v35 = vmul.f32 %v6934_v27, %v6903_v16 }
 0x149   : > { %9556 = vst [vmem:[#allocation22_spill] sm:$0xff] %v6947_v30  ;;  %6002 = vrot.lane.b32.xlu1 %v6001_v23, %s6494_s18  ;;  %v6977_v36 = vmul.f32 %v6931_v21, %v6897_v12 }
 0x14a   : > { %9557 = vst [vmem:[#allocation23_spill] sm:$0xff] %v6956_v6  ;;  %v6963_v17 = vpop.permute.xlu1 %1269  ;;  %v6965_v20 = vpop.permute.xlu0 %1267  ;;  %v6016_v32 = vpack.i.bf16 %v6956_v6, %v6947_v30  ;;  %v6011_v34 = vpack.i.bf16 %v6951_v31, %v6960_v11  ;;  %9558 = vst [vmem:[#allocation24_spill] sm:$0xff] %v6973_v35 }
 0x14b   : > { %9559 = vst [vmem:[#allocation25_spill] sm:$0xff] %v6977_v36  ;;  %v6982_v37 = vsel %vm1271_vm3, %v6965_v20, %v6963_v17  ;;  %v6986_v38 = vmul.f32 %v6963_v17, %v6865_v58  ;;  %v7002_v43 = vmul.f32 %v6965_v20, %v6903_v16  ;;  %v7006_v44 = vmul.f32 %v6963_v17, %v6897_v12 }
 0x14c   : > { %6017 = vrot.lane.b32.xlu0 %v6016_v32, %s6495_s0  ;;  %v6991_v39 = vmul.f32 %v6982_v37, %v6868_v59  ;;  %v6021_v45 = vpack.i.bf16 %v6973_v35, %v6977_v36  ;;  %v7012_v46 = vmul.f32 %v6965_v20, %v6871_v60  ;;  %v7016_v47 = vmul.f32 %v6982_v37, %v6900_v13 }
 0x14d   : > { %9560 = vst [vmem:[#allocation26_spill] sm:$0xff] %v6986_v38  ;;  %6012 = vrot.lane.b32.xlu1 %v6011_v34, %s6495_s0  ;;  %9562 = vst [vmem:[#allocation28_spill] sm:$0xff] %v7002_v43  ;;  %v6036_v53 = vpack.i.bf16 %v7002_v43, %v7006_v44 }
 0x14e   : > { %9561 = vst [vmem:[#allocation27_spill] sm:$0xff] %v6991_v39  ;;  %v6994_v40 = vpop.permute.xlu1 %1300  ;;  %v6996_v41 = vpop.permute.xlu0 %1298  ;;  %v6026_v42 = vpack.i.bf16 %v6986_v38, %v6991_v39  ;;  %9563 = vst [vmem:[#allocation29_spill] sm:$0xff] %v7006_v44  ;;  %v6031_v4 = vpack.i.bf16 %v7016_v47, %v7012_v46 }
 0x14f   : > { %9564 = vst [vmem:[#allocation30_spill] sm:$0xff] %v7012_v46  ;;  %9565 = vst [vmem:[#allocation31_spill] sm:$0xff] %v7016_v47  ;;  %v7021_v48 = vsel %vm1154_vm0, %v6996_v41, %v6994_v40  ;;  %v7033_v56 = vmul.f32 %v6996_v41, %v6871_v60  ;;  %v7047_v10 = vmul.f32 %v6994_v40, %v6865_v58 }
 0x150   : > { %6027 = vrot.lane.b32.xlu0 %v6026_v42, %s9516_s2  ;;  %v7037_v57 = vmul.f32 %v7021_v48, %v6900_v13  ;;  %v7043_v9 = vmul.f32 %v7021_v48, %v6868_v59  ;;  %v7077_v33 = vmul.f32 %v6994_v40, %v6897_v12 }
 0x151   : > { %6022 = vrot.lane.b32.xlu1 %v6021_v45, %s6495_s0  ;;  %9566 = vst [vmem:[#allocation32_spill] sm:$0xff] %v7033_v56  ;;  %9569 = vst [vmem:[#allocation35_spill] sm:$0xff] %v7047_v10 }
 0x152   : > { %v7025_v49 = vpop.permute.xlu1 %1330  ;;  %v7027_v50 = vpop.permute.xlu0 %1328  ;;  %9567 = vst [vmem:[#allocation33_spill] sm:$0xff] %v7037_v57  ;;  %9568 = vst [vmem:[#allocation34_spill] sm:$0xff] %v7043_v9  ;;  %v6046_v34 = vpack.i.bf16 %v7037_v57, %v7033_v56 }
 0x153   : > { %v7051_v28 = vsel %vm1332_vm4, %v7027_v50, %v7025_v49  ;;  %v7067_v45 = vmul.f32 %v7025_v49, %v6865_v58  ;;  %9573 = vst [vmem:[#allocation39_spill] sm:$0xff] %v7077_v33  ;;  %v7085_v18 = vmul.f32 %v7027_v50, %v6903_v16  ;;  %v7089_v8 = vmul.f32 %v7025_v49, %v6897_v12 }
 0x154   : > { %6037 = vrot.lane.b32.xlu0 %v6036_v53, %s9516_s2  ;;  %v7063_v42 = vmul.f32 %v7051_v28, %v6868_v59  ;;  %v6041_v53 = vpack.i.bf16 %v7047_v10, %v7043_v9  ;;  %vm3525_vm4 = vcmask 64512  }
 0x155   : > { %6032 = vrot.lane.b32.xlu1 %v6031_v4, %s9516_s2  ;;  %9571 = vst [vmem:[#allocation37_spill] sm:$0xff] %v7067_v45  ;;  %v7073_v4 = vmul.f32 %v6996_v41, %v6903_v16  ;;  %9574 = vst [vmem:[#allocation40_spill] sm:$0xff] %v7085_v18 }
 0x156   : > { %v7055_v23 = vpop.permute.xlu1 %1361  ;;  %v7057_v32 = vpop.permute.xlu0 %1359  ;;  %9570 = vst [vmem:[#allocation36_spill] sm:$0xff] %v7063_v42  ;;  %v6056_v3 = vpack.i.bf16 %v7067_v45, %v7063_v42  ;;  %9575 = vst [vmem:[#allocation41_spill] sm:$0xff] %v7089_v8 }
 0x157   : > { %9572 = vst [vmem:[#allocation38_spill] sm:$0xff] %v7073_v4  ;;  %v6051_v19 = vpack.i.bf16 %v7073_v4, %v7077_v33  ;;  %v7104_v7 = vsel %vm1363_vm5, %v7057_v32, %v7055_v23  ;;  %v6066_v4 = vpack.i.bf16 %v7085_v18, %v7089_v8  ;;  %v7116_v33 = vmul.f32 %v7057_v32, %v6871_v60 }
 0x158   : > { %6047 = vrot.lane.b32.xlu0 %v6046_v34, %s9513_s7  ;;  %v7095_v34 = vmul.f32 %v7027_v50, %v6871_v60  ;;  %v7120_v57 = vmul.f32 %v7104_v7, %v6900_v13  ;;  %v7152_v10 = vmul.f32 %v7057_v32, %v6903_v16 }
 0x159   : > { %6042 = vrot.lane.b32.xlu1 %v6041_v53, %s9513_s7  ;;  %v7099_v53 = vmul.f32 %v7051_v28, %v6900_v13  ;;  %9578 = vst [vmem:[#allocation44_spill] sm:$0xff] %v7116_v33 }
 0x15a   : > { %9576 = vst [vmem:[#allocation42_spill] sm:$0xff] %v7095_v34  ;;  %v7106_v45 = vpop.permute.xlu1 %1392  ;;  %v7108_v42 = vpop.permute.xlu0 %1390  ;;  %9579 = vst [vmem:[#allocation45_spill] sm:$0xff] %v7120_v57  ;;  %v6076_v8 = vpack.i.bf16 %v7120_v57, %v7116_v33 }
 0x15b   : > { %9577 = vst [vmem:[#allocation43_spill] sm:$0xff] %v7099_v53  ;;  %v6061_v56 = vpack.i.bf16 %v7099_v53, %v7095_v34  ;;  %v7134_v18 = vsel %vm1394_vm6, %v7108_v42, %v7106_v45  ;;  %v7146_v34 = vmul.f32 %v7106_v45, %v6865_v58  ;;  %9584 = vst [vmem:[#allocation50_spill] sm:$0xff] %v7152_v10 }
 0x15c   : > { %6057 = vrot.lane.b32.xlu0 %v6056_v3, %s9511_s10  ;;  %v7126_v3 = vmul.f32 %v7104_v7, %v6868_v59  ;;  %v7142_v53 = vmul.f32 %v7134_v18, %v6868_v59 }
 0x15d   : > { %6052 = vrot.lane.b32.xlu1 %v6051_v19, %s9513_s7  ;;  %v7130_v19 = vmul.f32 %v7055_v23, %v6865_v58  ;;  %9583 = vst [vmem:[#allocation49_spill] sm:$0xff] %v7146_v34 }
 0x15e   : > { %9580 = vst [vmem:[#allocation46_spill] sm:$0xff] %v7126_v3  ;;  %9582 = vst [vmem:[#allocation48_spill] sm:$0xff] %v7142_v53  ;;  %v7160_v57 = vpop.permute.xlu0 %1421  ;;  %v6086_v33 = vpack.i.bf16 %v7146_v34, %v7142_v53 }
 0x15f   : > { %9581 = vst [vmem:[#allocation47_spill] sm:$0xff] %v7130_v19  ;;  %v6071_v43 = vpack.i.bf16 %v7130_v19, %v7126_v3  ;;  %v7168_v19 = vmul.f32 %v7108_v42, %v6903_v16  ;;  %v7172_v3 = vmul.f32 %v7106_v45, %v6897_v12  ;;  %v7194_v53 = vmul.f32 %v7160_v57, %v6871_v60 }
 0x160   : > { %6067 = vrot.lane.b32.xlu0 %v6066_v4, %s9511_s10  ;;  %v7158_v4 = vpop.permute.xlu1 %1423 }
 0x161   : > { %6062 = vrot.lane.b32.xlu1 %v6061_v56, %s9511_s10  ;;  %v7156_v56 = vmul.f32 %v7055_v23, %v6897_v12  ;;  %9586 = vst [vmem:[#allocation52_spill] sm:$0xff] %v7168_v19  ;;  %9587 = vst [vmem:[#allocation53_spill] sm:$0xff] %v7172_v3  ;;  %v7186_v34 = vsel %vm1425_vm7, %v7160_v57, %v7158_v4 }
 0x162   : > { %9590 = vst [vmem:[#allocation56_spill] sm:$0xff] %v7194_v53 }
 0x163   : > { %9585 = vst [vmem:[#allocation51_spill] sm:$0xff] %v7156_v56  ;;  %v6081_v9 = vpack.i.bf16 %v7152_v10, %v7156_v56  ;;  %v6096_v10 = vpack.i.bf16 %v7168_v19, %v7172_v3  ;;  %v7198_v56 = vmul.f32 %v7186_v34, %v6900_v13  ;;  %v7222_v19 = vmul.f32 %v7158_v4, %v6897_v12 }
 0x164   : > { %6077 = vrot.lane.b32.xlu0 %v6076_v8, %s9509_s11  ;;  %v7178_v8 = vmul.f32 %v7108_v42, %v6871_v60 }
 0x165   : > { %6072 = vrot.lane.b32.xlu1 %v6071_v43, %s9509_s11  ;;  %v7182_v43 = vmul.f32 %v7134_v18, %v6900_v13  ;;  %9591 = vst [vmem:[#allocation57_spill] sm:$0xff] %v7198_v56  ;;  %v6106_v60 = vpack.i.bf16 %v7198_v56, %v7194_v53  ;;  %9595 = vst [vmem:[#allocation61_spill] sm:$0xff] %v7222_v19  ;;  %v1063_v56 = vld [vmem:[%s6525_s9 + $0x8] sm:$0xff] }
 0x166   : > { %9588 = vst [vmem:[#allocation54_spill] sm:$0xff] %v7178_v8 }
 0x167   : > { %9589 = vst [vmem:[#allocation55_spill] sm:$0xff] %v7182_v43  ;;  %v6091_v44 = vpack.i.bf16 %v7182_v43, %v7178_v8 }
 0x168   : > { %6087 = vrot.lane.b32.xlu0 %v6086_v33, %s9507_s15  ;;  %v7204_v33 = vmul.f32 %v7186_v34, %v6868_v59  ;;  %v7218_v59 = vmul.f32 %v7160_v57, %v6903_v16  ;;  %v1095_v16 = vld [vmem:[%s6530_s13 + $0x8] sm:$0xff] }
 0x169   : > { %6082 = vrot.lane.b32.xlu1 %v6081_v9, %s9509_s11  ;;  %v7208_v9 = vmul.f32 %v7158_v4, %v6865_v58  ;;  %v1062_v58 = vld [vmem:[%s6525_s9] sm:$0xff] }
 0x16a   : > { %9592 = vst [vmem:[#allocation58_spill] sm:$0xff] %v7204_v33  ;;  %9594 = vst [vmem:[#allocation60_spill] sm:$0xff] %v7218_v59 }
 0x16b   : > { %9593 = vst [vmem:[#allocation59_spill] sm:$0xff] %v7208_v9  ;;  %v6101_v13 = vpack.i.bf16 %v7208_v9, %v7204_v33 }
 0x16c   : > { %6097 = vrot.lane.b32.xlu0 %v6096_v10, %s9507_s15  ;;  %v1094_v10 = vld [vmem:[%s6530_s13] sm:$0xff] }
 0x16d   : > { %6092 = vrot.lane.b32.xlu1 %v6091_v44, %s9507_s15  ;;  %v6111_v44 = vpack.i.bf16 %v7218_v59, %v7222_v19 }
 0x170   : > { %6107 = vrot.lane.b32.xlu0 %v6106_v60, %s9505_s16 }
 0x171   : > { %6102 = vrot.lane.b32.xlu1 %v6101_v13, %s9505_s16 }
 0x174   : > { %1068 = vperm.xlu0 %5994, %v1062_v58  }
 0x175   : > { %6112 = vrot.lane.b32.xlu1 %v6111_v44, %s9505_s16 }
 0x178   : > { %1100 = vperm.xlu0 %5994, %v1094_v10  }
 0x179   : > { %1073 = vperm.xlu1 %5995, %v1063_v56  }
 0x17d   : > { %1105 = vperm.xlu1 %5995, %v1095_v16  }
 0x1b6   : > { %v5998_v12 = vpop.permute.xlu0 %5997 }
 0x1b7   : > { %v6000_v53 = vunpack.i.h.bf16 %v5998_v12  ;;  %v5999_v9 = vunpack.i.l.bf16 %v5998_v12 }
 0x1b9   : > { %v2445_v60 = vsel %vm1570_vm8, %v5999_v9, %v6000_v53 }
 0x1ba   : > { %v6008_v13 = vpop.permute.xlu0 %6007  ;;  %2884 = vmatprep.mubr.f32.mxu1 %v2445_v60 }
 0x1bb   : > { %v6003_v33 = vpop.permute.xlu1 %6002  ;;  %v6009_v3 = vunpack.i.l.bf16 %v6008_v13  ;;  %v6010_v19 = vunpack.i.h.bf16 %v6008_v13 }
 0x1bc   : > { %v6005_v59 = vunpack.i.h.bf16 %v6003_v33  ;;  %v6004_v58 = vunpack.i.l.bf16 %v6003_v33 }
 0x1be   : > { %v6018_v44 = vpop.permute.xlu0 %6017  ;;  %v2444_v43 = vsel %vm1570_vm8, %v6004_v58, %v5999_v9  ;;  %v2447_v56 = vsel %vm1570_vm8, %v6005_v59, %v6009_v3  ;;  %v2446_v60 = vsel %vm1570_vm8, %v6010_v19, %v6005_v59 }
 0x1bf   : > { %v6013_v10 = vpop.permute.xlu1 %6012  ;;  %2885 = vmatmul.mubr.f32.gmra.mrb[4].mxu1 %v2444_v43  ;;  %v6019_v12 = vunpack.i.l.bf16 %v6018_v44  ;;  %v6020_v33 = vunpack.i.h.bf16 %v6018_v44 }
 0x1c0   : > { %v6015_v16 = vunpack.i.h.bf16 %v6013_v10  ;;  %v6014_v8 = vunpack.i.l.bf16 %v6013_v10  ;;  %2889 = vmatprep.mubr.f32.mxu1 %v2447_v56 }
 0x1c2   : > { %v6028_v53 = vpop.permute.xlu0 %6027  ;;  %v2471_v47 = vsel %vm1659_vm9, %v6014_v8, %v6015_v16  ;;  %v2470_v3 = vsel %vm1659_vm9, %v6019_v12, %v6014_v8 }
 0x1c3   : > { %v6023_v46 = vpop.permute.xlu1 %6022  ;;  %2890 = vmatmul.mubr.f32.gmra.mrb[6].mxu1 %v2446_v60  ;;  %v6030_v35 = vunpack.i.h.bf16 %v6028_v53  ;;  %v6029_v10 = vunpack.i.l.bf16 %v6028_v53 }
 0x1c4   : > { %v6024_v13 = vunpack.i.l.bf16 %v6023_v46  ;;  %2894 = vmatprep.mubr.f32.mxu1 %v2471_v47  ;;  %v6025_v9 = vunpack.i.h.bf16 %v6023_v46 }
 0x1c5   : > { %v2497_v46 = vsel %vm1748_vm10, %v6029_v10, %v6030_v35 }
 0x1c6   : > { %v6038_v58 = vpop.permute.xlu0 %6037  ;;  %v2473_v43 = vsel %vm1659_vm9, %v6020_v33, %v6024_v13  ;;  %v2472_v16 = vsel %vm1659_vm9, %v6025_v9, %v6020_v33 }
 0x1c7   : > { %v6033_v56 = vpop.permute.xlu1 %6032  ;;  %2895 = vmatmul.mubr.f32.gmra.mrb[8].mxu1 %v2470_v3  ;;  %v6039_v44 = vunpack.i.l.bf16 %v6038_v58  ;;  %v6040_v47 = vunpack.i.h.bf16 %v6038_v58 }
 0x1c8   : > { %2899 = vmatprep.mubr.f32.mxu1 %v2473_v43  ;;  %v6034_v19 = vunpack.i.l.bf16 %v6033_v56  ;;  %v6035_v60 = vunpack.i.h.bf16 %v6033_v56 }
 0x1ca   : > { %v6048_v59 = vpop.permute.xlu0 %6047  ;;  %v2496_v8 = vsel %vm1748_vm10, %v6034_v19, %v6029_v10  ;;  %v2499_v3 = vsel %vm1748_vm10, %v6035_v60, %v6039_v44  ;;  %v2498_v9 = vsel %vm1748_vm10, %v6040_v47, %v6035_v60 }
 0x1cb   : > { %v6043_v38 = vpop.permute.xlu1 %6042  ;;  %2900 = vmatmul.mubr.f32.gmra.mrb[10].mxu1 %v2472_v16  ;;  %v6049_v33 = vunpack.i.l.bf16 %v6048_v59  ;;  %v6050_v58 = vunpack.i.h.bf16 %v6048_v59 }
 0x1cc   : > { %2904 = vmatprep.mubr.f32.mxu1 %v2497_v46  ;;  %v6045_v12 = vunpack.i.h.bf16 %v6043_v38  ;;  %v6044_v53 = vunpack.i.l.bf16 %v6043_v38 }
 0x1ce   : > { %v6058_v43 = vpop.permute.xlu0 %6057  ;;  %v2523_v35 = vsel %vm1837_vm11, %v6044_v53, %v6045_v12  ;;  %v2522_v38 = vsel %vm1837_vm11, %v6049_v33, %v6044_v53 }
 0x1cf   : > { %v6053_v13 = vpop.permute.xlu1 %6052  ;;  %2905 = vmatmul.mubr.f32.gmra.mrb[12].mxu1 %v2496_v8  ;;  %v6060_v46 = vunpack.i.h.bf16 %v6058_v43  ;;  %v6059_v8 = vunpack.i.l.bf16 %v6058_v43 }
 0x1d0   : > { %2909 = vmatprep.mubr.f32.mxu1 %v2499_v3  ;;  %v6054_v56 = vunpack.i.l.bf16 %v6053_v13  ;;  %v6055_v10 = vunpack.i.h.bf16 %v6053_v13 }
 0x1d1   : > { %v2549_v59 = vsel %vm1926_vm12, %v6059_v8, %v6060_v46 }
 0x1d2   : > { %v6068_v19 = vpop.permute.xlu0 %6067  ;;  %v2525_v44 = vsel %vm1837_vm11, %v6050_v58, %v6054_v56  ;;  %v2524_v47 = vsel %vm1837_vm11, %v6055_v10, %v6050_v58 }
 0x1d3   : > { %v6063_v16 = vpop.permute.xlu1 %6062  ;;  %2910 = vmatmul.mubr.f32.gmra.mrb[14].mxu1 %v2498_v9  ;;  %v6069_v39 = vunpack.i.l.bf16 %v6068_v19  ;;  %v6070_v13 = vunpack.i.h.bf16 %v6068_v19 }
 0x1d4   : > { %2914 = vmatprep.mubr.f32.mxu1 %v2523_v35  ;;  %v6064_v60 = vunpack.i.l.bf16 %v6063_v16  ;;  %v6065_v9 = vunpack.i.h.bf16 %v6063_v16 }
 0x1d6   : > { %v6078_v12 = vpop.permute.xlu0 %6077  ;;  %v2548_v43 = vsel %vm1926_vm12, %v6064_v60, %v6059_v8  ;;  %v2551_v56 = vsel %vm1926_vm12, %v6065_v9, %v6069_v39  ;;  %v2550_v16 = vsel %vm1926_vm12, %v6070_v13, %v6065_v9 }
 0x1d7   : > { %2915 = vmatmul.mubr.f32.gmra.mrb[16].mxu1 %v2522_v38  ;;  %v6073_v3 = vpop.permute.xlu1 %6072  ;;  %v6079_v38 = vunpack.i.l.bf16 %v6078_v12  ;;  %v6080_v19 = vunpack.i.h.bf16 %v6078_v12 }
 0x1d8   : > { %2919 = vmatprep.mubr.f32.mxu1 %v2525_v44  ;;  %v6075_v33 = vunpack.i.h.bf16 %v6073_v3  ;;  %v6074_v35 = vunpack.i.l.bf16 %v6073_v3 }
 0x1da   : > { %v6088_v58 = vpop.permute.xlu0 %6087  ;;  %v2575_v46 = vsel %vm2015_vm13, %v6074_v35, %v6075_v33  ;;  %v2574_v8 = vsel %vm2015_vm13, %v6079_v38, %v6074_v35 }
 0x1db   : > { %2920 = vmatmul.mubr.f32.gmra.mrb[18].mxu1 %v2524_v47  ;;  %v6083_v53 = vpop.permute.xlu1 %6082  ;;  %v6090_v3 = vunpack.i.h.bf16 %v6088_v58  ;;  %v6089_v60 = vunpack.i.l.bf16 %v6088_v58 }
 0x1dc   : > { %2924 = vmatprep.mubr.f32.mxu1 %v2549_v59  ;;  %v6084_v10 = vunpack.i.l.bf16 %v6083_v53  ;;  %v6085_v47 = vunpack.i.h.bf16 %v6083_v53 }
 0x1dd   : > { %v2601_v12 = vsel %vm2104_vm14, %v6089_v60, %v6090_v3 }
 0x1de   : > { %v2577_v39 = vsel %vm2015_vm13, %v6080_v19, %v6084_v10  ;;  %v6098_v59 = vpop.permute.xlu0 %6097  ;;  %v2576_v13 = vsel %vm2015_vm13, %v6085_v47, %v6080_v19  ;;  %v1055_v19 = vmul.f32 %v6816_v15, %v6754_v63  ;;  %v1054_v47 = vmul.f32 %v6814_v14, %v6750_v61 }
 0x1df   : > { %2925 = vmatmul.mubr.f32.gmra.mrb[20].mxu1 %v2548_v43  ;;  %v6093_v44 = vpop.permute.xlu1 %6092  ;;  %v6099_v33 = vunpack.i.l.bf16 %v6098_v59  ;;  %v6100_v53 = vunpack.i.h.bf16 %v6098_v59  ;;  %v1056_v63 = vmul.f32 %v6814_v14, %v6752_v62 }
 0x1e0   : > { %2929 = vmatprep.mubr.f32.mxu1 %v2551_v56  ;;  %v6094_v43 = vunpack.i.l.bf16 %v6093_v44  ;;  %v6095_v56 = vunpack.i.h.bf16 %v6093_v44 }
 0x1e2   : > { %v2600_v35 = vsel %vm2104_vm14, %v6094_v43, %v6089_v60  ;;  %v2603_v10 = vsel %vm2104_vm14, %v6095_v56, %v6099_v33  ;;  %v2602_v44 = vsel %vm2104_vm14, %v6100_v53, %v6095_v56  ;;  %v1057_v56 = vmul.f32 %v6816_v15, %v6756_v0 }
 0x1e3   : > { %2930 = vmatmul.mubr.f32.gmra.mrb[22].mxu1 %v2550_v16  ;;  %v6103_v9 = vpop.permute.xlu1 %6102  ;;  %v6108_v16 = vpop.permute.xlu0 %6107 }
 0x1e4   : > { %2934 = vmatprep.mubr.f32.mxu1 %v2575_v46  ;;  %v6105_v38 = vunpack.i.h.bf16 %v6103_v9  ;;  %v6104_v58 = vunpack.i.l.bf16 %v6103_v9  ;;  %v6110_v59 = vunpack.i.h.bf16 %v6108_v16 }
 0x1e7   : > { %2935 = vmatmul.mubr.f32.gmra.mrb[24].mxu1 %v2574_v8  ;;  %v6113_v46 = vpop.permute.xlu1 %6112  ;;  %v6109_v8 = vunpack.i.l.bf16 %v6108_v16 }
 0x1e8   : > { %2939 = vmatprep.mubr.f32.mxu1 %v2577_v39  ;;  %v6114_v3 = vunpack.i.l.bf16 %v6113_v46  ;;  %v2627_v39 = vsel %vm2193_vm15, %v6104_v58, %v6105_v38  ;;  %v6115_v43 = vunpack.i.h.bf16 %v6113_v46 }
 0x1e9   : > { %v2626_v33 = vsel %vm2193_vm15, %v6109_v8, %v6104_v58 }
 0x1ea   : > { %v2628_v16 = vsel %vm2193_vm15, %v6115_v43, %v6110_v59 }
 0x1eb   : > { %2940 = vmatmul.mubr.f32.gmra.mrb[26].mxu1 %v2576_v13 }
 0x1ec   : > { %2944 = vmatprep.mubr.f32.mxu1 %v2601_v12  ;;  %v2629_v12 = vsel %vm2193_vm15, %v6110_v59, %v6114_v3 }
 0x1ef   : > { %2945 = vmatmul.mubr.f32.gmra.mrb[28].mxu1 %v2600_v35 }
 0x1f0   : > { %2949 = vmatprep.mubr.f32.mxu1 %v2603_v10 }
 0x1f3   : > { %2950 = vmatmul.mubr.f32.gmra.mrb[30].mxu1 %v2602_v44  ;;  %v1069_v60 = vpop.permute.xlu0 %1068 }
 0x1f4   : > { %2954 = vmatprep.mubr.f32.mxu1 %v2627_v39  ;;  %v1086_v9 = vmul.f32 %v1069_v60, %v1054_v47  ;;  %v1087_v13 = vmul.f32 %v1069_v60, %v1055_v19 }
 0x1f7   : > { %2955 = vmatmul.mubr.f32.gmra.mrb[32].mxu1 %v2626_v33  ;;  %v1101_v61 = vpop.permute.xlu0 %1100 }
 0x1f8   : > { %v1074_v53 = vpop.permute.xlu1 %1073  ;;  %v1118_v35 = vadd.f32 %v1101_v61, %v1086_v9  ;;  %v1119_v38 = vadd.f32 %v1101_v61, %v1087_v13  ;;  %2959 = vmatprep.mubr.f32.mxu1 %v2629_v12 }
 0x1f9   : > { %v1088_v58 = vmul.f32 %v1074_v53, %v1056_v63  ;;  %v1089_v10 = vmul.f32 %v1074_v53, %v1057_v56 }
 0x1fa   : > { %1140 = vrot.lane.b32.xlu1 %v1119_v38, %s6487_s1  ;;  %1138 = vrot.lane.b32.xlu0 %v1118_v35, %s6487_s1 }
 0x1fb   : > { %2960 = vmatmul.mubr.f32.gmra.mrb[34].mxu1 %v2628_v16 }
 0x1fc   : > { %v1106_v0 = vpop.permute.xlu1 %1105 }
 0x1fd   : > { %v1120_v15 = vadd.f32 %v1106_v0, %v1088_v58  ;;  %v1121_v46 = vadd.f32 %v1106_v0, %v1089_v10 }
 0x1ff   : > { %1144 = vrot.lane.b32.xlu1 %v1121_v46, %s6487_s1  ;;  %1142 = vrot.lane.b32.xlu0 %v1120_v15, %s6487_s1  ;;  %s9645_s1 = sld [smem:[#allocation4_spill]] }
 0x216   : > { %v7277_v62 = vpop.f32.mrb[0].mxu1 }
 0x217   : > { %v2878_v14 = vpop.f32.mrb[1].mxu1 }
 0x21a   : > { %v7279_v8 = vpop.f32.mrb[2].mxu1 }
 0x21b   : > { %v2883_v19 = vpop.f32.mrb[3].mxu1 }
 0x26c   : > { %v1141_v47 = vpop.permute.xlu1 %1140  ;;  %v1139_v3 = vpop.permute.xlu0 %1138 }
 0x26d   : > { %v7284_v60 = vsel %vm1154_vm0, %v1141_v47, 0.0  ;;  %v7287_v39 = vsel %vm1154_vm0, %v1139_v3, %v1141_v47  ;;  %v7290_v59 = vsel %vm1154_vm0, 0.0, %v1139_v3 }
 0x26e   : > { %v7294_v43 = vmul.f32 %v6875_v5, %v7287_v39  ;;  %v7298_v9 = vmul.f32 %v6853_v51, %v7284_v60  ;;  %v7304_v63 = vmul.f32 %v6855_v52, %v7290_v59  ;;  %v7308_v61 = vmul.f32 %v6859_v54, %v7287_v39 }
 0x26f   : > { %v7322_v38 = vmul.f32 %v6862_v55, %v7290_v59  ;;  %v7372_v19 = vmul.f32 %v6982_v37, %v7287_v39  ;;  %v7376_v47 = vmul.f32 %v6963_v17, %v7284_v60 }
 0x270   : > { %v6116_v13 = vpack.i.bf16 %v7298_v9, %v7294_v43  ;;  %9596 = vst [vmem:[#allocation62_spill] sm:$0xff] %v7308_v61 }
 0x271   : > { %v1145_v33 = vpop.permute.xlu1 %1144  ;;  %v1143_v56 = vpop.permute.xlu0 %1142  ;;  %9597 = vst [vmem:[#allocation63_spill] sm:$0xff] %v7322_v38 }
 0x272   : > { %v7311_v12 = vsel %vm1154_vm0, %v1145_v33, 0.0  ;;  %v7314_v53 = vsel %vm1154_vm0, %v1143_v56, %v1145_v33  ;;  %v7317_v35 = vsel %vm1154_vm0, 0.0, %v1143_v56  ;;  %6117 = vrot.lane.b32.xlu0 %v6116_v13, %s6494_s18  ;;  %v7390_v33 = vmul.f32 %v6934_v27, %v7290_v59 }
 0x273   : > { %v7326_v16 = vmul.f32 %v6855_v52, %v7317_v35  ;;  %v7330_v58 = vmul.f32 %v6875_v5, %v7314_v53  ;;  %v7334_v10 = vmul.f32 %v6853_v51, %v7311_v12  ;;  %v7338_v0 = vmul.f32 %v6859_v54, %v7314_v53 }
 0x274   : > { %v7342_v15 = vmul.f32 %v6862_v55, %v7317_v35  ;;  %v7346_v52 = vmul.f32 %v6943_v29, %v7314_v53  ;;  %v7350_v5 = vmul.f32 %v6943_v29, %v7287_v39  ;;  %v7354_v51 = vmul.f32 %v6931_v21, %v7284_v60 }
 0x275   : > { %9598 = vst [vmem:[#allocation64_spill] sm:$0xff] %v7338_v0  ;;  %v6126_v54 = vpack.i.bf16 %v7326_v16, %v7304_v63  ;;  %v6121_v46 = vpack.i.bf16 %v7334_v10, %v7330_v58  ;;  %v2653_v55 = vpack.c.bf16 %v7338_v0, %v7308_v61  ;;  %v7364_v14 = vmul.f32 %v6931_v21, %v7311_v12 }
 0x276   : > { %9599 = vst [vmem:[#allocation65_spill] sm:$0xff] %v7342_v15  ;;  %v2652_v29 = vpack.c.bf16 %v7342_v15, %v7322_v38  ;;  %v6131_v3 = vpack.i.bf16 %v7354_v51, %v7350_v5  ;;  %v7384_v13 = vmul.f32 %v6934_v27, %v7317_v35  ;;  %v6146_v56 = vpack.i.bf16 %v7376_v47, %v7372_v19 }
 0x277   : > { %6127 = vrot.lane.b32.xlu0 %v6126_v54, %s6494_s18  ;;  %6122 = vrot.lane.b32.xlu1 %v6121_v46, %s6494_s18  ;;  %v6136_v21 = vpack.i.bf16 %v7364_v14, %v7346_v52  ;;  %v7398_v46 = vmul.f32 %v6965_v20, %v7317_v35  ;;  %v7412_v27 = vmul.f32 %v6965_v20, %v7290_v59  ;;  %vm6502_vm0 = vmmov 0  }
 0x278   : > { %2715 = vmatprep.subr.bf16.mxu0 %v2653_v55  ;;  %v6141_v54 = vpack.i.bf16 %v7384_v13, %v7390_v33  ;;  %v7402_v55 = vmul.f32 %v6982_v37, %v7314_v53  ;;  %v7420_v37 = vmul.f32 %v6994_v40, %v7284_v60  ;;  %v7432_v20 = vmul.f32 %v6994_v40, %v7311_v12 }
 0x279   : > { %2716 = vmatpush1.bf16.msra.mxu0 %v2652_v29  ;;  %9600 = vst [vmem:[#allocation66_spill] sm:$0xff] %v7398_v46  ;;  %v7406_v29 = vmul.f32 %v6963_v17, %v7311_v12  ;;  %9601 = vst [vmem:[#allocation67_spill] sm:$0xff] %v7412_v27  ;;  %v6156_v17 = vpack.i.bf16 %v7398_v46, %v7412_v27  ;;  %v7450_v40 = vmul.f32 %v6996_v41, %v7317_v35 }
 0x27a   : > { %9603 = vst [vmem:[#allocation69_spill] sm:$0xff] %v7420_v37  ;;  %9605 = vst [vmem:[#allocation71_spill] sm:$0xff] %v7432_v20  ;;  %v7468_v61 = vmul.f32 %v7051_v28, %v7314_v53 }
 0x27b   : > { %6137 = vrot.lane.b32.xlu0 %v6136_v21, %s6495_s0  ;;  %6132 = vrot.lane.b32.xlu1 %v6131_v3, %s6495_s0  ;;  %v7416_v21 = vmul.f32 %v7021_v48, %v7287_v39  ;;  %v6151_v3 = vpack.i.bf16 %v7406_v29, %v7402_v55  ;;  %9608 = vst [vmem:[#allocation74_spill] sm:$0xff] %v7450_v40 }
 0x27c   : > { %9611 = vst [vmem:[#allocation77_spill] sm:$0xff] %v7468_v61 }
 0x27d   : > { %9602 = vst [vmem:[#allocation68_spill] sm:$0xff] %v7416_v21  ;;  %v6161_v15 = vpack.i.bf16 %v7420_v37, %v7416_v21 }
 0x27f   : > { %6147 = vrot.lane.b32.xlu0 %v6146_v56, %s9516_s2  ;;  %6142 = vrot.lane.b32.xlu1 %v6141_v54, %s6495_s0  ;;  %v7428_v56 = vmul.f32 %v7021_v48, %v7314_v53  ;;  %v7438_v54 = vmul.f32 %v7051_v28, %v7287_v39  ;;  %v7446_v48 = vmul.f32 %v7025_v49, %v7284_v60 }
 0x281   : > { %9604 = vst [vmem:[#allocation70_spill] sm:$0xff] %v7428_v56  ;;  %9606 = vst [vmem:[#allocation72_spill] sm:$0xff] %v7438_v54  ;;  %v6166_v44 = vpack.i.bf16 %v7432_v20, %v7428_v56  ;;  %v6176_v38 = vpack.i.bf16 %v7446_v48, %v7438_v54 }
 0x282   : > { %9607 = vst [vmem:[#allocation73_spill] sm:$0xff] %v7446_v48  ;;  %v7484_v48 = vmul.f32 %v7104_v7, %v7314_v53 }
 0x283   : > { %6157 = vrot.lane.b32.xlu0 %v6156_v17, %s9516_s2  ;;  %6152 = vrot.lane.b32.xlu1 %v6151_v3, %s9516_s2  ;;  %v7456_v17 = vmul.f32 %v6996_v41, %v7290_v59  ;;  %v7460_v3 = vmul.f32 %v7027_v50, %v7317_v35  ;;  %v7476_v41 = vmul.f32 %v7027_v50, %v7290_v59 }
 0x284   : > { %9614 = vst [vmem:[#allocation80_spill] sm:$0xff] %v7484_v48  ;;  %v7494_v50 = vmul.f32 %v7104_v7, %v7287_v39  ;;  %v7512_v7 = vmul.f32 %v7106_v45, %v7284_v60 }
 0x285   : > { %9609 = vst [vmem:[#allocation75_spill] sm:$0xff] %v7456_v17  ;;  %9610 = vst [vmem:[#allocation76_spill] sm:$0xff] %v7460_v3  ;;  %v6171_v0 = vpack.i.bf16 %v7450_v40, %v7456_v17 }
 0x286   : > { %9613 = vst [vmem:[#allocation79_spill] sm:$0xff] %v7476_v41  ;;  %9616 = vst [vmem:[#allocation82_spill] sm:$0xff] %v7494_v50 }
 0x287   : > { %6167 = vrot.lane.b32.xlu0 %v6166_v44, %s9513_s7  ;;  %6162 = vrot.lane.b32.xlu1 %v6161_v15, %s9513_s7  ;;  %v7472_v44 = vmul.f32 %v7025_v49, %v7311_v12  ;;  %v6186_v15 = vpack.i.bf16 %v7460_v3, %v7476_v41  ;;  %v7490_v49 = vmul.f32 %v7055_v23, %v7311_v12 }
 0x288   : > { %9619 = vst [vmem:[#allocation85_spill] sm:$0xff] %v7512_v7 }
 0x289   : > { %9612 = vst [vmem:[#allocation78_spill] sm:$0xff] %v7472_v44  ;;  %v6181_v28 = vpack.i.bf16 %v7472_v44, %v7468_v61  ;;  %9615 = vst [vmem:[#allocation81_spill] sm:$0xff] %v7490_v49  ;;  %v6196_v3 = vpack.i.bf16 %v7490_v49, %v7484_v48  ;;  %v7524_v49 = vmul.f32 %v7057_v32, %v7290_v59 }
 0x28a   : > { %v7528_v48 = vmul.f32 %v7108_v42, %v7317_v35 }
 0x28b   : > { %6177 = vrot.lane.b32.xlu0 %v6176_v38, %s9511_s10  ;;  %6172 = vrot.lane.b32.xlu1 %v6171_v0, %s9513_s7  ;;  %v7498_v38 = vmul.f32 %v7055_v23, %v7284_v60  ;;  %v7504_v0 = vmul.f32 %v7134_v18, %v7287_v39  ;;  %v7516_v23 = vmul.f32 %v7057_v32, %v7317_v35 }
 0x28c   : > { %9621 = vst [vmem:[#allocation87_spill] sm:$0xff] %v7524_v49  ;;  %9622 = vst [vmem:[#allocation88_spill] sm:$0xff] %v7528_v48 }
 0x28d   : > { %9617 = vst [vmem:[#allocation83_spill] sm:$0xff] %v7498_v38  ;;  %9618 = vst [vmem:[#allocation84_spill] sm:$0xff] %v7504_v0  ;;  %v6191_v41 = vpack.i.bf16 %v7498_v38, %v7494_v50  ;;  %v6206_v38 = vpack.i.bf16 %v7512_v7, %v7504_v0  ;;  %v6201_v50 = vpack.i.bf16 %v7516_v23, %v7524_v49 }
 0x28e   : > { %9620 = vst [vmem:[#allocation86_spill] sm:$0xff] %v7516_v23  ;;  %v7562_v23 = vmul.f32 %v7158_v4, %v7311_v12 }
 0x28f   : > { %6187 = vrot.lane.b32.xlu0 %v6186_v15, %s9511_s10  ;;  %6182 = vrot.lane.b32.xlu1 %v6181_v28, %s9511_s10  ;;  %s9515_s10 = sshll.u32 %s9791_s23, 5 }
 0x290   : > { %9627 = vst [vmem:[#allocation93_spill] sm:$0xff] %v7562_v23  ;;  %s978_s7 = scalar_lea.vmem %s6670_s25, %s9515_s10  ;;  %s9650_s10 = sld [smem:[#allocation8_spill]] }
 0x292   : > { %v7518_v15 = vpop.f32.mrb[4].mxu1 }
 0x293   : > { %v2888_v28 = vpop.f32.mrb[5].mxu1  ;;  %6197 = vrot.lane.b32.xlu0 %v6196_v3, %s9509_s11  ;;  %6192 = vrot.lane.b32.xlu1 %v6191_v41, %s9509_s11  ;;  %v7540_v3 = vmul.f32 %v7106_v45, %v7311_v12  ;;  %v7546_v41 = vmul.f32 %v7108_v42, %v7290_v59  ;;  %v7556_v45 = vmul.f32 %v7186_v34, %v7314_v53 }
 0x294   : > { %v7536_v28 = vmul.f32 %v7134_v18, %v7314_v53  ;;  %v2635_v53 = vld [vmem:[%s6540_s21 + $0x8] sm:$0xff] }
 0x295   : > { %9624 = vst [vmem:[#allocation90_spill] sm:$0xff] %v7540_v3  ;;  %9625 = vst [vmem:[#allocation91_spill] sm:$0xff] %v7546_v41  ;;  %v6216_v18 = vpack.i.bf16 %v7528_v48, %v7546_v41  ;;  %v2637_v48 = vld [vmem:[%s6540_s21 + $0x18] sm:$0xff]  ;;  %v6226_v41 = vpack.i.bf16 %v7562_v23, %v7556_v45 }
 0x296   : > { %9623 = vst [vmem:[#allocation89_spill] sm:$0xff] %v7536_v28  ;;  %v7542_v32 = vpop.f32.mrb[6].mxu1  ;;  %9626 = vst [vmem:[#allocation92_spill] sm:$0xff] %v7556_v45  ;;  %v6211_v42 = vpack.i.bf16 %v7540_v3, %v7536_v28  ;;  %v2647_v12 = vpack.c.bf16 %v2637_v48, %v2635_v53  ;;  %v7595_v48 = vmul.f32 %v7160_v57, %v7290_v59 }
 0x297   : > { %v2893_v0 = vpop.f32.mrb[7].mxu1  ;;  %6207 = vrot.lane.b32.xlu0 %v6206_v38, %s9507_s15  ;;  %6202 = vrot.lane.b32.xlu1 %v6201_v50, %s9509_s11  ;;  %v7570_v50 = vmul.f32 %v7158_v4, %v7284_v60  ;;  %v7584_v4 = vmul.f32 %v7160_v57, %v7317_v35  ;;  %s9649_s11 = sld [smem:[#allocation7_spill]] }
 0x298   : > { %v7566_v0 = vmul.f32 %v7186_v34, %v7287_v39  ;;  %5618 = vmatprep.mubr.msk.bf16.mxu0 %vm1271_vm3, %v2647_v12  ;;  %9631 = vst [vmem:[#allocation97_spill] sm:$0xff] %v7595_v48  ;;  %v2987_v12 = vld [vmem:[%s6560_s8 + $0x8] sm:$0xff] }
 0x299   : > { %9629 = vst [vmem:[#allocation95_spill] sm:$0xff] %v7570_v50  ;;  %9630 = vst [vmem:[#allocation96_spill] sm:$0xff] %v7584_v4  ;;  %v6231_v35 = vpack.i.bf16 %v7584_v4, %v7595_v48 }
 0x29a   : > { %9628 = vst [vmem:[#allocation94_spill] sm:$0xff] %v7566_v0  ;;  %v7572_v38 = vpop.f32.mrb[8].mxu1  ;;  %v6221_v34 = vpack.i.bf16 %v7570_v50, %v7566_v0 }
 0x29b   : > { %v2898_v7 = vpop.f32.mrb[9].mxu1  ;;  %6217 = vrot.lane.b32.xlu0 %v6216_v18, %s9507_s15  ;;  %6212 = vrot.lane.b32.xlu1 %v6211_v42, %s9507_s15  ;;  %v2986_v18 = vld [vmem:[%s6560_s8] sm:$0xff]  ;;  %s9648_s15 = sld [smem:[#allocation2_spill]] }
 0x29e   : > { %v7586_v60 = vpop.f32.mrb[10].mxu1 }
 0x29f   : > { %v2903_v7 = vpop.f32.mrb[11].mxu1  ;;  %6227 = vrot.lane.b32.xlu0 %v6226_v41, %s9505_s16  ;;  %6222 = vrot.lane.b32.xlu1 %v6221_v34, %s9505_s16 }
 0x2a2   : > { %v7600_v42 = vpop.f32.mrb[12].mxu1 }
 0x2a3   : > { %v2908_v53 = vpop.f32.mrb[13].mxu1  ;;  %2992 = vperm.xlu0 %5994, %v2986_v18   ;;  %6232 = vrot.lane.b32.xlu1 %v6231_v35, %s9505_s16  ;;  %s9647_s16 = sld [smem:[#allocation6_spill]] }
 0x2a6   : > { %v7604_v7 = vpop.f32.mrb[14].mxu1 }
 0x2a7   : > { %v2913_v34 = vpop.f32.mrb[15].mxu1  ;;  %2997 = vperm.xlu1 %5995, %v2987_v12  }
 0x2aa   : > { %v7608_v57 = vpop.f32.mrb[16].mxu1 }
 0x2ab   : > { %v2918_v59 = vpop.f32.mrb[17].mxu1 }
 0x2ae   : > { %v7610_v39 = vpop.f32.mrb[18].mxu1 }
 0x2af   : > { %v2923_v53 = vpop.f32.mrb[19].mxu1 }
 0x2b2   : > { %v7614_v18 = vpop.f32.mrb[20].mxu1 }
 0x2b3   : > { %v3065_v35 = vadd.f32 %v7614_v18, %v7608_v57  ;;  %v2928_v48 = vpop.f32.mrb[21].mxu1 }
 0x2b6   : > { %v7618_v23 = vpop.f32.mrb[22].mxu1 }
 0x2b7   : > { %v3066_v34 = vadd.f32 %v7618_v23, %v7610_v39  ;;  %v2933_v59 = vpop.f32.mrb[23].mxu1 }
 0x2ba   : > { %v7624_v41 = vpop.f32.mrb[24].mxu1 }
 0x2bb   : > { %v2938_v45 = vpop.f32.mrb[25].mxu1 }
 0x2be   : > { %v7626_v4 = vpop.f32.mrb[26].mxu1 }
 0x2bf   : > { %v2943_v50 = vpop.f32.mrb[27].mxu1 }
 0x2c0   : > { %v9492_v50 = vmov 0.0  }
 0x2c1   : > { %5780 = vmatprep.mubr.msk.f32.mxu1 %vm6502_vm0, %v9492_v50 }
 0x2c2   : > { %v7630_v0 = vpop.f32.mrb[28].mxu1 }
 0x2c3   : > { %v3067_v48 = vadd.f32 %v3065_v35, %v7630_v0  ;;  %v2948_v3 = vpop.f32.mrb[29].mxu1 }
 0x2c6   : > { %v7633_v28 = vpop.f32.mrb[30].mxu1 }
 0x2c7   : > { %v3068_v59 = vadd.f32 %v3066_v34, %v7633_v28  ;;  %v2953_v49 = vpop.f32.mrb[31].mxu1 }
 0x2ca   : > { %v7638_v45 = vpop.f32.mrb[32].mxu1 }
 0x2cb   : > { %v3069_v44 = vadd.f32 %v3067_v48, %v7638_v45  ;;  %v2958_v61 = vpop.f32.mrb[33].mxu1 }
 0x2cd   : > { %v7648_v34 = vmul.f32 0.25, %v3069_v44 }
 0x2ce   : > { %v7643_v35 = vpop.f32.mrb[34].mxu1 }
 0x2cf   : > { %v3070_v12 = vadd.f32 %v3068_v59, %v7643_v35  ;;  %v2963_v53 = vpop.f32.mrb[35].mxu1 }
 0x2d1   : > { %v7650_v49 = vmul.f32 0.25, %v3070_v12 }
 0x2e4   : > { %v6118_v48 = vpop.permute.xlu0 %6117 }
 0x2e5   : > { %v6120_v54 = vunpack.i.h.bf16 %v6118_v48  ;;  %v6119_v40 = vunpack.i.l.bf16 %v6118_v48 }
 0x2e7   : > { %v2237_v3 = vsel %vm1570_vm8, %v6119_v40, %v6120_v54 }
 0x2e9   : > { %v6123_v17 = vpop.permute.xlu1 %6122  ;;  %v6128_v50 = vpop.permute.xlu0 %6127 }
 0x2ea   : > { %v6125_v20 = vunpack.i.h.bf16 %v6123_v17  ;;  %v6124_v56 = vunpack.i.l.bf16 %v6123_v17  ;;  %v6130_v37 = vunpack.i.h.bf16 %v6128_v50  ;;  %v6129_v21 = vunpack.i.l.bf16 %v6128_v50 }
 0x2ec   : > { %v2239_v53 = vsel %vm1570_vm8, %v6124_v56, %v6125_v20  ;;  %v2236_v44 = vsel %vm1570_vm8, %v6129_v21, %v6119_v40  ;;  %v2238_v12 = vsel %vm1570_vm8, %v6130_v37, %v6124_v56 }
 0x2ed   : > { %v6133_v59 = vpop.permute.xlu1 %6132  ;;  %v6138_v36 = vpop.permute.xlu0 %6137  ;;  %v2655_v61 = vpack.c.bf16 %v2239_v53, %v2237_v3  ;;  %v2654_v6 = vpack.c.bf16 %v2238_v12, %v2236_v44 }
 0x2ee   : > { %v6135_v46 = vunpack.i.h.bf16 %v6133_v59  ;;  %v6134_v48 = vunpack.i.l.bf16 %v6133_v59  ;;  %v6140_v27 = vunpack.i.h.bf16 %v6138_v36  ;;  %v6139_v30 = vunpack.i.l.bf16 %v6138_v36 }
 0x2ef   : > { %2717 = vmatprep.subr.bf16.mxu0 %v2655_v61 }
 0x2f0   : > { %2718 = vmatpush1.bf16.msra.mxu0 %v2654_v6  ;;  %v2263_v17 = vsel %vm1659_vm9, %v6134_v48, %v6135_v46  ;;  %v2265_v54 = vsel %vm1659_vm9, %v6139_v30, %v6140_v27 }
 0x2f1   : > { %v6143_v50 = vpop.permute.xlu1 %6142  ;;  %v6148_v20 = vpop.permute.xlu0 %6147  ;;  %v2657_v22 = vpack.c.bf16 %v2265_v54, %v2263_v17 }
 0x2f2   : > { %v6145_v21 = vunpack.i.h.bf16 %v6143_v50  ;;  %v6144_v40 = vunpack.i.l.bf16 %v6143_v50  ;;  %v6150_v37 = vunpack.i.h.bf16 %v6148_v20  ;;  %v6149_v56 = vunpack.i.l.bf16 %v6148_v20 }
 0x2f3   : > { %2719 = vmatprep.subr.bf16.mxu0 %v2657_v22 }
 0x2f4   : > { %v2262_v3 = vsel %vm1659_vm9, %v6144_v40, %v6134_v48  ;;  %v2264_v53 = vsel %vm1659_vm9, %v6145_v21, %v6139_v30  ;;  %v2289_v27 = vsel %vm1748_vm10, %v6149_v56, %v6150_v37 }
 0x2f5   : > { %v6153_v44 = vpop.permute.xlu1 %6152  ;;  %v6158_v36 = vpop.permute.xlu0 %6157  ;;  %v2656_v61 = vpack.c.bf16 %v2264_v53, %v2262_v3 }
 0x2f6   : > { %v6155_v6 = vunpack.i.h.bf16 %v6153_v44  ;;  %v6154_v12 = vunpack.i.l.bf16 %v6153_v44  ;;  %v6160_v46 = vunpack.i.h.bf16 %v6158_v36  ;;  %v6159_v59 = vunpack.i.l.bf16 %v6158_v36 }
 0x2f7   : > { %2720 = vmatpush1.bf16.msra.mxu0 %v2656_v61 }
 0x2f8   : > { %v2291_v17 = vsel %vm1748_vm10, %v6154_v12, %v6155_v6  ;;  %v2288_v22 = vsel %vm1748_vm10, %v6159_v59, %v6149_v56  ;;  %v2290_v54 = vsel %vm1748_vm10, %v6160_v46, %v6154_v12 }
 0x2f9   : > { %v6163_v50 = vpop.permute.xlu1 %6162  ;;  %v6168_v48 = vpop.permute.xlu0 %6167  ;;  %v2659_v20 = vpack.c.bf16 %v2291_v17, %v2289_v27  ;;  %v2658_v30 = vpack.c.bf16 %v2290_v54, %v2288_v22 }
 0x2fa   : > { %v6165_v21 = vunpack.i.h.bf16 %v6163_v50  ;;  %v6164_v40 = vunpack.i.l.bf16 %v6163_v50  ;;  %v6170_v3 = vunpack.i.h.bf16 %v6168_v48  ;;  %v6169_v53 = vunpack.i.l.bf16 %v6168_v48 }
 0x2fb   : > { %2721 = vmatprep.subr.bf16.mxu0 %v2659_v20 }
 0x2fc   : > { %2722 = vmatpush1.bf16.msra.mxu0 %v2658_v30  ;;  %v2315_v44 = vsel %vm1837_vm11, %v6164_v40, %v6165_v21  ;;  %v2317_v37 = vsel %vm1837_vm11, %v6169_v53, %v6170_v3 }
 0x2fd   : > { %v6173_v36 = vpop.permute.xlu1 %6172  ;;  %v6178_v61 = vpop.permute.xlu0 %6177  ;;  %v2661_v6 = vpack.c.bf16 %v2317_v37, %v2315_v44 }
 0x2fe   : > { %v6175_v56 = vunpack.i.h.bf16 %v6173_v36  ;;  %v6174_v59 = vunpack.i.l.bf16 %v6173_v36  ;;  %v6180_v12 = vunpack.i.h.bf16 %v6178_v61  ;;  %v6179_v46 = vunpack.i.l.bf16 %v6178_v61 }
 0x2ff   : > { %2723 = vmatprep.subr.bf16.mxu0 %v2661_v6 }
 0x300   : > { %v2314_v27 = vsel %vm1837_vm11, %v6174_v59, %v6164_v40  ;;  %v2316_v17 = vsel %vm1837_vm11, %v6175_v56, %v6169_v53  ;;  %v2341_v3 = vsel %vm1926_vm12, %v6179_v46, %v6180_v12 }
 0x301   : > { %v6183_v22 = vpop.permute.xlu1 %6182  ;;  %v6188_v54 = vpop.permute.xlu0 %6187  ;;  %v2660_v50 = vpack.c.bf16 %v2316_v17, %v2314_v27 }
 0x302   : > { %v6185_v48 = vunpack.i.h.bf16 %v6183_v22  ;;  %v6184_v20 = vunpack.i.l.bf16 %v6183_v22  ;;  %v6190_v30 = vunpack.i.h.bf16 %v6188_v54  ;;  %v6189_v21 = vunpack.i.l.bf16 %v6188_v54 }
 0x303   : > { %2724 = vmatpush1.bf16.msra.mxu0 %v2660_v50 }
 0x304   : > { %v2343_v44 = vsel %vm1926_vm12, %v6184_v20, %v6185_v48  ;;  %v2340_v37 = vsel %vm1926_vm12, %v6189_v21, %v6179_v46  ;;  %v2342_v36 = vsel %vm1926_vm12, %v6190_v30, %v6184_v20 }
 0x305   : > { %v6193_v61 = vpop.permute.xlu1 %6192  ;;  %v6198_v40 = vpop.permute.xlu0 %6197  ;;  %v2663_v6 = vpack.c.bf16 %v2343_v44, %v2341_v3  ;;  %v2662_v53 = vpack.c.bf16 %v2342_v36, %v2340_v37 }
 0x306   : > { %v6195_v56 = vunpack.i.h.bf16 %v6193_v61  ;;  %v6194_v59 = vunpack.i.l.bf16 %v6193_v61  ;;  %v6200_v27 = vunpack.i.h.bf16 %v6198_v40  ;;  %v6199_v17 = vunpack.i.l.bf16 %v6198_v40 }
 0x307   : > { %2725 = vmatprep.subr.bf16.mxu0 %v2663_v6 }
 0x308   : > { %2726 = vmatpush1.bf16.msra.mxu0 %v2662_v53  ;;  %v2367_v22 = vsel %vm2015_vm13, %v6194_v59, %v6195_v56  ;;  %v2369_v12 = vsel %vm2015_vm13, %v6199_v17, %v6200_v27 }
 0x309   : > { %v6203_v54 = vpop.permute.xlu1 %6202  ;;  %v6208_v50 = vpop.permute.xlu0 %6207  ;;  %v2665_v48 = vpack.c.bf16 %v2369_v12, %v2367_v22 }
 0x30a   : > { %v6205_v46 = vunpack.i.h.bf16 %v6203_v54  ;;  %v6204_v21 = vunpack.i.l.bf16 %v6203_v54  ;;  %v6210_v20 = vunpack.i.h.bf16 %v6208_v50  ;;  %v6209_v30 = vunpack.i.l.bf16 %v6208_v50 }
 0x30b   : > { %2727 = vmatprep.subr.bf16.mxu0 %v2665_v48 }
 0x30c   : > { %v2366_v3 = vsel %vm2015_vm13, %v6204_v21, %v6194_v59  ;;  %v2368_v44 = vsel %vm2015_vm13, %v6205_v46, %v6199_v17  ;;  %v2393_v27 = vsel %vm2104_vm14, %v6209_v30, %v6210_v20 }
 0x30d   : > { %v6213_v37 = vpop.permute.xlu1 %6212  ;;  %v6218_v36 = vpop.permute.xlu0 %6217  ;;  %v2664_v61 = vpack.c.bf16 %v2368_v44, %v2366_v3 }
 0x30e   : > { %v6215_v40 = vunpack.i.h.bf16 %v6213_v37  ;;  %v6214_v6 = vunpack.i.l.bf16 %v6213_v37  ;;  %v6220_v53 = vunpack.i.h.bf16 %v6218_v36  ;;  %v6219_v56 = vunpack.i.l.bf16 %v6218_v36 }
 0x30f   : > { %2728 = vmatpush1.bf16.msra.mxu0 %v2664_v61 }
 0x310   : > { %v2395_v22 = vsel %vm2104_vm14, %v6214_v6, %v6215_v40  ;;  %v2392_v12 = vsel %vm2104_vm14, %v6219_v56, %v6209_v30  ;;  %v2394_v54 = vsel %vm2104_vm14, %v6220_v53, %v6214_v6  ;;  %v2634_v6 = vld [vmem:[%s6540_s21] sm:$0xff]  ;;  %v2636_v53 = vld [vmem:[%s6540_s21 + $0x10] sm:$0xff] }
 0x311   : > { %v6223_v50 = vpop.permute.xlu1 %6222  ;;  %v6228_v59 = vpop.permute.xlu0 %6227  ;;  %v2667_v17 = vpack.c.bf16 %v2395_v22, %v2393_v27  ;;  %v2666_v48 = vpack.c.bf16 %v2394_v54, %v2392_v12  ;;  %v2639_v22 = vld [vmem:[%s6540_s21 + $0x28] sm:$0xff]  ;;  %v2641_v12 = vld [vmem:[%s6540_s21 + $0x38] sm:$0xff] }
 0x312   : > { %v6225_v46 = vunpack.i.h.bf16 %v6223_v50  ;;  %v6224_v21 = vunpack.i.l.bf16 %v6223_v50  ;;  %v6230_v3 = vunpack.i.h.bf16 %v6228_v59  ;;  %v6229_v44 = vunpack.i.l.bf16 %v6228_v59 }
 0x313   : > { %2729 = vmatprep.subr.bf16.mxu0 %v2667_v17  ;;  %v2646_v50 = vpack.c.bf16 %v2636_v53, %v2634_v6  ;;  %v2649_v59 = vpack.c.bf16 %v2641_v12, %v2639_v22  ;;  %v9632_v17 = vmov 0   ;;  %v9644_v22 = vmov 0.0|0.0  }
 0x314   : > { %2730 = vmatpush1.bf16.msra.mxu0 %v2666_v48  ;;  %v2419_v20 = vsel %vm2193_vm15, %v6224_v21, %v6225_v46  ;;  %v2421_v30 = vsel %vm2193_vm15, %v6229_v44, %v6230_v3  ;;  %v9633_v48 = vpack.c.bf16 %v7279_v8, %v7277_v62  ;;  %v2638_v46 = vld [vmem:[%s6540_s21 + $0x20] sm:$0xff]  ;;  %v2643_v3 = vld [vmem:[%s6540_s21 + $0x48] sm:$0xff]  ;;  %v9635_v62 = vpack.c.bf16 %v7586_v60, %v7572_v38 }
 0x315   : > { %v6233_v37 = vpop.permute.xlu1 %6232  ;;  %v2669_v36 = vpack.c.bf16 %v2421_v30, %v2419_v20  ;;  %v9634_v30 = vpack.c.bf16 %v7542_v32, %v7518_v15  ;;  %v2642_v8 = vld [vmem:[%s6540_s21 + $0x40] sm:$0xff]  ;;  %v9636_v32 = vpack.c.bf16 %v7604_v7, %v7600_v42  ;;  %v9637_v38 = vpack.c.bf16 %v7610_v39, %v7608_v57  ;;  %v2967_v57 = vld [vmem:[%s9550_s3 + $0x10] sm:$0xff] }
 0x316   : > { %v6235_v61 = vunpack.i.h.bf16 %v6233_v37  ;;  %v6234_v40 = vunpack.i.l.bf16 %v6233_v37  ;;  %v9638_v60 = vpack.c.bf16 %v7618_v23, %v7614_v18  ;;  %v9639_v42 = vpack.c.bf16 %v7626_v4, %v7624_v41  ;;  %v2965_v7 = vld [vmem:[%s9550_s3] sm:$0xff]  ;;  %v2970_v23 = vld [vmem:[%s9550_s3 + $0x28] sm:$0xff]  ;;  %v2972_v18 = vld [vmem:[%s9550_s3 + $0x38] sm:$0xff] }
 0x317   : > { %2731 = vmatprep.subr.bf16.mxu0 %v2669_v36  ;;  %v2644_v36 = vld [vmem:[%s6540_s21 + $0x50] sm:$0xff]  ;;  %v9640_v39 = vpack.c.bf16 %v7633_v28, %v7630_v0  ;;  %v2973_v53 = vpack.c.bf16 %v2967_v57, %v2965_v7  ;;  %v9641_v4 = vpack.c.bf16 %v7643_v35, %v7638_v45  ;;  %v2976_v41 = vpack.c.bf16 %v2972_v18, %v2970_v23  ;;  %v2969_v0 = vld [vmem:[%s9550_s3 + $0x20] sm:$0xff] }
 0x318   : > { %v2418_v56 = vsel %vm2193_vm15, %v6234_v40, %v6224_v21  ;;  %v2420_v27 = vsel %vm2193_vm15, %v6235_v61, %v6229_v44  ;;  %v2640_v21 = vld [vmem:[%s6540_s21 + $0x30] sm:$0xff]  ;;  %v2645_v44 = vld [vmem:[%s6540_s21 + $0x58] sm:$0xff]  ;;  %v2966_v61 = vld [vmem:[%s9550_s3 + $0x8] sm:$0xff]  ;;  %v2650_v15 = vpack.c.bf16 %v2644_v36, %v2642_v8  ;;  %v9643_v28 = vpack.c.bf16 %v7650_v49, %v7648_v34 }
 0x319   : > { %v2668_v54 = vpack.c.bf16 %v2420_v27, %v2418_v56  ;;  %v2648_v20 = vpack.c.bf16 %v2640_v21, %v2638_v46  ;;  %v2651_v37 = vpack.c.bf16 %v2645_v44, %v2643_v3  ;;  %v2968_v40 = vld [vmem:[%s9550_s3 + $0x18] sm:$0xff]  ;;  %v9642_v56 = vmov 0.0   ;;  %v2971_v27 = vld [vmem:[%s9550_s3 + $0x30] sm:$0xff]  ;;  %v3073_v35 = vld [vmem:[%s6565_s14] sm:$0xff]  ;;  %s9736_s3 = sld [smem:[#allocation13_spill]] }
 0x31a   : > { %v2974_v6 = vpack.c.bf16 %v2968_v40, %v2966_v61  ;;  %v2975_v45 = vpack.c.bf16 %v2971_v27, %v2969_v0  ;;  %v3074_v12 = vpack.c.bf16 %v3073_v35, %v3073_v35  ;;  %v3120_v34 = vld [vmem:[%s6570_s19] sm:$0xff]  ;;  %v3121_v49 = vld [vmem:[%s6570_s19 + $0x8] sm:$0xff]  ;;  %v3126_v44 = vld [vmem:[%s6570_s19 + $0x30] sm:$0xff] }
 0x31b   : > { %2732 = vmatpush1.bf16.msra.mxu0 %v2668_v54  ;;  %v3122_v54 = vld [vmem:[%s6570_s19 + $0x10] sm:$0xff]  ;;  %v3124_v46 = vld [vmem:[%s6570_s19 + $0x20] sm:$0xff]  ;;  %v3125_v21 = vld [vmem:[%s6570_s19 + $0x28] sm:$0xff] }
 0x31c   : > { %3016 = vmatprep.subr.bf16.mxu0 %v9632_v17  ;;  %v5862_v3 = vpack.c.bf16 %v3125_v21, %v3124_v46  ;;  %v3203_v0 = vld [vmem:[%s6575_s24 + $0x8] sm:$0xff] }
 0x31d   : > { %v3207_v46 = vld [vmem:[%s6575_s24 + $0x28] sm:$0xff] }
 0x31e   : > { %2748 = vmatmul.mubr.bf16.vlgmr.msra.gmra.mrb[0].mxu0 %v2646_v50  ;;  %v5856_v50 = vpack.c.bf16 %v3121_v49, %v3120_v34  ;;  %v3204_v34 = vld [vmem:[%s6575_s24 + $0x10] sm:$0xff]  ;;  %v3205_v49 = vld [vmem:[%s6575_s24 + $0x18] sm:$0xff] }
 0x31f   : > { %3017 = vmatpush1.bf16.msra.mxu0 %v9633_v48  ;;  %5619 = vmatprep.mubr.msk.bf16.mxu0 %vm1271_vm3, %v2649_v59  ;;  %v3123_v59 = vld [vmem:[%s6570_s19 + $0x18] sm:$0xff] }
 0x320   : > { %3018 = vmatprep.subr.bf16.mxu0 %v9632_v17  ;;  %v5859_v48 = vpack.c.bf16 %v3123_v59, %v3122_v54  ;;  %v5871_v59 = vpack.c.bf16 %v3205_v49, %v3204_v34 }
 0x323   : > { %3019 = vmatpush1.bf16.msra.mxu0 %v9634_v30 }
 0x324   : > { %3020 = vmatprep.subr.bf16.mxu0 %v9632_v17 }
 0x326   : > { %2758 = vmatmul.mubr.bf16.gmra.mrb[4].mxu0 %v2648_v20  ;;  %v3127_v20 = vld [vmem:[%s6570_s19 + $0x38] sm:$0xff] }
 0x327   : > { %3021 = vmatpush1.bf16.msra.mxu0 %v9635_v62  ;;  %5620 = vmatprep.mubr.msk.bf16.mxu0 %vm1271_vm3, %v2651_v37  ;;  %v5865_v30 = vpack.c.bf16 %v3127_v20, %v3126_v44  ;;  %v3209_v44 = vld [vmem:[%s6575_s24 + $0x38] sm:$0xff] }
 0x328   : > { %3022 = vmatprep.subr.bf16.mxu0 %v9632_v17 }
 0x32b   : > { %3023 = vmatpush1.bf16.msra.mxu0 %v9636_v32 }
 0x32c   : > { %3024 = vmatprep.subr.bf16.mxu0 %v9632_v17 }
 0x32e   : > { %2768 = vmatmul.mubr.bf16.gmra.mrb[8].mxu0 %v2650_v15 }
 0x32f   : > { %3025 = vmatpush1.bf16.msra.mxu0 %v9637_v38  ;;  %5621 = vmatprep.mubr.msk.bf16.mxu0 %vm1271_vm3, %v2974_v6 }
 0x330   : > { %3026 = vmatprep.subr.bf16.mxu0 %v9632_v17 }
 0x333   : > { %3027 = vmatpush1.bf16.msra.mxu0 %v9638_v60 }
 0x334   : > { %3028 = vmatprep.subr.bf16.mxu0 %v9632_v17 }
 0x337   : > { %3029 = vmatpush1.bf16.msra.mxu0 %v9639_v42 }
 0x338   : > { %3030 = vmatprep.subr.bf16.mxu0 %v9632_v17 }
 0x33b   : > { %3031 = vmatpush1.bf16.msra.mxu0 %v9640_v39 }
 0x33c   : > { %3032 = vmatprep.subr.bf16.mxu0 %v9632_v17 }
 0x33f   : > { %3033 = vmatpush1.bf16.msra.mxu0 %v9641_v4 }
 0x340   : > { %5706 = vmatprep.subr.bf16.mxu0 %v9642_v56 }
 0x342   : > { %3049 = vmatmul.mubr.bf16.vlgmr.msra.gmra.mrb[12].mxu0 %v2973_v53 }
 0x343   : > { %5707 = vmatpush3.bf16.msra.mxu0 %v9643_v28  ;;  %5622 = vmatprep.mubr.msk.bf16.mxu0 %vm1271_vm3, %v2976_v41  ;;  %v3202_v28 = vld [vmem:[%s6575_s24] sm:$0xff] }
 0x344   : > { %5855 = vmatprep.subr.bf16.mxu0 %v9644_v22 }
 0x34a   : > { %3057 = vmatmul.mubr.bf16.gmra.mrb[16].mxu0 %v2975_v45  ;;  %v5868_v45 = vpack.c.bf16 %v3203_v0, %v3202_v28  ;;  %v3368_v28 = vld [vmem:[%s6585_s6 + $0x18] sm:$0xff] }
 0x34b   : > { %5708 = vmatprep.mubr.msk.bf16.mxu0 %vm6502_vm0, %v9642_v56 }
 0x352   : > { %5709 = vmatmul.mubr.msk.bf16.vlgmr.msra.gmra.mrb[20].mxu0 %vm1271_vm3, %v3074_v12 }
 0x353   : > { %5728 = vmatprep.mubr.msk.f32.mxu0 %vm6502_vm0, %v9642_v56  ;;  %5857 = vmatpush3.bf16.msra.mxu0 %v5856_v50 }
 0x354   : > { %5858 = vmatprep.subr.bf16.mxu0 %v9644_v22 }
 0x357   : > { %5860 = vmatpush3.bf16.msra.mxu0 %v5859_v48  ;;  %v3206_v48 = vld [vmem:[%s6575_s24 + $0x20] sm:$0xff] }
 0x358   : > { %5861 = vmatprep.subr.bf16.mxu0 %v9644_v22  ;;  %v5874_v21 = vpack.c.bf16 %v3207_v46, %v3206_v48  ;;  %v3281_v48 = vld [vmem:[%s6580_s30 + $0x8] sm:$0xff] }
 0x35b   : > { %5863 = vmatpush3.bf16.msra.mxu0 %v5862_v3  ;;  %v3208_v3 = vld [vmem:[%s6575_s24 + $0x30] sm:$0xff] }
 0x35c   : > { %5864 = vmatprep.subr.bf16.mxu0 %v9644_v22  ;;  %v5877_v20 = vpack.c.bf16 %v3209_v44, %v3208_v3  ;;  %v3373_v3 = vld [vmem:[%s6590_s12 + $0x18] sm:$0xff] }
 0x35f   : > { %5866 = vmatpush3.bf16.msra.mxu0 %v5865_v30  ;;  %v3280_v30 = vld [vmem:[%s6580_s30] sm:$0xff] }
 0x360   : > { %5867 = vmatprep.subr.bf16.mxu0 %v9644_v22 }
 0x3f1   : > { %v7767_v37 = vpop.f32.mrb[0].mxu0 }
 0x3f2   : > { %v7769_v62 = vpop.f32.mrb[1].mxu0 }
 0x3f3   : > { %v7771_v8 = vpop.f32.mrb[2].mxu0 }
 0x3f4   : > { %v7773_v36 = vpop.f32.mrb[3].mxu0 }
 0x3f9   : > { %v7775_v61 = vpop.f32.mrb[4].mxu0 }
 0x3fa   : > { %v7777_v40 = vpop.f32.mrb[5].mxu0 }
 0x3fb   : > { %v7779_v15 = vpop.f32.mrb[6].mxu0 }
 0x3fc   : > { %v7781_v32 = vpop.f32.mrb[7].mxu0 }
 0x401   : > { %v7783_v6 = vpop.f32.mrb[8].mxu0 }
 0x402   : > { %v7785_v38 = vpop.f32.mrb[9].mxu0 }
 0x403   : > { %v7787_v60 = vpop.f32.mrb[10].mxu0 }
 0x404   : > { %v7789_v42 = vpop.f32.mrb[11].mxu0 }
 0x415   : > { %v7791_v39 = vpop.f32.mrb[12].mxu0 }
 0x416   : > { %v3052_v7 = vpop.f32.mrb[13].mxu0 }
 0x417   : > { %v7793_v57 = vpop.f32.mrb[14].mxu0  ;;  %v3365_v7 = vld [vmem:[%s6585_s6] sm:$0xff] }
 0x418   : > { %v3055_v23 = vpop.f32.mrb[15].mxu0 }
 0x419   : > { %v3366_v23 = vld [vmem:[%s6585_s6 + $0x8] sm:$0xff] }
 0x41d   : > { %v7795_v18 = vpop.f32.mrb[16].mxu0 }
 0x41e   : > { %v3060_v53 = vpop.f32.mrb[17].mxu0 }
 0x41f   : > { %v7797_v4 = vpop.f32.mrb[18].mxu0  ;;  %v3367_v53 = vld [vmem:[%s6585_s6 + $0x10] sm:$0xff] }
 0x420   : > { %v3063_v41 = vpop.f32.mrb[19].mxu0  ;;  %v5893_v0 = vpack.c.bf16 %v3368_v28, %v3367_v53 }
 0x421   : > { %v5890_v41 = vpack.c.bf16 %v3366_v23, %v3365_v7 }
 0x423   : > { %5891 = vmatpush3.bf16.msra.mxu1 %v5890_v41  ;;  %v3522_v41 = vld [vmem:[%s9645_s1] sm:$0xff] }
 0x424   : > { %5892 = vmatprep.subr.bf16.mxu1 %v9644_v22 }
 0x425   : > { %v3113_v27 = vpop.f32.mrb[20].mxu0 }
 0x426   : > { %v7801_v35 = vmax.f32 %v3113_v27, 0.0  ;;  %v5710_v12 = vpop.f32.mrb[21].mxu0  ;;  %v3369_v27 = vld [vmem:[%s6585_s6 + $0x20] sm:$0xff] }
 0x427   : > { %v3116_v54 = vpop.f32.mrb[22].mxu0  ;;  %5894 = vmatpush3.bf16.msra.mxu1 %v5893_v0  ;;  %v2993_v0 = vpop.permute.xlu0 %2992 }
 0x428   : > { %v5711_v50 = vpop.f32.mrb[23].mxu0  ;;  %5729 = vmatmul.mubr.msk.f32.vlgmr.msra.gmra.mrb[24].mxu0 %vm3128_vm1, %v7801_v35  ;;  %5778 = vmatprep.subr.mxu1 %v9642_v56 }
 0x429   : > { %5869 = vmatpush3.bf16.msra.mxu0 %v5868_v45  ;;  %5747 = vmatprep.mubr.msk.f32.mxu0 %vm6502_vm0, %v9642_v56  ;;  %v3370_v50 = vld [vmem:[%s6590_s12] sm:$0xff] }
 0x42a   : > { %5870 = vmatprep.subr.bf16.mxu0 %v9644_v22 }
 0x42b   : > { %5779 = vmatpush3.msra.mxu1 %v3369_v27  ;;  %v3051_v27 = vadd.f32 %v7791_v39, %v2993_v0  ;;  %v7855_v39 = vld [vmem:[%s9646_s26 + $0x8] sm:$0xff] }
 0x42c   : > { %vm3776_vm7 = vcmp.gt.f32.partialorder %v7855_v39, 0.0 }
 0x42d   : > { %5872 = vmatpush3.bf16.msra.mxu0 %v5871_v59  ;;  %v3371_v59 = vld [vmem:[%s6590_s12 + $0x8] sm:$0xff] }
 0x42e   : > { %5873 = vmatprep.subr.bf16.mxu0 %v9644_v22  ;;  %v5884_v46 = vpack.c.bf16 %v3371_v59, %v3370_v50  ;;  %v3625_v59 = vmul.f32 %v3051_v27, %v3051_v27 }
 0x431   : > { %5875 = vmatpush3.bf16.msra.mxu0 %v5874_v21  ;;  %v3372_v21 = vld [vmem:[%s6590_s12 + $0x10] sm:$0xff] }
 0x432   : > { %5876 = vmatprep.subr.bf16.mxu0 %v9644_v22  ;;  %v5887_v44 = vpack.c.bf16 %v3373_v3, %v3372_v21  ;;  %v7849_v3 = vld [vmem:[%s9646_s26] sm:$0xff] }
 0x433   : > { %vm3775_vm6 = vcmp.gt.f32.partialorder %v7849_v3, 0.0 }
 0x435   : > { %5878 = vmatpush3.bf16.msra.mxu0 %v5877_v20  ;;  %v3374_v20 = vld [vmem:[%s6590_s12 + $0x20] sm:$0xff] }
 0x438   : > { %5748 = vmatmul.mubr.msk.f32.vlgmr.msra.gmra.mrb[26].mxu0 %vm3128_vm1, %v7801_v35 }
 0x439   : > { %5754 = vmatprep.mubr.msk.f32.mxu0 %vm1271_vm3, %v3280_v30 }
 0x4fb   : > { %v3198_v45 = vpop.f32.mrb[24].mxu0 }
 0x4fc   : > { %v5730_v12 = vpop.f32.mrb[25].mxu0 }
 0x50b   : > { %v3276_v34 = vpop.f32.mrb[26].mxu0 }
 0x50c   : > { %v5879_v49 = vpack.c.bf16 %v3276_v34, %v3198_v45  ;;  %v5749_v54 = vpop.f32.mrb[27].mxu0 }
 0x50e   : > { %5880 = vmatprep.subr.bf16.mxu0 %v5879_v49 }
 0x50f   : > { %5882 = vmatpush3.bf16.msra.mxu0 %v5879_v49 }
 0x510   : > { %5883 = vmatprep.subr.bf16.mxu0 %v9644_v22 }
 0x512   : > { %5755 = vmatmul.mubr.msk.f32.vlgmr.msra.gmra.mrb[28].mxu0 %vm1271_vm3, %v3281_v48 }
 0x513   : > { %5885 = vmatpush3.bf16.msra.mxu0 %v5884_v46  ;;  %5767 = vmatprep.mubr.msk.f32.mxu0 %vm6502_vm0, %v9642_v56  ;;  %v3523_v46 = vld [vmem:[%s9645_s1 + $0x8] sm:$0xff]  ;;  %s9656_s1 = smov 112  }
 0x514   : > { %5886 = vmatprep.subr.bf16.mxu0 %v9644_v22  ;;  %v2998_v22 = vpop.permute.xlu1 %2997 }
 0x515   : > { %v3054_v28 = vadd.f32 %v7793_v57, %v2998_v22 }
 0x517   : > { %5888 = vmatpush3.bf16.msra.mxu0 %v5887_v44  ;;  %v3626_v49 = vmul.f32 %v3054_v28, %v3054_v28 }
 0x518   : > { %5765 = vmatprep.subr.mxu0 %v9642_v56 }
 0x519   : > { %v5895_v21 = vpack.c.bf16 %v3626_v49, %v3625_v59  ;;  %v3609_v59 = vld [vmem:[%s9647_s16] sm:$0xff] }
 0x51b   : > { %5766 = vmatpush3.msra.mxu0 %v3374_v20 }
 0x51c   : > { %5795 = vmatprep.subr.bf16.mxu0 %v9642_v56 }
 0x5e5   : > { %v5756_v30 = vpop.f32.mrb[28].mxu0 }
 0x5e6   : > { %v3364_v7 = vmax.f32 %v5756_v30, 0.0  ;;  %v3354_v23 = vpop.f32.mrb[29].mxu0 }
 0x5e7   : > { %v3363_v53 = vmax.f32 %v3354_v23, 0.0 }
 0x5e8   : > { %5768 = vmatmul.mubr.msk.f32.vlgmr.msra.gmra.mrb[30].mxu0 %vm3375_vm2, %v3364_v7 }
 0x5e9   : > { %5781 = vmatmul.mubr.msk.f32.vlgmr.msra.gmra.mrb[36].mxu1 %vm3375_vm2, %v3363_v53  ;;  %5797 = vmatprep.mubr.msk.bf16.mxu0 %vm6502_vm0, %v9642_v56 }
 0x5ea   : > { %5785 = vmatprep.mubr.msk.f32.mxu1 %vm3525_vm4, %v3522_v41 }
 0x6bb   : > { %v3445_v45 = vpop.f32.mrb[30].mxu0 }
 0x6bc   : > { %v5769_v12 = vpop.f32.mrb[31].mxu0  ;;  %v3518_v34 = vpop.f32.mrb[36].mxu1 }
 0x6bd   : > { %v3519_v54 = vadd.f32 %v3518_v34, %v3445_v45  ;;  %v5782_v50 = vpop.f32.mrb[37].mxu1  ;;  %v3610_v12 = vld [vmem:[%s9647_s16 + $0x8] sm:$0xff] }
 0x6bf   : > { %v3524_v48 = vadd.f32 %v3519_v54, %v7801_v35 }
 0x6c1   : > { %5783 = vmatprep.subr.mxu1 %v3524_v48 }
 0x6c2   : > { %5784 = vmatpush3.msra.mxu1 %v3524_v48 }
 0x6c3   : > { %5786 = vmatmul.mubr.msk.f32.vlgmr.msra.gmra.mrb[38].mxu1 %vm3525_vm4, %v3523_v46  ;;  %5896 = vmatprep.subr.bf16.mxu1 %v5895_v21 }
 0x6c4   : > { %5898 = vmatpush3.bf16.msra.mxu1 %v5895_v21  ;;  %5792 = vmatprep.mubr.msk.f32.mxu1 %vm1271_vm3, %v7849_v3 }
 0x6c5   : > { %5801 = vmatprep.subr.bf16.mxu1 %v9642_v56 }
 0x6c7   : > { %5793 = vmatmul.mubr.msk.f32.vlgmr.msra.gmra.mrb[40].mxu1 %vm1271_vm3, %v7855_v39 }
 0x6c8   : > { %5803 = vmatprep.mubr.msk.bf16.mxu1 %vm6502_vm0, %v9642_v56 }
 0x796   : > { %v5787_v57 = vpop.f32.mrb[38].mxu1 }
 0x797   : > { %v3612_v35 = vmul.f32 %v5787_v57, %v5787_v57  ;;  %v3598_v44 = vpop.f32.mrb[39].mxu1 }
 0x798   : > { %v3611_v20 = vmul.f32 %v3598_v44, %v3598_v44 }
 0x799   : > { %v3616_v30 = vsel %vm3128_vm1, %v3612_v35, 0.0 }
 0x79a   : > { %3617 = vadd.xlane.f32.xlu1 %v3616_v30  ;;  %v5794_v7 = vpop.f32.mrb[40].mxu1  ;;  %v3613_v23 = vsel %vm3128_vm1, %v3611_v20, 0.0 }
 0x79b   : > { %v3709_v53 = vmax.f32 %v5794_v7, 1e-24  ;;  %3614 = vadd.xlane.f32.xlu0 %v3613_v23  ;;  %v3699_v41 = vpop.f32.mrb[41].mxu1 }
 0x79c   : > { %v3708_v22 = vmax.f32 %v3699_v41, 1e-24 }
 0x79d   : > { %6269 = vrsqrt.f32 %v3709_v53 }
 0x79e   : > { %6271 = vrsqrt.f32 %v3708_v22 }
 0x7a7   : > { %v6270_v0 = vpop.eup %6269 }
 0x7a8   : > { %v6272_v45 = vpop.eup %6271  ;;  %v3713_v34 = vmul.f32 %v6270_v0, %v3054_v28 }
 0x7a9   : > { %v3712_v49 = vmul.f32 %v6272_v45, %v3051_v27 }
 0x7ab   : > { %3770 = vperm.xlu1 %5995, %v3610_v12   ;;  %v3715_v54 = vpack.c.bf16 %v3713_v34, %v3712_v49 }
 0x7ad   : > { %v3720_v50 = vsel %vm3128_vm1, %v3715_v54, 0 }
 0x7ae   : > { %5796 = vmatpush3.bf16.xpose.msra.mxu0 %v3720_v50  ;;  %v2988_v50 = vld [vmem:[%s6560_s8 + $0x10] sm:$0xff] }
 0x7b1   : > { %3765 = vperm.xlu0 %5994, %v3609_v59   ;;  %v2672_v59 = vld [vmem:[%s9648_s15 + $0x10] sm:$0xff] }
 0x827   : > { %v3618_v48 = vpop.xlane.xlu1 %3617 }
 0x828   : > { %v3620_v46 = vmax.f32 %v3618_v48, 1e-24  ;;  %v3615_v21 = vpop.xlane.xlu0 %3614  ;;  %v2673_v48 = vld [vmem:[%s9648_s15 + $0x18] sm:$0xff] }
 0x829   : > { %v3619_v35 = vmax.f32 %v3615_v21, 1e-24 }
 0x82a   : > { %6273 = vrsqrt.f32 %v3620_v46  ;;  %v2671_v46 = vld [vmem:[%s9648_s15 + $0x8] sm:$0xff] }
 0x82b   : > { %6275 = vrsqrt.f32 %v3619_v35  ;;  %v7872_v0 = vpop.permute.xlu1 %3770 }
 0x830   : > { %v7868_v28 = vpop.permute.xlu0 %3765 }
 0x834   : > { %v6274_v20 = vpop.eup %6273 }
 0x835   : > { %v6276_v30 = vpop.eup %6275  ;;  %v3624_v7 = vmul.f32 %v6274_v20, %v5787_v57 }
 0x836   : > { %v3623_v23 = vmul.f32 %v6276_v30, %v3598_v44 }
 0x838   : > { %v3714_v53 = vpack.c.bf16 %v3624_v7, %v3623_v23 }
 0x83a   : > { %5798 = vmatmul.mubr.msk.bf16.vlgmr.msra.gmra.mrb[32].mxu0 %vm3128_vm1, %v3714_v53 }
 0x90d   : > { %v3756_v27 = vpop.f32.mrb[32].mxu0 }
 0x90e   : > { %v3773_v41 = vmul.f32 %v7868_v28, %v3756_v27  ;;  %v5799_v22 = vpop.f32.mrb[33].mxu0 }
 0x90f   : > { %v3759_v45 = vpop.f32.mrb[34].mxu0 }
 0x910   : > { %v3774_v57 = vmul.f32 %v7872_v0, %v3759_v45  ;;  %v5800_v44 = vpop.f32.mrb[35].mxu0  ;;  %v3777_v12 = vsel %vm3775_vm6, %v3773_v41, -1e+30 }
 0x911   : > { %v3779_v34 = vsel %vm1271_vm3, %v3777_v12, -inf }
 0x912   : > { %3780 = vmax.xlane.f32.xlu0 %v3779_v34  ;;  %v3778_v49 = vsel %vm3776_vm7, %v3774_v57, -1e+30 }
 0x913   : > { %v3782_v54 = vsel %vm1271_vm3, %v3778_v49, -inf }
 0x914   : > { %3783 = vmax.xlane.f32.xlu1 %v3782_v54 }
 0x925   : > { %3002 = vperm.xlu1 %5995, %v2988_v50  }
 0x929   : > { %2688 = vperm.xlu1 %5995, %v2672_v59  }
 0x92d   : > { %2693 = vperm.xlu1 %5995, %v2673_v48   ;;  %v2989_v48 = vld [vmem:[%s6560_s8 + $0x18] sm:$0xff] }
 0x931   : > { %2683 = vperm.xlu1 %5995, %v2671_v46   ;;  %v2670_v46 = vld [vmem:[%s9648_s15] sm:$0xff] }
 0x99f   : > { %v3781_v21 = vpop.xlane.xlu0 %3780 }
 0x9a0   : > { %v3785_v35 = vsub.f32 %v3777_v12, %v3781_v21 }
 0x9a1   : > { %v3784_v20 = vpop.xlane.xlu1 %3783 }
 0x9a2   : > { %v3787_v30 = vmul.f32 1.442695, %v3785_v35  ;;  %v3786_v7 = vsub.f32 %v3778_v49, %v3784_v20 }
 0x9a4   : > { %6277 = vpow2.f32 %v3787_v30  ;;  %v3789_v23 = vmul.f32 1.442695, %v3786_v7 }
 0x9a5   : > { %v3003_v53 = vpop.permute.xlu1 %3002 }
 0x9a6   : > { %6279 = vpow2.f32 %v3789_v23 }
 0x9a9   : > { %v2689_v27 = vpop.permute.xlu1 %2688 }
 0x9ad   : > { %v2694_v41 = vpop.permute.xlu1 %2693 }
 0x9ae   : > { %v6278_v22 = vpop.eup %6277  ;;  %v7893_v20 = vadd.f32 %v7781_v32, %v2694_v41 }
 0x9af   : > { %v3791_v45 = vsel %vm1271_vm3, %v6278_v22, 0.0 }
 0x9b0   : > { %v6280_v57 = vpop.eup %6279  ;;  %3792 = vadd.xlane.f32.xlu0 %v3791_v45  ;;  %v3868_v30 = vmul.f32 %v7893_v20, %v7893_v20  ;;  %v3059_v45 = vadd.f32 %v7795_v18, %v3003_v53 }
 0x9b1   : > { %v2684_v44 = vpop.permute.xlu1 %2683  ;;  %v3794_v49 = vsel %vm1271_vm3, %v6280_v57, 0.0 }
 0x9b2   : > { %v2754_v34 = vadd.f32 %v7771_v8, %v2684_v44  ;;  %v2756_v12 = vadd.f32 %v7773_v36, %v2684_v44  ;;  %v7896_v8 = vadd.f32 %v7777_v40, %v2689_v27  ;;  %v7899_v36 = vadd.f32 %v7779_v15, %v2694_v41 }
 0x9b3   : > { %v7905_v44 = vadd.f32 %v7775_v61, %v2689_v27 }
 0x9b4   : > { %3795 = vadd.xlane.f32.xlu0 %v3794_v49  ;;  %v3849_v54 = vmul.f32 %v2754_v34, %v2754_v34  ;;  %v3850_v50 = vmul.f32 %v2756_v12, %v2756_v12  ;;  %v3866_v32 = vmul.f32 %v7896_v8, %v7896_v8  ;;  %v3867_v15 = vmul.f32 %v7899_v36, %v7899_v36 }
 0x9b5   : > { %v3865_v18 = vmul.f32 %v7905_v44, %v7905_v44 }
 0x9b6   : > { %v3854_v59 = vadd.f32 %v3850_v50, %v3849_v54 }
 0x9b7   : > { %v5901_v27 = vpack.c.bf16 %v3867_v15, %v3865_v18 }
 0x9b8   : > { %3855 = vadd.xlane.f32.xlu1 %v3854_v59 }
 0x9ca   : > { %3007 = vperm.xlu0 %5994, %v2989_v48   ;;  %v5899_v48 = vpack.c.bf16 %v3868_v30, %v3866_v32 }
 0x9ce   : > { %2678 = vperm.xlu0 %5994, %v2670_v46  }
 0xa3d   : > { %v3793_v21 = vpop.xlane.xlu0 %3792 }
 0xa3e   : > { %6281 = vrcp.f32 %v3793_v21 }
 0xa41   : > { %v3796_v35 = vpop.xlane.xlu0 %3795 }
 0xa42   : > { %6283 = vrcp.f32 %v3796_v35 }
 0xa48   : > { %v6282_v23 = vpop.eup %6281 }
 0xa49   : > { %v3008_v7 = vpop.permute.xlu0 %3007  ;;  %v3799_v54 = vmul.f32 %v6282_v23, %v6278_v22 }
 0xa4a   : > { %v3062_v49 = vadd.f32 %v7797_v4, %v3008_v7 }
 0xa4c   : > { %v6284_v40 = vpop.eup %6283  ;;  %v3802_v41 = vpack.c.bf16 %v3062_v49, %v3059_v45 }
 0xa4d   : > { %v3800_v50 = vmul.f32 %v6284_v40, %v6280_v57  ;;  %v2679_v59 = vpop.permute.xlu0 %2678 }
 0xa4e   : > { %v2750_v61 = vadd.f32 %v7767_v37, %v2679_v59  ;;  %v2752_v53 = vadd.f32 %v7769_v62, %v2679_v59  ;;  %5802 = vmatpush3.bf16.msra.mxu1 %v3802_v41  ;;  %v3856_v37 = vpop.xlane.xlu1 %3855 }
 0xa4f   : > { %5900 = vmatprep.subr.bf16.mxu1 %v5899_v48  ;;  %v3801_v4 = vpack.c.bf16 %v3800_v50, %v3799_v54  ;;  %v3858_v62 = vmax.f32 %v3856_v37, 1e-24 }
 0xa50   : > { %v3847_v46 = vmul.f32 %v2750_v61, %v2750_v61  ;;  %v3848_v21 = vmul.f32 %v2752_v53, %v2752_v53 }
 0xa51   : > { %5804 = vmatmul.mubr.msk.bf16.vlgmr.msra.gmra.mrb[44].mxu1 %vm1271_vm3, %v3801_v4  ;;  %6285 = vrsqrt.f32 %v3858_v62 }
 0xa52   : > { %5902 = vmatpush1.bf16.msra.mxu1 %v5901_v27  ;;  %v3851_v22 = vadd.f32 %v3848_v21, %v3847_v46  ;;  %3933 = vmatprep.mubr.f32.mxu1 %v9642_v56 }
 0xa54   : > { %3852 = vadd.xlane.f32.xlu0 %v3851_v22 }
 0xa59   : > { %5636 = vmatmul.mubr.msk.f32.vlgmr.msra.gmra.mrb[42].mxu1 %vm1271_vm3, %v7849_v3 }
 0xa5a   : > { %3939 = vmatprep.mubr.f32.mxu1 %v9642_v56 }
 0xa5b   : > { %v6286_v30 = vpop.eup %6285 }
 0xa5c   : > { %v3864_v45 = vmul.f32 %v6286_v30, %v2756_v12  ;;  %v3863_v32 = vmul.f32 %v6286_v30, %v2754_v34  ;;  %v4081_v30 = vld [vmem:[%s9649_s11 + $0x18] sm:$0xff] }
 0xa5d   : > { %5637 = vmatmul.mubr.msk.f32.gmra.mrb[48].mxu1 %vm1271_vm3, %v7855_v39 }
 0xa5e   : > { %4067 = vmatprep.mubr.bf16.mxu1 %v9632_v17 }
 0xae1   : > { %v3853_v57 = vpop.xlane.xlu0 %3852 }
 0xae2   : > { %v3857_v35 = vmax.f32 %v3853_v57, 1e-24 }
 0xae4   : > { %6287 = vrsqrt.f32 %v3857_v35  ;;  %v4079_v35 = vld [vmem:[%s9649_s11 + $0x8] sm:$0xff] }
 0xaee   : > { %v6288_v7 = vpop.eup %6287 }
 0xaef   : > { %v3862_v23 = vmul.f32 %v6288_v7, %v2752_v53  ;;  %v3861_v49 = vmul.f32 %v6288_v7, %v2750_v61 }
 0xaf1   : > { %v3959_v40 = vpack.c.bf16 %v3864_v45, %v3862_v23  ;;  %v3958_v15 = vpack.c.bf16 %v3863_v32, %v3861_v49  ;;  %v5903_v32 = vpack.c.bf16 %v4081_v30, %v4079_v35 }
 0xaf3   : > { %3994 = vmatprep.mubr.bf16.mxu0 %v3959_v40  ;;  %v4078_v40 = vld [vmem:[%s9649_s11] sm:$0xff] }
 0xb24   : > { %v3840_v41 = vpop.f32.mrb[44].mxu1 }
 0xb25   : > { %v5805_v54 = vpop.f32.mrb[45].mxu1 }
 0xb26   : > { %v3843_v50 = vpop.f32.mrb[46].mxu1  ;;  %v4085_v54 = vld [vmem:[%s9649_s11 + $0x38] sm:$0xff] }
 0xb27   : > { %v5806_v59 = vpop.f32.mrb[47].mxu1 }
 0xb2c   : > { %v3935_v48 = vpop.f32.mrb[42].mxu1 }
 0xb2d   : > { %v3946_v18 = vmax.f32 %v3935_v48, 1e-24  ;;  %v3937_v4 = vpop.f32.mrb[43].mxu1  ;;  %v4082_v48 = vld [vmem:[%s9649_s11 + $0x20] sm:$0xff] }
 0xb2e   : > { %v3947_v27 = vmax.f32 %v3937_v4, 1e-24  ;;  %v4089_v4 = vld [vmem:[%s9649_s11 + $0x58] sm:$0xff] }
 0xb2f   : > { %6289 = vrsqrt.f32 %v3946_v18  ;;  %v4084_v18 = vld [vmem:[%s9649_s11 + $0x30] sm:$0xff] }
 0xb30   : > { %v3941_v46 = vpop.f32.mrb[48].mxu1  ;;  %6291 = vrsqrt.f32 %v3947_v27  ;;  %v5909_v27 = vpack.c.bf16 %v4084_v18, %v4082_v48 }
 0xb31   : > { %v3948_v21 = vmax.f32 %v3941_v46, 1e-24  ;;  %v3943_v53 = vpop.f32.mrb[49].mxu1 }
 0xb32   : > { %v3949_v12 = vmax.f32 %v3943_v53, 1e-24  ;;  %v4088_v53 = vld [vmem:[%s9649_s11 + $0x50] sm:$0xff] }
 0xb33   : > { %6293 = vrsqrt.f32 %v3948_v21  ;;  %v4086_v21 = vld [vmem:[%s9649_s11 + $0x40] sm:$0xff] }
 0xb34   : > { %6295 = vrsqrt.f32 %v3949_v12  ;;  %v4091_v12 = vld [vmem:[%s9649_s11 + $0x68] sm:$0xff] }
 0xb39   : > { %v6290_v34 = vpop.eup %6289 }
 0xb3a   : > { %v6292_v61 = vpop.eup %6291  ;;  %v3954_v62 = vmul.f32 %v6290_v34, %v7905_v44  ;;  %v4080_v44 = vld [vmem:[%s9649_s11 + $0x10] sm:$0xff]  ;;  %v4093_v34 = vld [vmem:[%s9649_s11 + $0x78] sm:$0xff] }
 0xb3b   : > { %v3955_v7 = vmul.f32 %v6292_v61, %v7896_v8  ;;  %v5905_v59 = vpack.c.bf16 %v4080_v44, %v4078_v40  ;;  %v5913_v61 = vpack.c.bf16 %v4088_v53, %v4086_v21  ;;  %v4177_v21 = vld [vmem:[%s9650_s10] sm:$0xff]  ;;  %v4178_v53 = vld [vmem:[%s9650_s10 + $0x8] sm:$0xff] }
 0xb3d   : > { %v6294_v22 = vpop.eup %6293 }
 0xb3e   : > { %v6296_v37 = vpop.eup %6295  ;;  %v3956_v57 = vmul.f32 %v6294_v22, %v7899_v36  ;;  %v4083_v36 = vld [vmem:[%s9649_s11 + $0x28] sm:$0xff]  ;;  %v5915_v22 = vpack.c.bf16 %v4093_v34, %v4091_v12  ;;  %v7988_v12 = vpack.c.bf16 %v4178_v53, %v4177_v21  ;;  %v4179_v34 = vld [vmem:[%s9650_s10 + $0x10] sm:$0xff] }
 0xb3f   : > { %v3957_v23 = vmul.f32 %v6296_v37, %v7893_v20  ;;  %v5907_v8 = vpack.c.bf16 %v4085_v54, %v4083_v36  ;;  %v4087_v20 = vld [vmem:[%s9649_s11 + $0x48] sm:$0xff]  ;;  %v4090_v37 = vld [vmem:[%s9649_s11 + $0x60] sm:$0xff] }
 0xb40   : > { %v3960_v45 = vpack.c.bf16 %v3956_v57, %v3954_v62  ;;  %v5911_v46 = vpack.c.bf16 %v4089_v4, %v4087_v20  ;;  %v4092_v62 = vld [vmem:[%s9649_s11 + $0x70] sm:$0xff]  ;;  %9652 = vst [vmem:[#allocation98_spill] sm:$0xff] %v7988_v12 }
 0xb41   : > { %v3961_v49 = vpack.c.bf16 %v3957_v23, %v3955_v7  ;;  %v5917_v57 = vpack.c.bf16 %v4092_v62, %v4090_v37  ;;  %v6504_v37 = vmov 1   ;;  %v2675_v62 = vld [vmem:[%s9648_s15 + $0x28] sm:$0xff] }
 0xb43   : > { %3962 = vmatprep.subr.bf16.mxu0 %v3961_v49 }
 0xb44   : > { %3963 = vmatpush1.bf16.xpose.msra.mxu0 %v3960_v45 }
 0xb45   : > { %5904 = vmatprep.subr.bf16.mxu0 %v5903_v32 }
 0xb4b   : > { %3995 = vmatmul.mubr.bf16.vlgmr.msra.gmra.mrb[36].mxu0 %v3958_v15 }
 0xb4c   : > { %5906 = vmatpush1.bf16.msra.mxu0 %v5905_v59  ;;  %4164 = vmatprep.mubr.f32.mxu0 %v9642_v56 }
 0xb4d   : > { %5908 = vmatprep.subr.bf16.mxu0 %v5907_v8 }
 0xb50   : > { %5910 = vmatpush1.bf16.msra.mxu0 %v5909_v27 }
 0xb51   : > { %5912 = vmatprep.subr.bf16.mxu0 %v5911_v46  ;;  %v2674_v46 = vld [vmem:[%s9648_s15 + $0x20] sm:$0xff] }
 0xb54   : > { %5914 = vmatpush1.bf16.msra.mxu0 %v5913_v61  ;;  %v4180_v61 = vld [vmem:[%s9650_s10 + $0x18] sm:$0xff] }
 0xb55   : > { %5916 = vmatprep.subr.bf16.mxu0 %v5915_v22  ;;  %v7994_v22 = vpack.c.bf16 %v4180_v61, %v4179_v34 }
 0xb57   : > { %9653 = vst [vmem:[#allocation99_spill] sm:$0xff] %v7994_v22 }
 0xb58   : > { %5918 = vmatpush1.bf16.msra.mxu0 %v5917_v57 }
 0xb5b   : > { %5639 = vmatmul.mubr.msk.f32.vlgmr.msra.gmra.mrb[40].mxu0 %vm3128_vm1, %v3840_v41 }
 0xb5c   : > { %4170 = vmatprep.mubr.f32.mxu0 %v9642_v56 }
 0xb5f   : > { %5640 = vmatmul.mubr.msk.f32.gmra.mrb[42].mxu0 %vm3128_vm1, %v3843_v50 }
 0xb60   : > { %4671 = vmatprep.mubr.bf16.mxu0 %v9632_v17 }
 0xc1e   : > { %v3996_v15 = vpop.f32.mrb[36].mxu0 }
 0xc1f   : > { %v4003_v35 = vmul.f32 %v3996_v15, %v7868_v28  ;;  %v3998_v30 = vpop.f32.mrb[37].mxu0 }
 0xc20   : > { %v3999_v7 = vpop.f32.mrb[38].mxu0  ;;  %v6505_v30 = vmov 2  }
 0xc21   : > { %v4005_v23 = vsel %vm3775_vm6, %v4003_v35, -1e+30  ;;  %v4004_v45 = vmul.f32 %v3999_v7, %v7872_v0  ;;  %v4001_v41 = vpop.f32.mrb[39].mxu0 }
 0xc22   : > { %v4007_v49 = vsel %vm1271_vm3, %v4005_v23, -inf  ;;  %v6508_v41 = vmov 5  }
 0xc23   : > { %v4006_v56 = vsel %vm3776_vm7, %v4004_v45, -1e+30  ;;  %4008 = vmax.xlane.f32.xlu0 %v4007_v49  ;;  %v6507_v45 = vmov 4   ;;  %v6509_v49 = vmov 6  }
 0xc24   : > { %v4010_v50 = vsel %vm1271_vm3, %v4006_v56, -inf }
 0xc27   : > { %4011 = vmax.xlane.f32.xlu0 %v4010_v50  ;;  %v6511_v50 = vmov 8  }
 0xc2e   : > { %v7961_v28 = vpop.f32.mrb[40].mxu0 }
 0xc2f   : > { %5443 = vst [vmem:[%s978_s7] sm:$0xff] %v7961_v28  ;;  %v7964_v3 = vpop.f32.mrb[41].mxu0 }
 0xc30   : > { %5444 = vst [vmem:[%s978_s7 + $0x8] sm:$0xff] %v7964_v3 }
 0xc32   : > { %v7967_v0 = vpop.f32.mrb[42].mxu0 }
 0xc33   : > { %5445 = vst [vmem:[%s978_s7 + $0x10] sm:$0xff] %v7967_v0  ;;  %v7972_v32 = vpop.f32.mrb[43].mxu0 }
 0xc34   : > { %5446 = vst [vmem:[%s978_s7 + $0x18] sm:$0xff] %v7972_v32  ;;  %s9651_s7 = sld [smem:[#allocation10_spill]] }
 0xc3a   : > { %v8000_v57 = vld [vmem:[%s9651_s7 + $0x8] sm:$0xff]  ;;  %v1442_v15 = vld [vmem:[%s9651_s7] sm:$0xff]  ;;  %v8005_v35 = vld [vmem:[%s9651_s7 + $0x10] sm:$0xff] }
 0xc3b   : > { %v1445_v7 = vld [vmem:[%s9651_s7 + $0x18] sm:$0xff] }
 0xcb0   : > { %v4009_v44 = vpop.xlane.xlu0 %4008 }
 0xcb1   : > { %v4013_v36 = vsub.f32 %v4005_v23, %v4009_v44  ;;  %v6506_v23 = vmov 3  }
 0xcb3   : > { %v4015_v54 = vmul.f32 1.442695, %v4013_v36 }
 0xcb4   : > { %v4012_v59 = vpop.xlane.xlu0 %4011 }
 0xcb5   : > { %6297 = vpow2.f32 %v4015_v54  ;;  %v4014_v8 = vsub.f32 %v4006_v56, %v4012_v59  ;;  %v6510_v56 = vmov 7  }
 0xcb7   : > { %v4017_v48 = vmul.f32 1.442695, %v4014_v8 }
 0xcb9   : > { %6299 = vpow2.f32 %v4017_v48 }
 0xcbf   : > { %v7977_v18 = vpop.eup %6297 }
 0xcc0   : > { %v4019_v20 = vsel %vm1271_vm3, %v7977_v18, 0.0 }
 0xcc1   : > { %4020 = vadd.xlane.f32.xlu1 %v4019_v20 }
 0xcc3   : > { %v7981_v4 = vpop.eup %6299 }
 0xcc4   : > { %v4022_v27 = vsel %vm1271_vm3, %v7981_v4, 0.0 }
 0xcc5   : > { %4023 = vadd.xlane.f32.xlu0 %v4022_v27 }
 0xcd2   : > { %2698 = vperm.xlu1 %5995, %v2674_v46  }
 0xcd6   : > { %4189 = vrot.lane.b32.xlu1 %v7988_v12, %s9516_s2  ;;  %v4461_v12 = vld [vmem:[%s9736_s3 + $0x10] sm:$0xff] }
 0xcd7   : > { %6237 = vset.pattern.permute.xlu1 %v6504_v37 }
 0xcda   : > { %4191 = vrot.lane.b32.xlu1 %v7994_v22, %s9516_s2  ;;  %s9654_s2 = sld [smem:[#allocation11_spill]] }
 0xcdb   : > { %2703 = vperm.xlu0 %5994, %v2675_v62  }
 0xcde   : > { %1511 = vperm.xlu1 %6237, %v8000_v57  }
 0xcdf   : > { %6236 = vset.pattern.permute.xlu0 %v6504_v37 }
 0xce0   : > { %1507 = vperm.xlu0 %6236, %v1442_v15   ;;  %v1446_v44 = vld [vmem:[%s9654_s2] sm:$0xff]  ;;  %v1449_v36 = vld [vmem:[%s9654_s2 + $0x18] sm:$0xff]  ;;  %v1447_v54 = vld [vmem:[%s9654_s2 + $0x8] sm:$0xff] }
 0xce1   : > { %v1448_v59 = vld [vmem:[%s9654_s2 + $0x10] sm:$0xff]  ;;  %s9667_s2 = smov 111  }
 0xce2   : > { %1515 = vperm.xlu1 %6237, %v8005_v35  }
 0xce4   : > { %6238 = vset.pattern.permute.xlu0 %v6505_v30 }
 0xce5   : > { %1596 = vperm.xlu0 %6238, %v1442_v15  }
 0xce6   : > { %6239 = vset.pattern.permute.xlu1 %v6505_v30 }
 0xce7   : > { %1600 = vperm.xlu1 %6239, %v8000_v57  }
 0xce9   : > { %1604 = vperm.xlu0 %6238, %v8005_v35  }
 0xceb   : > { %6240 = vset.pattern.permute.xlu1 %v6504_v37 }
 0xcec   : > { %1519 = vperm.xlu1 %6240, %v1445_v7  }
 0xced   : > { %6242 = vset.pattern.permute.xlu0 %v6506_v23 }
 0xcee   : > { %1689 = vperm.xlu0 %6242, %v8000_v57  }
 0xcf0   : > { %6241 = vset.pattern.permute.xlu1 %v6506_v23 }
 0xcf1   : > { %1685 = vperm.xlu1 %6241, %v1442_v15  }
 0xcf2   : > { %6245 = vset.pattern.permute.xlu0 %v6507_v45 }
 0xcf3   : > { %1774 = vperm.xlu0 %6245, %v1442_v15  }
 0xcf5   : > { %6243 = vset.pattern.permute.xlu1 %v6505_v30 }
 0xcf6   : > { %1608 = vperm.xlu1 %6243, %v1445_v7  }
 0xcf7   : > { %1782 = vperm.xlu0 %6245, %v8005_v35  }
 0xcfa   : > { %6244 = vset.pattern.permute.xlu1 %v6506_v23 }
 0xcfb   : > { %1693 = vperm.xlu1 %6244, %v8005_v35   ;;  %6249 = vset.pattern.permute.xlu0 %v6508_v41 }
 0xcfc   : > { %1867 = vperm.xlu0 %6249, %v8000_v57  }
 0xcff   : > { %6246 = vset.pattern.permute.xlu1 %v6507_v45 }
 0xd00   : > { %1778 = vperm.xlu1 %6246, %v8000_v57   ;;  %6252 = vset.pattern.permute.xlu0 %v6509_v49 }
 0xd01   : > { %1952 = vperm.xlu0 %6252, %v1442_v15  }
 0xd04   : > { %6247 = vset.pattern.permute.xlu1 %v6506_v23 }
 0xd05   : > { %1697 = vperm.xlu1 %6247, %v1445_v7   ;;  %1960 = vperm.xlu0 %6252, %v8005_v35  }
 0xd09   : > { %6248 = vset.pattern.permute.xlu1 %v6508_v41  ;;  %6256 = vset.pattern.permute.xlu0 %v6510_v56 }
 0xd0a   : > { %1863 = vperm.xlu1 %6248, %v1442_v15   ;;  %2045 = vperm.xlu0 %6256, %v8000_v57  }
 0xd0e   : > { %6250 = vset.pattern.permute.xlu1 %v6507_v45  ;;  %6259 = vset.pattern.permute.xlu0 %v6511_v50 }
 0xd0f   : > { %1786 = vperm.xlu1 %6250, %v1445_v7   ;;  %2130 = vperm.xlu0 %6259, %v1442_v15  }
 0xd13   : > { %6251 = vset.pattern.permute.xlu1 %v6508_v41  ;;  %2138 = vperm.xlu0 %6259, %v8005_v35  }
 0xd14   : > { %1871 = vperm.xlu1 %6251, %v8005_v35  }
 0xd17   : > { %6263 = vset.pattern.permute.xlu0 %v9632_v17 }
 0xd18   : > { %6253 = vset.pattern.permute.xlu1 %v6509_v49  ;;  %1452 = vperm.xlu0 %6263, %v1442_v15  }
 0xd19   : > { %1956 = vperm.xlu1 %6253, %v8000_v57  }
 0xd1c   : > { %1480 = vperm.xlu0 %6263, %v1446_v44  }
 0xd1d   : > { %6254 = vset.pattern.permute.xlu1 %v6508_v41 }
 0xd1e   : > { %1875 = vperm.xlu1 %6254, %v1445_v7  }
 0xd20   : > { %1467 = vperm.xlu0 %6263, %v1445_v7  }
 0xd22   : > { %6255 = vset.pattern.permute.xlu1 %v6510_v56 }
 0xd23   : > { %2041 = vperm.xlu1 %6255, %v1442_v15  }
 0xd24   : > { %1495 = vperm.xlu0 %6263, %v1449_v36  }
 0xd27   : > { %6257 = vset.pattern.permute.xlu1 %v6509_v49 }
 0xd28   : > { %1964 = vperm.xlu1 %6257, %v1445_v7  }
 0xd2c   : > { %6258 = vset.pattern.permute.xlu1 %v6510_v56 }
 0xd2d   : > { %2049 = vperm.xlu1 %6258, %v8005_v35  }
 0xd31   : > { %6260 = vset.pattern.permute.xlu1 %v6511_v50 }
 0xd32   : > { %2134 = vperm.xlu1 %6260, %v8000_v57  }
 0xd36   : > { %6261 = vset.pattern.permute.xlu1 %v6510_v56 }
 0xd37   : > { %2053 = vperm.xlu1 %6261, %v1445_v7  }
 0xd3b   : > { %6262 = vset.pattern.permute.xlu1 %v6511_v50 }
 0xd3c   : > { %2142 = vperm.xlu1 %6262, %v1445_v7  }
 0xd40   : > { %6264 = vset.pattern.permute.xlu1 %v9632_v17 }
 0xd41   : > { %1457 = vperm.xlu1 %6264, %v8000_v57  }
 0xd45   : > { %1462 = vperm.xlu1 %6264, %v8005_v35  }
 0xd49   : > { %1485 = vperm.xlu1 %6264, %v1447_v54  }
 0xd4d   : > { %1490 = vperm.xlu1 %6264, %v1448_v59  }
 0xd4e   : > { %v4021_v8 = vpop.xlane.xlu1 %4020 }
 0xd4f   : > { %6301 = vrcp.f32 %v4021_v8 }
 0xd52   : > { %v2699_v48 = vpop.permute.xlu1 %2698  ;;  %v4024_v20 = vpop.xlane.xlu0 %4023 }
 0xd53   : > { %6303 = vrcp.f32 %v4024_v20  ;;  %v2770_v34 = vadd.f32 %v7783_v6, %v2699_v48  ;;  %v2772_v61 = vadd.f32 %v7785_v38, %v2699_v48 }
 0xd56   : > { %v8031_v27 = vpop.permute.xlu1 %4189 }
 0xd59   : > { %v6302_v53 = vpop.eup %6301 }
 0xd5a   : > { %v8033_v46 = vpop.permute.xlu1 %4191  ;;  %v2704_v21 = vpop.permute.xlu0 %2703  ;;  %v4027_v30 = vmul.f32 %v6302_v53, %v7977_v18 }
 0xd5b   : > { %9655 = vst [vmem:[#allocation100_spill] sm:$0xff] %v8033_v46  ;;  %v2774_v37 = vadd.f32 %v7787_v60, %v2704_v21  ;;  %v2776_v62 = vadd.f32 %v7789_v42, %v2704_v21  ;;  %v9750_v46 = vld [vmem:[#allocation63_spill] sm:$0xff] }
 0xd5d   : > { %v6304_v57 = vpop.eup %6303  ;;  %v4030_v15 = vpack.c.bf16 %v2774_v37, %v2770_v34  ;;  %v4031_v35 = vpack.c.bf16 %v2776_v62, %v2772_v61 }
 0xd5e   : > { %v4028_v7 = vmul.f32 %v6304_v57, %v7981_v4  ;;  %v1512_v23 = vpop.permute.xlu1 %1511 }
 0xd5f   : > { %4035 = vmatprep.subr.bf16.mxu1 %v4031_v35  ;;  %v1508_v45 = vpop.permute.xlu0 %1507  ;;  %v1526_v60 = vmul.f32 %v1512_v23, %v7330_v58  ;;  %v1527_v42 = vmul.f32 %v1512_v23, %v7334_v10  ;;  %v9661_v35 = vld [vmem:[#allocation23_spill] sm:$0xff] }
 0xd60   : > { %v4029_v41 = vpack.c.bf16 %v4028_v7, %v4027_v30  ;;  %v1523_v49 = vmul.f32 %v1508_v45, %v7294_v43  ;;  %v1524_v6 = vmul.f32 %v1508_v45, %v7298_v9  ;;  %4036 = vmatpush1.bf16.msra.mxu1 %v4030_v15  ;;  %v1525_v43 = vmul.f32 %v1512_v23, %v7326_v16  ;;  %v9662_v7 = vld [vmem:[#allocation25_spill] sm:$0xff] }
 0xd61   : > { %v1522_v9 = vmul.f32 %v1508_v45, %v7304_v63 }
 0xd62   : > { %v1516_v38 = vpop.permute.xlu1 %1515  ;;  %1550 = vrot.lane.b32.xlu0 %v1524_v6, %s6494_s18  ;;  %1548 = vrot.lane.b32.xlu1 %v1523_v49, %s6494_s18 }
 0xd63   : > { %5638 = vmatmul.mubr.msk.bf16.vlgmr.msra.gmra.mrb[52].mxu1 %vm1271_vm3, %v4029_v41  ;;  %v1529_v58 = vmul.f32 %v1516_v38, %v6887_v1  ;;  %v1530_v10 = vmul.f32 %v1516_v38, %v6891_v2  ;;  %v1528_v2 = vmul.f32 %v1516_v38, %v6925_v25  ;;  %v9663_v41 = vld [vmem:[#allocation27_spill] sm:$0xff]  ;;  %v9665_v38 = vld [vmem:[#allocation26_spill] sm:$0xff] }
 0xd64   : > { %4231 = vmatprep.mubr.bf16.mxu1 %v9632_v17  ;;  %v1597_v56 = vpop.permute.xlu0 %1596 }
 0xd65   : > { %v1612_v50 = vmul.f32 %v1597_v56, %v7350_v5  ;;  %v1613_v16 = vmul.f32 %v1597_v56, %v7354_v51  ;;  %v1611_v5 = vmul.f32 %v1597_v56, %v7390_v33 }
 0xd66   : > { %v1601_v18 = vpop.permute.xlu1 %1600  ;;  %1556 = vrot.lane.b32.xlu0 %v1527_v42, %s6494_s18  ;;  %1554 = vrot.lane.b32.xlu1 %v1526_v60, %s6494_s18  ;;  %v9666_v42 = vld [vmem:[#allocation68_spill] sm:$0xff] }
 0xd67   : > { %v1615_v63 = vmul.f32 %v1601_v18, %v7346_v52  ;;  %v1616_v1 = vmul.f32 %v1601_v18, %v7364_v14  ;;  %v1614_v52 = vmul.f32 %v1601_v18, %v7384_v13 }
 0xd68   : > { %v1605_v54 = vpop.permute.xlu0 %1604 }
 0xd69   : > { %v1618_v25 = vmul.f32 %v1605_v54, %v6960_v11  ;;  %v1619_v8 = vmul.f32 %v1605_v54, %v6951_v31 }
 0xd6a   : > { %1552 = vrot.lane.b32.xlu0 %v1525_v43, %s6494_s18  ;;  %1546 = vrot.lane.b32.xlu1 %v1522_v9, %s6494_s18  ;;  %v9668_v9 = vld [vmem:[#allocation69_spill] sm:$0xff] }
 0xd6b   : > { %v1520_v4 = vpop.permute.xlu1 %1519 }
 0xd6c   : > { %v1532_v14 = vmul.f32 %v1520_v4, %v6929_v26  ;;  %v1533_v33 = vmul.f32 %v1520_v4, %v6921_v24 }
 0xd6d   : > { %v1690_v48 = vpop.permute.xlu0 %1689 }
 0xd6e   : > { %1562 = vrot.lane.b32.xlu0 %v1530_v10, %s6494_s18  ;;  %1560 = vrot.lane.b32.xlu1 %v1529_v58, %s6494_s18  ;;  %v1704_v11 = vmul.f32 %v1690_v48, %v7402_v55  ;;  %v1705_v31 = vmul.f32 %v1690_v48, %v7406_v29  ;;  %v9659_v55 = vld [vmem:[#allocation67_spill] sm:$0xff]  ;;  %v9660_v29 = vld [vmem:[#allocation66_spill] sm:$0xff] }
 0xd6f   : > { %v1703_v57 = vmul.f32 %v1690_v48, %v9660_v29  ;;  %v9669_v10 = vld [vmem:[#allocation70_spill] sm:$0xff] }
 0xd70   : > { %v1686_v44 = vpop.permute.xlu1 %1685 }
 0xd71   : > { %v1701_v13 = vmul.f32 %v1686_v44, %v7372_v19  ;;  %v1702_v20 = vmul.f32 %v1686_v44, %v7376_v47  ;;  %v9657_v19 = vld [vmem:[#allocation21_spill] sm:$0xff]  ;;  %v9658_v47 = vld [vmem:[#allocation22_spill] sm:$0xff]  ;;  %v1700_v37 = vmul.f32 %v1686_v44, %v9659_v55 }
 0xd72   : > { %1639 = vrot.lane.b32.xlu0 %v1613_v16, %s6495_s0  ;;  %1637 = vrot.lane.b32.xlu1 %v1612_v50, %s6495_s0  ;;  %v1531_v21 = vmul.f32 %v1520_v4, %v9657_v19  ;;  %v1775_v53 = vpop.permute.xlu0 %1774  ;;  %v1617_v61 = vmul.f32 %v1605_v54, %v9658_v47  ;;  %v9670_v16 = vld [vmem:[#allocation71_spill] sm:$0xff]  ;;  %v9672_v54 = vld [vmem:[#allocation30_spill] sm:$0xff] }
 0xd73   : > { %v1790_v18 = vmul.f32 %v1775_v53, %v9666_v42  ;;  %v1791_v4 = vmul.f32 %v1775_v53, %v9668_v9  ;;  %v9677_v47 = vld [vmem:[#allocation34_spill] sm:$0xff] }
 0xd75   : > { %v8065_v36 = vpop.permute.xlu1 %1608 }
 0xd76   : > { %1645 = vrot.lane.b32.xlu0 %v1616_v1, %s6495_s0  ;;  %1643 = vrot.lane.b32.xlu1 %v1615_v63, %s6495_s0  ;;  %v8110_v15 = vpop.permute.xlu0 %1782  ;;  %v1621_v30 = vmul.f32 %v8065_v36, %v9661_v35  ;;  %v1622_v23 = vmul.f32 %v8065_v36, %v9662_v7  ;;  %v9681_v7 = vld [vmem:[#allocation73_spill] sm:$0xff] }
 0xd7a   : > { %v8071_v51 = vpop.permute.xlu1 %1693  ;;  %1558 = vrot.lane.b32.xlu1 %v1528_v2, %s6494_s18  ;;  %1635 = vrot.lane.b32.xlu0 %v1611_v5, %s6495_s0 }
 0xd7b   : > { %v1707_v49 = vmul.f32 %v8071_v51, %v9663_v41  ;;  %v8122_v6 = vpop.permute.xlu0 %1867  ;;  %v1708_v60 = vmul.f32 %v8071_v51, %v9665_v38  ;;  %v9682_v41 = vld [vmem:[#allocation77_spill] sm:$0xff] }
 0xd7e   : > { %1641 = vrot.lane.b32.xlu1 %v1614_v52, %s6495_s0  ;;  %1566 = vrot.lane.b32.xlu0 %v1532_v14, %s6494_s18  ;;  %v9671_v52 = vld [vmem:[#allocation24_spill] sm:$0xff] }
 0xd7f   : > { %v8079_v59 = vpop.permute.xlu1 %1778  ;;  %v1620_v14 = vmul.f32 %v8065_v36, %v9671_v52  ;;  %v9675_v36 = vld [vmem:[#allocation31_spill] sm:$0xff] }
 0xd80   : > { %v8134_v58 = vpop.permute.xlu0 %1952  ;;  %v1793_v56 = vmul.f32 %v8079_v59, %v9669_v10  ;;  %v1794_v44 = vmul.f32 %v8079_v59, %v9670_v16 }
 0xd82   : > { %1568 = vrot.lane.b32.xlu1 %v1533_v33, %s6494_s18  ;;  %1649 = vrot.lane.b32.xlu0 %v1618_v25, %s6495_s0  ;;  %v1706_v25 = vmul.f32 %v8071_v51, %v9672_v54  ;;  %v9676_v51 = vld [vmem:[#allocation29_spill] sm:$0xff] }
 0xd84   : > { %v8087_v26 = vpop.permute.xlu1 %1697  ;;  %v8145_v1 = vpop.permute.xlu0 %1960 }
 0xd86   : > { %1651 = vrot.lane.b32.xlu1 %v1619_v8, %s6495_s0  ;;  %1726 = vrot.lane.b32.xlu0 %v1701_v13, %s9656_s1  ;;  %v9673_v13 = vld [vmem:[#allocation75_spill] sm:$0xff] }
 0xd87   : > { %v1789_v48 = vmul.f32 %v1775_v53, %v9673_v13  ;;  %v1711_v53 = vmul.f32 %v8087_v26, %v9676_v51  ;;  %v9688_v13 = vld [vmem:[#allocation33_spill] sm:$0xff] }
 0xd89   : > { %v8093_v24 = vpop.permute.xlu1 %1863  ;;  %v8156_v33 = vpop.permute.xlu0 %2045 }
 0xd8a   : > { %1728 = vrot.lane.b32.xlu1 %v1702_v20, %s9656_s1  ;;  %1732 = vrot.lane.b32.xlu0 %v1704_v11, %s9656_s1  ;;  %v9674_v20 = vld [vmem:[#allocation74_spill] sm:$0xff] }
 0xd8b   : > { %v1792_v11 = vmul.f32 %v8079_v59, %v9674_v20  ;;  %v9678_v59 = vld [vmem:[#allocation35_spill] sm:$0xff] }
 0xd8e   : > { %v8099_v34 = vpop.permute.xlu1 %1786  ;;  %1734 = vrot.lane.b32.xlu1 %v1705_v31, %s9656_s1  ;;  %1564 = vrot.lane.b32.xlu0 %v1531_v21, %s6494_s18  ;;  %s9664_s18 = sld [smem:[#allocation9_spill]]  ;;  %v1710_v31 = vmul.f32 %v8087_v26, %v9675_v36  ;;  %v8169_v21 = vpop.permute.xlu0 %2130 }
 0xd92   : > { %1647 = vrot.lane.b32.xlu1 %v1617_v61, %s6495_s0  ;;  %1724 = vrot.lane.b32.xlu0 %v1700_v37, %s9656_s1  ;;  %v1796_v61 = vmul.f32 %v8110_v15, %v9677_v47  ;;  %v1797_v37 = vmul.f32 %v8110_v15, %v9678_v59  ;;  %v8183_v29 = vpop.permute.xlu0 %2138 }
 0xd93   : > { %v8107_v62 = vpop.permute.xlu1 %1871 }
 0xd94   : > { %v4311_v63 = vld [vmem:[%s9664_s18] sm:$0xff]  ;;  %v4312_v5 = vld [vmem:[%s9664_s18 + $0x8] sm:$0xff]  ;;  %v4313_v9 = vld [vmem:[%s9664_s18 + $0x10] sm:$0xff] }
 0xd96   : > { %1730 = vrot.lane.b32.xlu1 %v1703_v57, %s9656_s1  ;;  %1655 = vrot.lane.b32.xlu0 %v1621_v30, %s6495_s0  ;;  %v9679_v57 = vld [vmem:[#allocation72_spill] sm:$0xff] }
 0xd97   : > { %v1879_v35 = vmul.f32 %v8093_v24, %v9679_v57  ;;  %v8195_v38 = vpop.permute.xlu0 %1452 }
 0xd98   : > { %v8118_v45 = vpop.permute.xlu1 %1956 }
 0xd9a   : > { %1657 = vrot.lane.b32.xlu1 %v1622_v23, %s6495_s0  ;;  %1738 = vrot.lane.b32.xlu0 %v1707_v49, %s9656_s1  ;;  %v1880_v23 = vmul.f32 %v8093_v24, %v9681_v7  ;;  %v1882_v49 = vmul.f32 %v8122_v6, %v9682_v41 }
 0xd9d   : > { %v8129_v43 = vpop.permute.xlu1 %1875 }
 0xd9e   : > { %1740 = vrot.lane.b32.xlu1 %v1708_v60, %s9656_s1  ;;  %1815 = vrot.lane.b32.xlu0 %v1790_v18, %s9667_s2  ;;  %v9683_v60 = vld [vmem:[#allocation78_spill] sm:$0xff] }
 0xd9f   : > { %v1883_v42 = vmul.f32 %v8122_v6, %v9683_v60 }
 0xda2   : > { %v8138_v50 = vpop.permute.xlu1 %2041  ;;  %1817 = vrot.lane.b32.xlu1 %v1791_v4, %s9667_s2  ;;  %1821 = vrot.lane.b32.xlu0 %v1793_v56, %s9667_s2  ;;  %v9684_v4 = vld [vmem:[#allocation28_spill] sm:$0xff]  ;;  %v8207_v56 = vpop.permute.xlu0 %1480 }
 0xda3   : > { %v1709_v10 = vmul.f32 %v8087_v26, %v9684_v4 }
 0xda6   : > { %1823 = vrot.lane.b32.xlu1 %v1794_v44, %s9667_s2  ;;  %4317 = vperm.xlu0 %6263, %v4311_v63   ;;  %v9685_v44 = vld [vmem:[#allocation32_spill] sm:$0xff] }
 0xda7   : > { %v8148_v2 = vpop.permute.xlu1 %1964  ;;  %v1795_v63 = vmul.f32 %v8110_v15, %v9685_v44  ;;  %v1799_v15 = vmul.f32 %v8099_v34, %v9688_v13 }
 0xdaa   : > { %4322 = vperm.xlu1 %6264, %v4312_v5   ;;  %1653 = vrot.lane.b32.xlu0 %v1620_v14, %s6495_s0  ;;  %s9680_s0 = smov 110   ;;  %v9686_v5 = vld [vmem:[#allocation79_spill] sm:$0xff]  ;;  %v9687_v14 = vld [vmem:[#allocation76_spill] sm:$0xff] }
 0xdab   : > { %v1878_v52 = vmul.f32 %v8093_v24, %v9686_v5  ;;  %v1881_v54 = vmul.f32 %v8122_v6, %v9687_v14  ;;  %v9690_v24 = vld [vmem:[#allocation36_spill] sm:$0xff] }
 0xdac   : > { %v8158_v8 = vpop.permute.xlu1 %2049  ;;  %v1885_v6 = vmul.f32 %v8107_v62, %v9690_v24  ;;  %v9701_v24 = vld [vmem:[#allocation43_spill] sm:$0xff] }
 0xdae   : > { %1736 = vrot.lane.b32.xlu1 %v1706_v25, %s9656_s1  ;;  %1813 = vrot.lane.b32.xlu0 %v1789_v48, %s9667_s2  ;;  %v8219_v25 = vpop.permute.xlu0 %1467  ;;  %v9689_v48 = vld [vmem:[#allocation39_spill] sm:$0xff] }
 0xdaf   : > { %v1800_v20 = vmul.f32 %v8099_v34, %v9689_v48 }
 0xdb1   : > { %v8167_v19 = vpop.permute.xlu1 %2134 }
 0xdb2   : > { %1819 = vrot.lane.b32.xlu1 %v1792_v11, %s9667_s2  ;;  %1744 = vrot.lane.b32.xlu0 %v1710_v31, %s9656_s1  ;;  %v8233_v11 = vpop.permute.xlu0 %1495  ;;  %v9691_v31 = vld [vmem:[#allocation37_spill] sm:$0xff] }
 0xdb3   : > { %v1886_v51 = vmul.f32 %v8107_v62, %v9691_v31 }
 0xdb6   : > { %v8177_v55 = vpop.permute.xlu1 %2053  ;;  %1746 = vrot.lane.b32.xlu1 %v1711_v53, %s9656_s1  ;;  %1827 = vrot.lane.b32.xlu0 %v1796_v61, %s9667_s2  ;;  %v9692_v53 = vld [vmem:[#allocation82_spill] sm:$0xff] }
 0xdb7   : > { %v1968_v47 = vmul.f32 %v8134_v58, %v9692_v53  ;;  %v9703_v53 = vld [vmem:[#allocation46_spill] sm:$0xff] }
 0xdba   : > { %1829 = vrot.lane.b32.xlu1 %v1797_v37, %s9667_s2  ;;  %1904 = vrot.lane.b32.xlu0 %v1879_v35, %s9680_s0  ;;  %v9693_v37 = vld [vmem:[#allocation83_spill] sm:$0xff]  ;;  %v9695_v35 = vld [vmem:[#allocation80_spill] sm:$0xff] }
 0xdbb   : > { %v8189_v30 = vpop.permute.xlu1 %2142  ;;  %v1969_v57 = vmul.f32 %v8134_v58, %v9693_v37  ;;  %v1971_v7 = vmul.f32 %v8118_v45, %v9695_v35 }
 0xdbe   : > { %1906 = vrot.lane.b32.xlu1 %v1880_v23, %s9680_s0  ;;  %1910 = vrot.lane.b32.xlu0 %v1882_v49, %s9680_s0  ;;  %v9696_v49 = vld [vmem:[#allocation81_spill] sm:$0xff] }
 0xdbf   : > { %v1972_v60 = vmul.f32 %v8118_v45, %v9696_v49 }
 0xdc0   : > { %v8201_v18 = vpop.permute.xlu1 %1457 }
 0xdc2   : > { %1912 = vrot.lane.b32.xlu1 %v1883_v42, %s9680_s0  ;;  %4327 = vperm.xlu0 %6263, %v4313_v9   ;;  %v4314_v42 = vld [vmem:[%s9664_s18 + $0x18] sm:$0xff] }
 0xdc4   : > { %v8209_v16 = vpop.permute.xlu1 %1462 }
 0xdc6   : > { %1742 = vrot.lane.b32.xlu1 %v1709_v10, %s9656_s1  ;;  %1825 = vrot.lane.b32.xlu0 %v1795_v63, %s9667_s2  ;;  %s9694_s1 = smov 96   ;;  %v9697_v10 = vld [vmem:[#allocation38_spill] sm:$0xff] }
 0xdc7   : > { %v1798_v44 = vmul.f32 %v8099_v34, %v9697_v10  ;;  %v9698_v63 = vld [vmem:[#allocation42_spill] sm:$0xff] }
 0xdc8   : > { %v8221_v26 = vpop.permute.xlu1 %1485  ;;  %v1884_v5 = vmul.f32 %v8107_v62, %v9698_v63  ;;  %v1888_v62 = vmul.f32 %v8129_v43, %v9701_v24  ;;  %v9708_v63 = vld [vmem:[#allocation89_spill] sm:$0xff]  ;;  %v9711_v24 = vld [vmem:[#allocation40_spill] sm:$0xff] }
 0xdca   : > { %1902 = vrot.lane.b32.xlu1 %v1878_v52, %s9680_s0  ;;  %1908 = vrot.lane.b32.xlu0 %v1881_v54, %s9680_s0  ;;  %v9699_v54 = vld [vmem:[#allocation87_spill] sm:$0xff] }
 0xdcb   : > { %v1967_v13 = vmul.f32 %v8134_v58, %v9699_v54  ;;  %v9709_v54 = vld [vmem:[#allocation90_spill] sm:$0xff] }
 0xdcc   : > { %v8235_v36 = vpop.permute.xlu1 %1490 }
 0xdce   : > { %1833 = vrot.lane.b32.xlu1 %v1799_v15, %s9667_s2  ;;  %1835 = vrot.lane.b32.xlu0 %v1800_v20, %s9667_s2  ;;  %v9700_v15 = vld [vmem:[#allocation86_spill] sm:$0xff] }
 0xdcf   : > { %v1970_v34 = vmul.f32 %v8118_v45, %v9700_v15  ;;  %v1974_v45 = vmul.f32 %v8145_v1, %v9703_v53 }
 0xdd2   : > { %1916 = vrot.lane.b32.xlu1 %v1885_v6, %s9680_s0  ;;  %1918 = vrot.lane.b32.xlu0 %v1886_v51, %s9680_s0  ;;  %v9702_v6 = vld [vmem:[#allocation41_spill] sm:$0xff] }
 0xdd3   : > { %v1889_v58 = vmul.f32 %v8129_v43, %v9702_v6  ;;  %v9712_v6 = vld [vmem:[#allocation44_spill] sm:$0xff] }
 0xdd4   : > { %v8243_v61 = vpop.permute.xlu1 %1548  ;;  %v8245_v59 = vpop.permute.xlu0 %1550 }
 0xdd6   : > { %1993 = vrot.lane.b32.xlu1 %v1968_v47, %s9694_s1  ;;  %1995 = vrot.lane.b32.xlu0 %v1969_v57, %s9694_s1  ;;  %v9704_v47 = vld [vmem:[#allocation47_spill] sm:$0xff] }
 0xdd7   : > { %v1975_v37 = vmul.f32 %v8145_v1, %v9704_v47  ;;  %v9713_v47 = vld [vmem:[#allocation91_spill] sm:$0xff] }
 0xdd8   : > { %v8253_v23 = vpop.permute.xlu1 %1554  ;;  %v8255_v41 = vpop.permute.xlu0 %1556 }
 0xdda   : > { %1999 = vrot.lane.b32.xlu1 %v1971_v7, %s9694_s1  ;;  %2001 = vrot.lane.b32.xlu0 %v1972_v60, %s9694_s1  ;;  %v9705_v7 = vld [vmem:[#allocation84_spill] sm:$0xff]  ;;  %v9707_v60 = vld [vmem:[#allocation85_spill] sm:$0xff] }
 0xddb   : > { %v2057_v49 = vmul.f32 %v8138_v50, %v9705_v7  ;;  %v9714_v7 = vld [vmem:[#allocation88_spill] sm:$0xff] }
 0xddc   : > { %v8262_v9 = vpop.permute.xlu1 %1546  ;;  %v8264_v4 = vpop.permute.xlu0 %1552 }
 0xdde   : > { %4332 = vperm.xlu1 %6264, %v4314_v42   ;;  %1831 = vrot.lane.b32.xlu0 %v1798_v44, %s9667_s2  ;;  %s9706_s2 = smov 95   ;;  %v2058_v42 = vmul.f32 %v8138_v50, %v9707_v60  ;;  %v9715_v60 = vld [vmem:[#allocation45_spill] sm:$0xff] }
 0xde0   : > { %v8271_v52 = vpop.permute.xlu1 %1560  ;;  %v8273_v14 = vpop.permute.xlu0 %1562 }
 0xde2   : > { %1914 = vrot.lane.b32.xlu1 %v1884_v5, %s9680_s0  ;;  %1991 = vrot.lane.b32.xlu0 %v1967_v13, %s9694_s1  ;;  %v2060_v5 = vmul.f32 %v8156_v33, %v9708_v63  ;;  %v2061_v13 = vmul.f32 %v8156_v33, %v9709_v54  ;;  %v9716_v63 = vld [vmem:[#allocation51_spill] sm:$0xff]  ;;  %v9717_v54 = vld [vmem:[#allocation48_spill] sm:$0xff] }
 0xde4   : > { %v8281_v48 = vpop.permute.xlu1 %1637  ;;  %v8283_v20 = vpop.permute.xlu0 %1639 }
 0xde6   : > { %1997 = vrot.lane.b32.xlu1 %v1970_v34, %s9694_s1  ;;  %1922 = vrot.lane.b32.xlu0 %v1888_v62, %s9680_s0  ;;  %v1887_v62 = vmul.f32 %v8129_v43, %v9711_v24  ;;  %v2059_v43 = vmul.f32 %v8156_v33, %v9714_v7  ;;  %v9718_v24 = vld [vmem:[#allocation49_spill] sm:$0xff]  ;;  %v9721_v7 = vld [vmem:[#allocation95_spill] sm:$0xff] }
 0xde8   : > { %v8291_v31 = vpop.permute.xlu1 %1643  ;;  %v8293_v51 = vpop.permute.xlu0 %1645 }
 0xdea   : > { %1924 = vrot.lane.b32.xlu1 %v1889_v58, %s9680_s0  ;;  %2005 = vrot.lane.b32.xlu0 %v1974_v45, %s9694_s1  ;;  %v1973_v58 = vmul.f32 %v8145_v1, %v9712_v6 }
 0xdec   : > { %v8301_v57 = vpop.permute.xlu1 %1558  ;;  %v8303_v35 = vpop.permute.xlu0 %1635 }
 0xdee   : > { %2007 = vrot.lane.b32.xlu1 %v1975_v37, %s9694_s1  ;;  %2082 = vrot.lane.b32.xlu0 %v2057_v49, %s9706_s2  ;;  %v2056_v37 = vmul.f32 %v8138_v50, %v9713_v47  ;;  %v1978_v50 = vmul.f32 %v8148_v2, %v9716_v63 }
 0xdf0   : > { %v8311_v10 = vpop.permute.xlu1 %1641  ;;  %v8313_v44 = vpop.permute.xlu0 %1566 }
 0xdf2   : > { %2084 = vrot.lane.b32.xlu1 %v2058_v42, %s9706_s2  ;;  %2088 = vrot.lane.b32.xlu0 %v2060_v5, %s9706_s2  ;;  %v1977_v42 = vmul.f32 %v8148_v2, %v9715_v60 }
 0xdf4   : > { %v8321_v15 = vpop.permute.xlu1 %1568  ;;  %v8323_v34 = vpop.permute.xlu0 %1649 }
 0xdf5   : > { %9710 = vst [vmem:[#allocation21_spill] sm:$0xff] %v8321_v15 }
 0xdf6   : > { %2090 = vrot.lane.b32.xlu1 %v2061_v13, %s9706_s2  ;;  %1920 = vrot.lane.b32.xlu0 %v1887_v62, %s9680_s0  ;;  %v2063_v13 = vmul.f32 %v8158_v8, %v9717_v54  ;;  %v2064_v62 = vmul.f32 %v8158_v8, %v9718_v24  ;;  %s9720_s0 = smov 94   ;;  %v9723_v54 = vld [vmem:[#allocation93_spill] sm:$0xff] }
 0xdf8   : > { %v8331_v53 = vpop.permute.xlu1 %1651  ;;  %v8333_v45 = vpop.permute.xlu0 %1726 }
 0xdfa   : > { %2003 = vrot.lane.b32.xlu1 %v1973_v58, %s9694_s1  ;;  %2080 = vrot.lane.b32.xlu0 %v2056_v37, %s9706_s2  ;;  %v9719_v58 = vld [vmem:[#allocation94_spill] sm:$0xff] }
 0xdfb   : > { %v2146_v47 = vmul.f32 %v8169_v21, %v9719_v58 }
 0xdfc   : > { %v8341_v49 = vpop.permute.xlu1 %1728  ;;  %v8345_v1 = vpop.permute.xlu0 %1732 }
 0xdfe   : > { %2086 = vrot.lane.b32.xlu1 %v2059_v43, %s9706_s2  ;;  %2011 = vrot.lane.b32.xlu0 %v1977_v42, %s9694_s1  ;;  %v2147_v43 = vmul.f32 %v8169_v21, %v9721_v7  ;;  %v9722_v42 = vld [vmem:[#allocation92_spill] sm:$0xff]  ;;  %v9726_v7 = vld [vmem:[#allocation54_spill] sm:$0xff] }
 0xdff   : > { %v2149_v63 = vmul.f32 %v8167_v19, %v9722_v42  ;;  %v2062_v42 = vmul.f32 %v8158_v8, %v9726_v7  ;;  %v9730_v8 = vld [vmem:[#allocation53_spill] sm:$0xff] }
 0xe00   : > { %v8351_v5 = vpop.permute.xlu1 %1734  ;;  %v8355_v33 = vpop.permute.xlu0 %1564 }
 0xe02   : > { %2013 = vrot.lane.b32.xlu1 %v1978_v50, %s9694_s1  ;;  %2094 = vrot.lane.b32.xlu0 %v2063_v13, %s9706_s2  ;;  %v2150_v13 = vmul.f32 %v8167_v19, %v9723_v54 }
 0xe04   : > { %v8361_v6 = vpop.permute.xlu1 %1647  ;;  %v8365_v37 = vpop.permute.xlu0 %1724 }
 0xe06   : > { %2096 = vrot.lane.b32.xlu1 %v2064_v62, %s9706_s2  ;;  %2171 = vrot.lane.b32.xlu0 %v2146_v47, %s9720_s0  ;;  %v9725_v62 = vld [vmem:[#allocation50_spill] sm:$0xff] }
 0xe07   : > { %v1976_v58 = vmul.f32 %v8148_v2, %v9725_v62  ;;  %v9728_v2 = vld [vmem:[#allocation96_spill] sm:$0xff] }
 0xe08   : > { %v8371_v60 = vpop.permute.xlu1 %1730  ;;  %v8375_v50 = vpop.permute.xlu0 %1655  ;;  %v2148_v62 = vmul.f32 %v8167_v19, %v9728_v2 }
 0xe0a   : > { %2173 = vrot.lane.b32.xlu1 %v2147_v43, %s9720_s0  ;;  %2177 = vrot.lane.b32.xlu0 %v2149_v63, %s9720_s0  ;;  %v9727_v63 = vld [vmem:[#allocation97_spill] sm:$0xff] }
 0xe0b   : > { %v2145_v39 = vmul.f32 %v8169_v21, %v9727_v63  ;;  %v2067_v21 = vmul.f32 %v8177_v55, %v9730_v8 }
 0xe0c   : > { %v8381_v24 = vpop.permute.xlu1 %1657  ;;  %v8385_v47 = vpop.permute.xlu0 %1738 }
 0xe0d   : > { %9724 = vst [vmem:[#allocation22_spill] sm:$0xff] %v8381_v24 }
 0xe0e   : > { %2179 = vrot.lane.b32.xlu1 %v2150_v13, %s9720_s0  ;;  %2009 = vrot.lane.b32.xlu0 %v1976_v58, %s9694_s1  ;;  %v9729_v13 = vld [vmem:[#allocation55_spill] sm:$0xff]  ;;  %s9732_s1 = sld [smem:[#allocation12_spill]] }
 0xe0f   : > { %v2066_v58 = vmul.f32 %v8177_v55, %v9729_v13 }
 0xe10   : > { %v8391_v43 = vpop.permute.xlu1 %1740  ;;  %v1816_v54 = vpop.permute.xlu0 %1815 }
 0xe12   : > { %2092 = vrot.lane.b32.xlu1 %v2062_v42, %s9706_s2  ;;  %2169 = vrot.lane.b32.xlu0 %v2145_v39, %s9720_s0  ;;  %v9731_v39 = vld [vmem:[#allocation58_spill] sm:$0xff] }
 0xe13   : > { %v2152_v63 = vmul.f32 %v8183_v29, %v9731_v39  ;;  %v9738_v39 = vld [vmem:[#allocation61_spill] sm:$0xff] }
 0xe14   : > { %v1818_v40 = vpop.permute.xlu1 %1817  ;;  %v1822_v7 = vpop.permute.xlu0 %1821 }
 0xe15   : > { %v8402_v22 = vsel %vm1837_vm11, %v1816_v54, %v1818_v40  ;;  %v9733_v40 = vld [vmem:[#allocation59_spill] sm:$0xff] }
 0xe16   : > { %2175 = vrot.lane.b32.xlu1 %v2148_v62, %s9720_s0  ;;  %2100 = vrot.lane.b32.xlu0 %v2066_v58, %s9706_s2  ;;  %v2153_v2 = vmul.f32 %v8183_v29, %v9733_v40  ;;  %v9734_v62 = vld [vmem:[#allocation52_spill] sm:$0xff] }
 0xe17   : > { %v2065_v13 = vmul.f32 %v8177_v55, %v9734_v62  ;;  %v9735_v58 = vld [vmem:[#allocation56_spill] sm:$0xff]  ;;  %v4428_v62 = vld [vmem:[%s9732_s1 + $0x8] sm:$0xff] }
 0xe18   : > { %v1824_v42 = vpop.permute.xlu1 %1823  ;;  %v2151_v8 = vmul.f32 %v8183_v29, %v9735_v58  ;;  %v9739_v55 = vld [vmem:[#allocation60_spill] sm:$0xff]  ;;  %v4427_v29 = vld [vmem:[%s9732_s1] sm:$0xff] }
 0xe19   : > { %v8411_v19 = vsel %vm1837_vm11, %v1822_v7, %v1824_v42  ;;  %v9737_v42 = vld [vmem:[#allocation57_spill] sm:$0xff]  ;;  %v2154_v40 = vmul.f32 %v8189_v30, %v9739_v55  ;;  %v4430_v55 = vld [vmem:[%s9732_s1 + $0x18] sm:$0xff] }
 0xe1a   : > { %2102 = vrot.lane.b32.xlu1 %v2067_v21, %s9706_s2  ;;  %2183 = vrot.lane.b32.xlu0 %v2152_v63, %s9720_s0  ;;  %v2155_v21 = vmul.f32 %v8189_v30, %v9737_v42  ;;  %v2156_v63 = vmul.f32 %v8189_v30, %v9738_v39  ;;  %v4460_v42 = vld [vmem:[%s9736_s3 + $0x8] sm:$0xff] }
 0xe1e   : > { %2185 = vrot.lane.b32.xlu1 %v2153_v2, %s9720_s0  ;;  %2098 = vrot.lane.b32.xlu0 %v2065_v13, %s9706_s2  ;;  %s9746_s2 = sshll.u32 %s9791_s23, 5 }
 0xe22   : > { %2181 = vrot.lane.b32.xlu1 %v2151_v8, %s9720_s0  ;;  %2189 = vrot.lane.b32.xlu0 %v2155_v21, %s9720_s0  ;;  %v4459_v8 = vld [vmem:[%s9736_s3] sm:$0xff] }
 0xe25   : > { %v8431_v2 = vpop.permute.xlu0 %4317 }
 0xe26   : > { %9740 = vst [vmem:[#allocation67_spill] sm:$0xff] %v8431_v2  ;;  %2191 = vrot.lane.b32.xlu1 %v2156_v63, %s9720_s0  ;;  %2187 = vrot.lane.b32.xlu0 %v2154_v40, %s9720_s0  ;;  %v4429_v63 = vld [vmem:[%s9732_s1 + $0x10] sm:$0xff]  ;;  %v9743_v40 = vld [vmem:[#allocation17_spill] sm:$0xff]  ;;  %s8473_s0 = scalar_lea.vmem %s6675_s20, %s9746_s2  ;;  %s9747_s1 = sld [smem:[#allocation15_spill]] }
 0xe27   : > { %s9780_s2 = sld [smem:[#allocation16_spill]] }
 0xe29   : > { %v8437_v13 = vpop.permute.xlu1 %4322  ;;  %v8439_v58 = vpop.permute.xlu0 %1653 }
 0xe2a   : > { %9741 = vst [vmem:[#allocation66_spill] sm:$0xff] %v8437_v13  ;;  %4433 = vperm.xlu1 %6264, %v4427_v29   ;;  %4438 = vperm.xlu0 %6263, %v4428_v62   ;;  %v1475_v29 = vmul.f32 %v8209_v16, %v9743_v40  ;;  %v1576_v13 = vsel %vm1570_vm8, %v8271_v52, %v8273_v14 }
 0xe2b   : > { %v1572_v40 = vsel %vm1570_vm8, %v8243_v61, %v8245_v59  ;;  %v1665_v14 = vsel %vm1659_vm9, %v8323_v34, %v8331_v53  ;;  %v1754_v59 = vsel %vm1748_vm10, %v8385_v47, %v8391_v43  ;;  %v1574_v43 = vsel %vm1570_vm8, %v8253_v23, %v8255_v41 }
 0xe2c   : > { %v4519_v24 = vld [vmem:[%s9747_s1] sm:$0xff]  ;;  %v1470_v41 = vmul.f32 %v8195_v38, %v9750_v46 }
 0xe2d   : > { %v8443_v21 = vpop.permute.xlu1 %1736  ;;  %v1814_v30 = vpop.permute.xlu0 %1813 }
 0xe2e   : > { %4465 = vperm.xlu1 %6264, %v4459_v8   ;;  %v8446_v39 = vsel %vm1837_vm11, %v1814_v30, %v1816_v54  ;;  %4470 = vperm.xlu0 %6263, %v4460_v42   ;;  %v9745_v54 = vld [vmem:[#allocation62_spill] sm:$0xff]  ;;  %v1503_v30 = vadd.f32 %v8235_v36, %v1475_v29  ;;  %v1498_v46 = vadd.f32 %v8207_v56, %v1470_v41 }
 0xe2f   : > { %9742 = vst [vmem:[#allocation23_spill] sm:$0xff] %v8446_v39  ;;  %v1471_v42 = vmul.f32 %v8195_v38, %v9745_v54  ;;  %v1752_v38 = vsel %vm1748_vm10, %v8345_v1, %v8351_v5  ;;  %v1664_v41 = vsel %vm1659_vm9, %v8361_v6, %v8323_v34  ;;  %v1666_v34 = vsel %vm1659_vm9, %v8439_v58, %v8375_v50 }
 0xe31   : > { %v1820_v62 = vpop.permute.xlu1 %1819  ;;  %v8458_v8 = vpop.permute.xlu0 %1744 }
 0xe32   : > { %v8456_v2 = vsel %vm1837_vm11, %v1820_v62, %v1822_v7  ;;  %4443 = vperm.xlu1 %6264, %v4429_v63   ;;  %4448 = vperm.xlu0 %6263, %v4430_v55   ;;  %v4462_v7 = vld [vmem:[%s9736_s3 + $0x18] sm:$0xff]  ;;  %v1499_v63 = vadd.f32 %v8207_v56, %v1471_v42  ;;  %v1592_v62 = vadd.f32 %v1576_v13, %v1503_v30 }
 0xe33   : > { %9744 = vst [vmem:[#allocation25_spill] sm:$0xff] %v8456_v2  ;;  %v1661_v55 = vsel %vm1659_vm9, %v8281_v48, %v8283_v20  ;;  %v9749_v13 = vld [vmem:[#allocation64_spill] sm:$0xff] }
 0xe34   : > { %v1473_v42 = vmul.f32 %v8201_v18, %v9749_v13  ;;  %v1588_v30 = vadd.f32 %v1572_v40, %v1499_v63  ;;  %v1681_v39 = vadd.f32 %v1665_v14, %v1592_v62 }
 0xe35   : > { %v1747_v29 = vpop.permute.xlu1 %1746  ;;  %v8487_v54 = vpop.permute.xlu0 %1827 }
 0xe36   : > { %v8485_v53 = vsel %vm1748_vm10, %v8458_v8, %v1747_v29  ;;  %v4069_v2 = vpop.f32.mrb[52].mxu1  ;;  %4475 = vperm.xlu1 %6264, %v4461_v12   ;;  %4480 = vperm.xlu0 %6263, %v4462_v7   ;;  %v1750_v29 = vsel %vm1748_vm10, %v8333_v45, %v8341_v49  ;;  %v1501_v13 = vadd.f32 %v8221_v26, %v1473_v42 }
 0xe37   : > { %9748 = vst [vmem:[#allocation27_spill] sm:$0xff] %v8485_v53  ;;  %5447 = vst [vmem:[%s8473_s0] sm:$0xff] %v4069_v2  ;;  %v4071_v20 = vpop.f32.mrb[53].mxu1  ;;  %v4520_v53 = vld [vmem:[%s9747_s1 + $0x8] sm:$0xff]  ;;  %v1677_v40 = vadd.f32 %v1661_v55, %v1588_v30  ;;  %v1770_v14 = vadd.f32 %v1754_v59, %v1681_v39  ;;  %v1663_v49 = vsel %vm1659_vm9, %v8291_v31, %v8293_v51  ;;  %v4521_v30 = vld [vmem:[%s9747_s1 + $0x10] sm:$0xff] }
 0xe38   : > { %5448 = vst [vmem:[%s8473_s0 + $0x8] sm:$0xff] %v4071_v20  ;;  %v4073_v12 = vpop.f32.mrb[54].mxu1  ;;  %v4522_v51 = vld [vmem:[%s9747_s1 + $0x18] sm:$0xff] }
 0xe39   : > { %v4185_v7 = vpack.c.bf16 %v4073_v12, %v4069_v2  ;;  %5449 = vst [vmem:[%s8473_s0 + $0x10] sm:$0xff] %v4073_v12  ;;  %v4075_v63 = vpop.f32.mrb[55].mxu1  ;;  %v1830_v62 = vpop.permute.xlu1 %1829  ;;  %v1590_v2 = vadd.f32 %v1574_v43, %v1501_v13  ;;  %v1766_v39 = vadd.f32 %v1750_v29, %v1677_v40  ;;  %v9753_v13 = vld [vmem:[#allocation18_spill] sm:$0xff] }
 0xe3a   : > { %v4186_v15 = vpack.c.bf16 %v4075_v63, %v4071_v20  ;;  %5450 = vst [vmem:[%s8473_s0 + $0x18] sm:$0xff] %v4075_v63  ;;  %v1843_v42 = vsel %vm1837_vm11, %v8487_v54, %v1830_v62  ;;  %v8511_v55 = vpop.permute.xlu0 %1904  ;;  %4537 = vperm.xlu1 %6264, %v4519_v24   ;;  %4542 = vperm.xlu0 %6263, %v4520_v53   ;;  %v9751_v20 = vld [vmem:[#allocation20_spill] sm:$0xff]  ;;  %v9752_v63 = vld [vmem:[#allocation65_spill] sm:$0xff]  ;;  %s9781_s0 = sshll.u32 %s9791_s23, 6 }
 0xe3b   : > { %v8513_v59 = vadd.f32 %v1843_v42, %v1770_v14  ;;  %v1476_v12 = vmul.f32 %v8219_v25, %v9751_v20  ;;  %v1472_v24 = vmul.f32 %v8201_v18, %v9752_v63  ;;  %v1679_v43 = vadd.f32 %v1663_v49, %v1590_v2  ;;  %v4526_v2 = vld [vmem:[%s9747_s1 + $0x38] sm:$0xff] }
 0xe3c   : > { %4199 = vmatprep.subr.bf16.mxu1 %v4186_v15  ;;  %v1855_v29 = vadd.f32 %v8402_v22, %v1766_v39  ;;  %v1474_v56 = vmul.f32 %v8209_v16, %v9753_v13  ;;  %v1571_v15 = vsel %vm1570_vm8, %v8262_v9, %v8243_v61  ;;  %v9754_v18 = vpack.c.bf16 %v7972_v32, %v7964_v3  ;;  %v4523_v61 = vld [vmem:[%s9747_s1 + $0x20] sm:$0xff]  ;;  %v9760_v13 = vld [vmem:[#allocation23_spill] sm:$0xff] }
 0xe3d   : > { %4200 = vmatpush1.bf16.msra.mxu1 %v4185_v7  ;;  %v1907_v53 = vpop.permute.xlu1 %1906  ;;  %v1504_v22 = vadd.f32 %v8233_v11, %v1476_v12  ;;  %v1575_v16 = vsel %vm1570_vm8, %v8301_v57, %v8271_v52  ;;  %v1768_v14 = vadd.f32 %v1752_v38, %v1679_v43  ;;  %v1500_v9 = vadd.f32 %v8221_v26, %v1472_v24  ;;  %v4524_v52 = vld [vmem:[%s9747_s1 + $0x28] sm:$0xff] }
 0xe3e   : > { %v1928_v5 = vsel %vm1926_vm12, %v8511_v55, %v1907_v53  ;;  %v8533_v40 = vpop.permute.xlu0 %1910  ;;  %4547 = vperm.xlu1 %6264, %v4521_v30   ;;  %4258 = vmatprep.subr.bf16.mxu1 %v9754_v18  ;;  %v1502_v62 = vadd.f32 %v8235_v36, %v1474_v56  ;;  %v1573_v3 = vsel %vm1570_vm8, %v8264_v4, %v8253_v23  ;;  %v9759_v53 = vld [vmem:[#allocation22_spill] sm:$0xff] }
 0xe3f   : > { %v8542_v7 = vadd.f32 %v1928_v5, %v1855_v29  ;;  %4552 = vperm.xlu0 %6263, %v4522_v51   ;;  %v1577_v32 = vsel %vm1570_vm8, %v8355_v33, %v8313_v44  ;;  %v1587_v57 = vadd.f32 %v1571_v15, %v1498_v46  ;;  %v1857_v26 = vadd.f32 %v8411_v19, %v1768_v14  ;;  %v4528_v29 = vld [vmem:[%s9747_s1 + $0x48] sm:$0xff] }
 0xe40   : > { %5641 = vmatmul.mubr.msk.bf16.vlgmr.msra.gmra.mrb[56].mxu1 %vm1271_vm3, %v8031_v27  ;;  %v9755_v23 = vpack.c.bf16 %v7967_v0, %v7961_v28  ;;  %v1591_v4 = vadd.f32 %v1575_v16, %v1502_v62  ;;  %v1660_v27 = vsel %vm1659_vm9, %v8303_v35, %v8281_v48  ;;  %v1662_v28 = vsel %vm1659_vm9, %v8311_v10, %v8291_v31  ;;  %v4525_v35 = vld [vmem:[%s9747_s1 + $0x30] sm:$0xff]  ;;  %v4530_v62 = vld [vmem:[%s9747_s1 + $0x58] sm:$0xff] }
 0xe41   : > { %v1913_v36 = vpop.permute.xlu1 %1912  ;;  %4241 = vmatprep.mubr.bf16.mxu1 %v9632_v17  ;;  %v1593_v0 = vadd.f32 %v1577_v32, %v1504_v22  ;;  %v1753_v19 = vsel %vm1748_vm10, %v8443_v21, %v8385_v47  ;;  %v1589_v58 = vadd.f32 %v1573_v3, %v1500_v9  ;;  %v1749_v42 = vsel %vm1748_vm10, %v8365_v37, %v8333_v45  ;;  %v9756_v47 = vld [vmem:[#allocation19_spill] sm:$0xff]  ;;  %v9757_v45 = vld [vmem:[#allocation21_spill] sm:$0xff] }
 0xe42   : > { %4259 = vmatpush1.bf16.msra.mxu1 %v9755_v23  ;;  %v1930_v33 = vsel %vm1926_vm12, %v8533_v40, %v1913_v36  ;;  %v8572_v6 = vpop.permute.xlu0 %4327  ;;  %4557 = vperm.xlu1 %6264, %v4523_v61   ;;  %v1680_v49 = vadd.f32 %v1664_v41, %v1591_v4  ;;  %v1676_v39 = vadd.f32 %v1660_v27, %v1587_v57  ;;  %v9762_v32 = vld [vmem:[#allocation27_spill] sm:$0xff]  ;;  %v4531_v41 = vld [vmem:[%s9747_s1 + $0x60] sm:$0xff]  ;;  %v9763_v36 = vld [vmem:[#allocation98_spill] sm:$0xff] }
 0xe43   : > { %v8580_v48 = vadd.f32 %v1930_v33, %v1857_v26  ;;  %4562 = vperm.xlu0 %6263, %v4524_v52   ;;  %v1751_v31 = vsel %vm1748_vm10, %v8371_v60, %v8345_v1  ;;  %v1682_v10 = vadd.f32 %v1666_v34, %v1593_v0  ;;  %v1477_v21 = vmul.f32 %v8219_v25, %v9756_v47  ;;  %v4527_v25 = vld [vmem:[%s9747_s1 + $0x40] sm:$0xff]  ;;  %v4533_v34 = vld [vmem:[%s9747_s1 + $0x70] sm:$0xff]  ;;  %v5353_v47 = vld [vmem:[%s6660_s27 + $0x18] sm:$0xff] }
 0xe44   : > { %v1678_v46 = vadd.f32 %v1662_v28, %v1589_v58  ;;  %v1769_v38 = vadd.f32 %v1753_v19, %v1680_v49  ;;  %v1578_v37 = vsel %vm1570_vm8, %v8313_v44, %v9757_v45  ;;  %v1765_v12 = vadd.f32 %v1749_v42, %v1676_v39  ;;  %v4534_v28 = vld [vmem:[%s9747_s1 + $0x78] sm:$0xff]  ;;  %v5350_v58 = vld [vmem:[%s6660_s27] sm:$0xff]  ;;  %v9764_v42 = vld [vmem:[#allocation99_spill] sm:$0xff] }
 0xe45   : > { %v1743_v30 = vpop.permute.xlu1 %1742  ;;  %v1505_v60 = vadd.f32 %v8233_v11, %v1477_v21  ;;  %v1667_v44 = vsel %vm1659_vm9, %v8375_v50, %v9759_v53  ;;  %v9761_v11 = vld [vmem:[#allocation25_spill] sm:$0xff]  ;;  %v4529_v50 = vld [vmem:[%s9747_s1 + $0x50] sm:$0xff] }
 0xe46   : > { %v1755_v51 = vsel %vm1748_vm10, %v1743_v30, %v8458_v8  ;;  %v1826_v20 = vpop.permute.xlu0 %1825  ;;  %4567 = vperm.xlu1 %6264, %v4525_v35   ;;  %v1767_v24 = vadd.f32 %v1751_v31, %v1678_v46  ;;  %v9758_v8 = vld [vmem:[#allocation100_spill] sm:$0xff]  ;;  %v1854_v56 = vadd.f32 %v9760_v13, %v1765_v12 }
 0xe47   : > { %v8597_v63 = vadd.f32 %v1755_v51, %v1682_v10  ;;  %v1842_v1 = vsel %vm1837_vm11, %v1826_v20, %v8487_v54  ;;  %4572 = vperm.xlu0 %6263, %v4526_v2   ;;  %v1594_v15 = vadd.f32 %v1578_v37, %v1505_v60  ;;  %v5351_v2 = vld [vmem:[%s6660_s27 + $0x8] sm:$0xff]  ;;  %v5352_v10 = vld [vmem:[%s6660_s27 + $0x10] sm:$0xff] }
 0xe48   : > { %v8603_v43 = vadd.f32 %v1842_v1, %v1769_v38  ;;  %5642 = vmatmul.mubr.msk.bf16.gmra.mrb[60].mxu1 %vm1271_vm3, %v9758_v8  ;;  %v1856_v5 = vadd.f32 %v9761_v11, %v1767_v24 }
 0xe49   : > { %v1903_v54 = vpop.permute.xlu1 %1902  ;;  %4290 = vmatprep.mubr.bf16.mxu1 %v9632_v17  ;;  %v1683_v61 = vadd.f32 %v1667_v44, %v1594_v15 }
 0xe4a   : > { %v1927_v18 = vsel %vm1926_vm12, %v1903_v54, %v8511_v55  ;;  %v1909_v22 = vpop.permute.xlu0 %1908  ;;  %4577 = vperm.xlu1 %6264, %v4527_v25  }
 0xe4b   : > { %v1943_v16 = vadd.f32 %v1927_v18, %v1854_v56  ;;  %v1929_v14 = vsel %vm1926_vm12, %v1909_v22, %v8533_v40  ;;  %4582 = vperm.xlu0 %6263, %v4528_v29   ;;  %v1772_v52 = vadd.f32 %v9762_v32, %v1683_v61  ;;  %v4532_v40 = vld [vmem:[%s9747_s1 + $0x68] sm:$0xff]  ;;  %s9381_s1 = scalar_lea.vmem %s6665_s4, %s9781_s0 }
 0xe4c   : > { %v1945_v9 = vadd.f32 %v1929_v14, %v1856_v5 }
 0xe4d   : > { %v1834_v3 = vpop.permute.xlu1 %1833 }
 0xe4e   : > { %v1836_v57 = vpop.permute.xlu0 %1835  ;;  %4587 = vperm.xlu1 %6264, %v4529_v50  }
 0xe4f   : > { %v1845_v55 = vsel %vm1837_vm11, %v1834_v3, %v1836_v57  ;;  %4592 = vperm.xlu0 %6263, %v4530_v62  }
 0xe50   : > { %v8623_v26 = vadd.f32 %v1845_v55, %v1772_v52  ;;  %5643 = vmatmul.mubr.msk.bf16.vlgmr.msra.gmra.mrb[56].mxu1 %vm1271_vm3, %v9763_v36 }
 0xe51   : > { %v1917_v23 = vpop.permute.xlu1 %1916  ;;  %4300 = vmatprep.mubr.bf16.mxu1 %v9632_v17 }
 0xe52   : > { %v1919_v4 = vpop.permute.xlu0 %1918  ;;  %4597 = vperm.xlu1 %6264, %v4531_v41  }
 0xe53   : > { %v1932_v27 = vsel %vm1926_vm12, %v1917_v23, %v1919_v4  ;;  %4602 = vperm.xlu0 %6263, %v4532_v40  }
 0xe54   : > { %v8632_v33 = vadd.f32 %v1932_v27, %v8513_v59 }
 0xe55   : > { %v1994_v0 = vpop.permute.xlu1 %1993 }
 0xe56   : > { %v1996_v19 = vpop.permute.xlu0 %1995  ;;  %4607 = vperm.xlu1 %6264, %v4533_v34  }
 0xe57   : > { %v2017_v35 = vsel %vm2015_vm13, %v1994_v0, %v1996_v19  ;;  %4612 = vperm.xlu0 %6263, %v4534_v28  }
 0xe58   : > { %v8638_v49 = vadd.f32 %v2017_v35, %v8542_v7  ;;  %5644 = vmatmul.mubr.msk.bf16.gmra.mrb[60].mxu1 %vm1271_vm3, %v9764_v42 }
 0xe59   : > { %v2000_v39 = vpop.permute.xlu1 %1999  ;;  %5406 = vmatprep.mubr.bf16.mxu1 %v9632_v17 }
 0xe5a   : > { %v2002_v59 = vpop.permute.xlu0 %2001  ;;  %5356 = vperm.xlu1 %6264, %v5350_v58  }
 0xe5b   : > { %v2019_v31 = vsel %vm2015_vm13, %v2000_v39, %v2002_v59  ;;  %5361 = vperm.xlu0 %6263, %v5351_v2  }
 0xe5c   : > { %v2035_v30 = vadd.f32 %v2019_v31, %v8580_v48 }
 0xe5d   : > { %v8648_v21 = vpop.permute.xlu1 %4332 }
 0xe5e   : > { %v1832_v7 = vpop.permute.xlu0 %1831  ;;  %5366 = vperm.xlu1 %6264, %v5352_v10  }
 0xe5f   : > { %v1844_v46 = vsel %vm1837_vm11, %v1832_v7, %v1834_v3  ;;  %5371 = vperm.xlu0 %6263, %v5353_v47  }
 0xe60   : > { %v1860_v38 = vadd.f32 %v1844_v46, %v8597_v63  ;;  %v9765_v46 = vld [vmem:[#allocation67_spill] sm:$0xff] }
 0xe61   : > { %v1915_v51 = vpop.permute.xlu1 %1914 }
 0xe62   : > { %v1931_v20 = vsel %vm1926_vm12, %v1915_v51, %v1917_v23  ;;  %v1992_v45 = vpop.permute.xlu0 %1991 }
 0xe63   : > { %v8654_v37 = vadd.f32 %v1931_v20, %v8603_v43  ;;  %v2016_v12 = vsel %vm2015_vm13, %v1992_v45, %v1994_v0 }
 0xe64   : > { %v2032_v48 = vadd.f32 %v2016_v12, %v1943_v16 }
 0xe65   : > { %v1998_v1 = vpop.permute.xlu1 %1997 }
 0xe66   : > { %v2018_v25 = vsel %vm2015_vm13, %v1998_v1, %v2000_v39  ;;  %v1923_v24 = vpop.permute.xlu0 %1922  ;;  %v6437_v1 = vld [vmem:[%s6708_s28] sm:$0xff] }
 0xe67   : > { %v2034_v60 = vadd.f32 %v2018_v25, %v1945_v9 }
 0xe69   : > { %v1925_v29 = vpop.permute.xlu1 %1924 }
 0xe6a   : > { %v2006_v8 = vpop.permute.xlu0 %2005  ;;  %v1934_v40 = vsel %vm1926_vm12, %v1923_v24, %v1925_v29 }
 0xe6b   : > { %v1950_v19 = vadd.f32 %v1934_v40, %v8623_v26 }
 0xe6d   : > { %v2008_v44 = vpop.permute.xlu1 %2007 }
 0xe6e   : > { %v2083_v53 = vpop.permute.xlu0 %2082  ;;  %v2021_v4 = vsel %vm2015_vm13, %v2006_v8, %v2008_v44 }
 0xe6f   : > { %v2037_v58 = vadd.f32 %v2021_v4, %v8632_v33 }
 0xe71   : > { %v2085_v13 = vpop.permute.xlu1 %2084 }
 0xe72   : > { %v2089_v63 = vpop.permute.xlu0 %2088  ;;  %v2106_v27 = vsel %vm2104_vm14, %v2083_v53, %v2085_v13 }
 0xe73   : > { %v2122_v42 = vadd.f32 %v2106_v27, %v8638_v49 }
 0xe75   : > { %v2091_v54 = vpop.permute.xlu1 %2090 }
 0xe76   : > { %v1921_v56 = vpop.permute.xlu0 %1920  ;;  %v2108_v34 = vsel %vm2104_vm14, %v2089_v63, %v2091_v54 }
 0xe77   : > { %v1933_v28 = vsel %vm1926_vm12, %v1921_v56, %v1923_v24  ;;  %v2124_v2 = vadd.f32 %v2108_v34, %v2035_v30  ;;  %v9766_v24 = vld [vmem:[#allocation66_spill] sm:$0xff] }
 0xe78   : > { %v1949_v31 = vadd.f32 %v1933_v28, %v1860_v38 }
 0xe79   : > { %v2004_v11 = vpop.permute.xlu1 %2003 }
 0xe7a   : > { %v2081_v15 = vpop.permute.xlu0 %2080  ;;  %v2020_v20 = vsel %vm2015_vm13, %v2004_v11, %v2006_v8  ;;  %v6439_v11 = vld [vmem:[%s6708_s28 + $0x10] sm:$0xff] }
 0xe7b   : > { %v2105_v0 = vsel %vm2104_vm14, %v2081_v15, %v2083_v53 }
 0xe7c   : > { %v2121_v10 = vadd.f32 %v2105_v0, %v2032_v48 }
 0xe7d   : > { %v2087_v5 = vpop.permute.xlu1 %2086 }
 0xe7e   : > { %v2012_v43 = vpop.permute.xlu0 %2011  ;;  %v2107_v35 = vsel %vm2104_vm14, %v2087_v5, %v2089_v63 }
 0xe7f   : > { %v2123_v45 = vadd.f32 %v2107_v35, %v2034_v60  ;;  %v6438_v60 = vld [vmem:[%s6708_s28 + $0x8] sm:$0xff] }
 0xe81   : > { %v2014_v22 = vpop.permute.xlu1 %2013 }
 0xe82   : > { %v8658_v18 = vpop.permute.xlu0 %2094  ;;  %v2023_v44 = vsel %vm2015_vm13, %v2012_v43, %v2014_v22 }
 0xe83   : > { %v2039_v4 = vadd.f32 %v2023_v44, %v1950_v19 }
 0xe85   : > { %v2097_v14 = vpop.permute.xlu1 %2096 }
 0xe86   : > { %v2172_v16 = vpop.permute.xlu0 %2171 }
 0xe89   : > { %v2174_v61 = vpop.permute.xlu1 %2173 }
 0xe8a   : > { %v2178_v50 = vpop.permute.xlu0 %2177  ;;  %v2195_v47 = vsel %vm2193_vm15, %v2172_v16, %v2174_v61 }
 0xe8b   : > { %v2211_v8 = vadd.f32 %v2195_v47, %v2122_v42  ;;  %v6441_v47 = vld [vmem:[%s6708_s28 + $0x20] sm:$0xff] }
 0xe8d   : > { %v2180_v62 = vpop.permute.xlu1 %2179 }
 0xe8e   : > { %v2010_v9 = vpop.permute.xlu0 %2009  ;;  %v2197_v38 = vsel %vm2193_vm15, %v2178_v50, %v2180_v62  ;;  %v6440_v62 = vld [vmem:[%s6708_s28 + $0x18] sm:$0xff] }
 0xe8f   : > { %v2022_v56 = vsel %vm2015_vm13, %v2010_v9, %v2012_v43 }
 0xe90   : > { %v2038_v27 = vadd.f32 %v2022_v56, %v1949_v31 }
 0xe91   : > { %v2093_v32 = vpop.permute.xlu1 %2092 }
 0xe92   : > { %v2170_v3 = vpop.permute.xlu0 %2169 }
 0xe93   : > { %v2194_v39 = vsel %vm2193_vm15, %v2170_v3, %v2172_v16  ;;  %v2213_v16 = vadd.f32 %v2197_v38, %v2124_v2  ;;  %v2036_v3 = vadd.f32 %v2020_v20, %v8654_v37  ;;  %v6444_v38 = vld [vmem:[%s6708_s28 + $0x38] sm:$0xff] }
 0xe94   : > { %v2210_v48 = vadd.f32 %v2194_v39, %v2121_v10 }
 0xe95   : > { %v2176_v57 = vpop.permute.xlu1 %2175 }
 0xe96   : > { %v8660_v52 = vpop.permute.xlu0 %2100  ;;  %v2196_v33 = vsel %vm2193_vm15, %v2176_v57, %v2178_v50  ;;  %v2109_v50 = vsel %vm2104_vm14, %v2093_v32, %v8658_v18  ;;  %v2110_v57 = vsel %vm2104_vm14, %v8658_v18, %v2097_v14 }
 0xe97   : > { %v2212_v54 = vadd.f32 %v2196_v33, %v2123_v45  ;;  %v2125_v37 = vadd.f32 %v2109_v50, %v2036_v3  ;;  %v2126_v35 = vadd.f32 %v2110_v57, %v2037_v58  ;;  %v6443_v33 = vld [vmem:[%s6708_s28 + $0x30] sm:$0xff] }
 0xe99   : > { %v2103_v41 = vpop.permute.xlu1 %2102 }
 0xe9a   : > { %v8662_v55 = vpop.permute.xlu0 %2183  ;;  %v2112_v18 = vsel %vm2104_vm14, %v8660_v52, %v2103_v41 }
 0xe9d   : > { %v2186_v23 = vpop.permute.xlu1 %2185 }
 0xe9e   : > { %v2099_v36 = vpop.permute.xlu0 %2098  ;;  %v2199_v14 = vsel %vm2193_vm15, %v8662_v55, %v2186_v23  ;;  %v2128_v23 = vadd.f32 %v2112_v18, %v2039_v4 }
 0xe9f   : > { %v2111_v43 = vsel %vm2104_vm14, %v2099_v36, %v8660_v52 }
 0xea0   : > { %v2127_v42 = vadd.f32 %v2111_v43, %v2038_v27 }
 0xea1   : > { %v2182_v49 = vpop.permute.xlu1 %2181 }
 0xea2   : > { %v2190_v7 = vpop.permute.xlu0 %2189  ;;  %v2198_v32 = vsel %vm2193_vm15, %v2182_v49, %v8662_v55 }
 0xea3   : > { %v2214_v31 = vadd.f32 %v2198_v32, %v2125_v37 }
 0xea5   : > { %v2192_v34 = vpop.permute.xlu1 %2191 }
 0xea6   : > { %v2188_v9 = vpop.permute.xlu0 %2187  ;;  %v2201_v10 = vsel %vm2193_vm15, %v2190_v7, %v2192_v34 }
 0xea7   : > { %v2200_v2 = vsel %vm2193_vm15, %v2188_v9, %v2190_v7  ;;  %v2217_v49 = vadd.f32 %v2201_v10, %v2128_v23 }
 0xea8   : > { %v2216_v20 = vadd.f32 %v2200_v2, %v2127_v42 }
 0xf23   : > { %v4292_v59 = vpop.f32.mrb[56].mxu1 }
 0xf24   : > { %v4335_v51 = vadd.f32 %v9765_v46, %v4292_v59  ;;  %v4294_v26 = vpop.f32.mrb[57].mxu1 }
 0xf25   : > { %v4336_v30 = vadd.f32 %v9765_v46, %v4294_v26  ;;  %v4296_v12 = vpop.f32.mrb[58].mxu1  ;;  %v2215_v46 = vadd.f32 %v2199_v14, %v2126_v35 }
 0xf26   : > { %v4343_v25 = vadd.f32 %v6437_v1, %v4335_v51  ;;  %v4337_v29 = vadd.f32 %v9766_v24, %v4296_v12  ;;  %v4298_v53 = vpop.f32.mrb[59].mxu1  ;;  %v6442_v51 = vld [vmem:[%s6708_s28 + $0x28] sm:$0xff]  ;;  %s9775_s28 = sld [smem:[#allocation14_spill]] }
 0xf27   : > { %v4344_v63 = vadd.f32 %v6438_v60, %v4336_v30  ;;  %v4338_v13 = vadd.f32 %v9766_v24, %v4298_v53 }
 0xf28   : > { %v8687_v15 = vadd.f32 %v4343_v25, %v2210_v48  ;;  %v4345_v5 = vadd.f32 %v6439_v11, %v4337_v29 }
 0xf29   : > { %v8692_v61 = vadd.f32 %v4344_v63, %v2211_v8  ;;  %v4346_v22 = vadd.f32 %v6440_v62, %v4338_v13 }
 0xf2a   : > { %9767 = vst [vmem:[#allocation26_spill] sm:$0xff] %v8687_v15  ;;  %v8700_v40 = vadd.f32 %v4345_v5, %v2212_v54 }
 0xf2b   : > { %9768 = vst [vmem:[#allocation68_spill] sm:$0xff] %v8692_v61  ;;  %v8704_v28 = vadd.f32 %v4346_v22, %v2213_v16  ;;  %v4302_v0 = vpop.f32.mrb[60].mxu1 }
 0xf2c   : > { %9769 = vst [vmem:[#allocation69_spill] sm:$0xff] %v8700_v40  ;;  %v4339_v36 = vadd.f32 %v8572_v6, %v4302_v0  ;;  %v4304_v19 = vpop.f32.mrb[61].mxu1 }
 0xf2d   : > { %9770 = vst [vmem:[#allocation70_spill] sm:$0xff] %v8704_v28  ;;  %v4340_v39 = vadd.f32 %v8572_v6, %v4304_v19  ;;  %v4306_v59 = vpop.f32.mrb[62].mxu1  ;;  %v4359_v6 = vadd.f32 %v8700_v40, %v8687_v15  ;;  %v4368_v30 = vadd.f32 %v8704_v28, %v8692_v61 }
 0xf2e   : > { %v4347_v52 = vadd.f32 %v6441_v47, %v4339_v36  ;;  %v4341_v55 = vadd.f32 %v8648_v21, %v4306_v59  ;;  %v4308_v41 = vpop.f32.mrb[63].mxu1 }
 0xf2f   : > { %v4348_v58 = vadd.f32 %v6442_v51, %v4340_v39  ;;  %v4342_v26 = vadd.f32 %v8648_v21, %v4308_v41 }
 0xf30   : > { %v8720_v45 = vadd.f32 %v4347_v52, %v2214_v31  ;;  %v4349_v7 = vadd.f32 %v6443_v33, %v4341_v55 }
 0xf31   : > { %v8725_v12 = vadd.f32 %v4348_v58, %v2215_v46  ;;  %v4350_v48 = vadd.f32 %v6444_v38, %v4342_v26  ;;  %v4434_v38 = vpop.permute.xlu1 %4433 }
 0xf32   : > { %9771 = vst [vmem:[#allocation71_spill] sm:$0xff] %v8720_v45  ;;  %v4360_v1 = vadd.f32 %v4359_v6, %v8720_v45  ;;  %v8729_v25 = vadd.f32 %v4349_v7, %v2216_v20 }
 0xf33   : > { %9772 = vst [vmem:[#allocation24_spill] sm:$0xff] %v8725_v12  ;;  %v4369_v21 = vadd.f32 %v4368_v30, %v8725_v12  ;;  %v8732_v24 = vadd.f32 %v4350_v48, %v2217_v49  ;;  %v4439_v48 = vpop.permute.xlu0 %4438 }
 0xf34   : > { %9773 = vst [vmem:[#allocation30_spill] sm:$0xff] %v8729_v25  ;;  %v4361_v29 = vadd.f32 %v4360_v1, %v8729_v25 }
 0xf35   : > { %9774 = vst [vmem:[#allocation75_spill] sm:$0xff] %v8732_v24  ;;  %v4370_v53 = vadd.f32 %v4369_v21, %v8732_v24 }
 0xf36   : > { %v4362_v44 = vrot.slane %v4361_v29, 4 }
 0xf37   : > { %v4371_v8 = vrot.slane %v4370_v53, 4 }
 0xf38   : > { %v4363_v60 = vadd.f32 %v4362_v44, %v4361_v29  ;;  %v4471_v44 = vpop.permute.xlu0 %4470 }
 0xf39   : > { %v4372_v63 = vadd.f32 %v4371_v8, %v4370_v53  ;;  %v4466_v53 = vpop.permute.xlu1 %4465 }
 0xf3a   : > { %v4364_v13 = vrot.slane %v4363_v60, 2 }
 0xf3b   : > { %v4373_v56 = vrot.slane %v4372_v63, 2 }
 0xf3c   : > { %v4365_v54 = vadd.f32 %v4364_v13, %v4363_v60  ;;  %v4449_v60 = vpop.permute.xlu0 %4448 }
 0xf3d   : > { %v4374_v11 = vadd.f32 %v4373_v56, %v4372_v63  ;;  %v4444_v8 = vpop.permute.xlu1 %4443 }
 0xf3e   : > { %v4366_v5 = vrot.slane %v4365_v54, 1 }
 0xf3f   : > { %v4375_v16 = vrot.slane %v4374_v11, 1 }
 0xf40   : > { %v4367_v50 = vadd.f32 %v4366_v5, %v4365_v54 }
 0xf41   : > { %v4376_v62 = vadd.f32 %v4375_v16, %v4374_v11 }
 0xf42   : > { %v4377_v22 = vmul.f32 0.03125, %v4367_v50 }
 0xf43   : > { %v4378_v3 = vmul.f32 0.03125, %v4376_v62 }
 0xf44   : > { %v4379_v57 = vsub.f32 %v8687_v15, %v4377_v22  ;;  %v4381_v43 = vsub.f32 %v8700_v40, %v4377_v22  ;;  %v4383_v9 = vsub.f32 %v8720_v45, %v4377_v22  ;;  %v4385_v34 = vsub.f32 %v8729_v25, %v4377_v22 }
 0xf45   : > { %v4380_v4 = vsub.f32 %v8692_v61, %v4378_v3  ;;  %v4382_v27 = vsub.f32 %v8704_v28, %v4378_v3  ;;  %v4384_v32 = vsub.f32 %v8725_v12, %v4378_v3  ;;  %v4386_v18 = vsub.f32 %v8732_v24, %v4378_v3 }
 0xf46   : > { %v4387_v0 = vmul.f32 %v4379_v57, %v4379_v57  ;;  %v4389_v37 = vmul.f32 %v4381_v43, %v4381_v43  ;;  %v4391_v19 = vmul.f32 %v4383_v9, %v4383_v9  ;;  %v4393_v39 = vmul.f32 %v4385_v34, %v4385_v34 }
 0xf47   : > { %v4388_v14 = vmul.f32 %v4380_v4, %v4380_v4  ;;  %v4390_v36 = vmul.f32 %v4382_v27, %v4382_v27  ;;  %v4392_v42 = vmul.f32 %v4384_v32, %v4384_v32  ;;  %v4394_v31 = vmul.f32 %v4386_v18, %v4386_v18 }
 0xf48   : > { %v4395_v35 = vadd.f32 %v4389_v37, %v4387_v0 }
 0xf49   : > { %v4404_v2 = vadd.f32 %v4390_v36, %v4388_v14 }
 0xf4a   : > { %v4396_v59 = vadd.f32 %v4395_v35, %v4391_v19  ;;  %v4476_v35 = vpop.permute.xlu1 %4475 }
 0xf4b   : > { %v4405_v10 = vadd.f32 %v4404_v2, %v4392_v42  ;;  %v4481_v42 = vpop.permute.xlu0 %4480 }
 0xf4c   : > { %v4397_v47 = vadd.f32 %v4396_v59, %v4393_v39 }
 0xf4d   : > { %v4406_v52 = vadd.f32 %v4405_v10, %v4394_v31 }
 0xf4e   : > { %v4398_v55 = vrot.slane %v4397_v47, 4 }
 0xf4f   : > { %v4407_v41 = vrot.slane %v4406_v52, 4 }
 0xf50   : > { %v4399_v23 = vadd.f32 %v4398_v55, %v4397_v47  ;;  %v4491_v47 = vld [vmem:[%s9775_s28] sm:$0xff] }
 0xf51   : > { %v4408_v46 = vadd.f32 %v4407_v41, %v4406_v52  ;;  %v4492_v52 = vld [vmem:[%s9775_s28 + $0x8] sm:$0xff] }
 0xf52   : > { %v4400_v51 = vrot.slane %v4399_v23, 2  ;;  %v4507_v41 = vpack.c.bf16 %v4492_v52, %v4491_v47 }
 0xf53   : > { %v4409_v58 = vrot.slane %v4408_v46, 2 }
 0xf54   : > { %v4401_v26 = vadd.f32 %v4400_v51, %v4399_v23  ;;  %v4493_v23 = vld [vmem:[%s9775_s28 + $0x10] sm:$0xff] }
 0xf55   : > { %v4410_v20 = vadd.f32 %v4409_v58, %v4408_v46  ;;  %v4494_v46 = vld [vmem:[%s9775_s28 + $0x18] sm:$0xff]  ;;  %v4495_v58 = vld [vmem:[%s9775_s28 + $0x20] sm:$0xff] }
 0xf56   : > { %v4402_v6 = vrot.slane %v4401_v26, 1  ;;  %v4508_v51 = vpack.c.bf16 %v4494_v46, %v4493_v23 }
 0xf57   : > { %v4411_v33 = vrot.slane %v4410_v20, 1 }
 0xf58   : > { %v4403_v7 = vadd.f32 %v4402_v6, %v4401_v26  ;;  %v4496_v26 = vld [vmem:[%s9775_s28 + $0x28] sm:$0xff]  ;;  %v4497_v6 = vld [vmem:[%s9775_s28 + $0x30] sm:$0xff] }
 0xf59   : > { %v4412_v49 = vadd.f32 %v4411_v33, %v4410_v20  ;;  %v4509_v20 = vpack.c.bf16 %v4496_v26, %v4495_v58  ;;  %v4498_v33 = vld [vmem:[%s9775_s28 + $0x38] sm:$0xff] }
 0xf5a   : > { %v4413_v30 = vmul.f32 0.03125, %v4403_v7  ;;  %v4510_v7 = vpack.c.bf16 %v4498_v33, %v4497_v6 }
 0xf5b   : > { %v4414_v1 = vmul.f32 0.03125, %v4412_v49  ;;  %v4499_v49 = vld [vmem:[%s9775_s28 + $0x40] sm:$0xff] }
 0xf5c   : > { %v4415_v21 = vadd.f32 1e-05, %v4413_v30  ;;  %v4500_v30 = vld [vmem:[%s9775_s28 + $0x48] sm:$0xff] }
 0xf5d   : > { %v4416_v29 = vadd.f32 1e-05, %v4414_v1  ;;  %v4502_v1 = vld [vmem:[%s9775_s28 + $0x58] sm:$0xff] }
 0xf5e   : > { %6305 = vrsqrt.f32 %v4415_v21 }
 0xf5f   : > { %6307 = vrsqrt.f32 %v4416_v29  ;;  %v4503_v29 = vld [vmem:[%s9775_s28 + $0x60] sm:$0xff] }
 0xf68   : > { %v6306_v63 = vpop.eup %6305 }
 0xf69   : > { %v6308_v13 = vpop.eup %6307  ;;  %v4425_v56 = vmul.f32 %v6306_v63, %v4385_v34  ;;  %v4419_v54 = vmul.f32 %v6306_v63, %v4379_v57  ;;  %v4421_v11 = vmul.f32 %v6306_v63, %v4381_v43  ;;  %v4423_v5 = vmul.f32 %v6306_v63, %v4383_v9 }
 0xf6a   : > { %v4420_v16 = vmul.f32 %v6308_v13, %v4380_v4  ;;  %v4422_v50 = vmul.f32 %v6308_v13, %v4382_v27  ;;  %v4424_v62 = vmul.f32 %v6308_v13, %v4384_v32  ;;  %v4426_v22 = vmul.f32 %v6308_v13, %v4386_v18  ;;  %v4538_v13 = vpop.permute.xlu1 %4537 }
 0xf6b   : > { %v4451_v3 = vmul.f32 %v4434_v38, %v4419_v54  ;;  %v4453_v0 = vmul.f32 %v4439_v48, %v4421_v11  ;;  %v4455_v34 = vmul.f32 %v4444_v8, %v4423_v5  ;;  %v4457_v57 = vmul.f32 %v4449_v60, %v4425_v56  ;;  %v4543_v5 = vpop.permute.xlu0 %4542 }
 0xf6c   : > { %v4452_v37 = vmul.f32 %v4434_v38, %v4420_v16  ;;  %v4454_v14 = vmul.f32 %v4439_v48, %v4422_v50  ;;  %v4456_v36 = vmul.f32 %v4444_v8, %v4424_v62  ;;  %v4458_v19 = vmul.f32 %v4449_v60, %v4426_v22  ;;  %v4501_v48 = vld [vmem:[%s9775_s28 + $0x50] sm:$0xff]  ;;  %v4506_v60 = vld [vmem:[%s9775_s28 + $0x78] sm:$0xff] }
 0xf6d   : > { %v4483_v2 = vadd.f32 %v4466_v53, %v4451_v3  ;;  %v4485_v39 = vadd.f32 %v4471_v44, %v4453_v0  ;;  %v4487_v59 = vadd.f32 %v4476_v35, %v4455_v34  ;;  %v4489_v31 = vadd.f32 %v4481_v42, %v4457_v57  ;;  %v4505_v8 = vld [vmem:[%s9775_s28 + $0x70] sm:$0xff] }
 0xf6e   : > { %v4484_v43 = vadd.f32 %v4466_v53, %v4452_v37  ;;  %v4486_v9 = vadd.f32 %v4471_v44, %v4454_v14  ;;  %v4488_v4 = vadd.f32 %v4476_v35, %v4456_v36  ;;  %v4490_v27 = vadd.f32 %v4481_v42, %v4458_v19  ;;  %v4504_v53 = vld [vmem:[%s9775_s28 + $0x68] sm:$0xff] }
 0xf6f   : > { %v4515_v18 = vpack.c.bf16 %v4485_v39, %v4483_v2  ;;  %v4517_v55 = vpack.c.bf16 %v4489_v31, %v4487_v59  ;;  %v4511_v38 = vpack.c.bf16 %v4500_v30, %v4499_v49  ;;  %v4512_v21 = vpack.c.bf16 %v4502_v1, %v4501_v48  ;;  %v4548_v39 = vpop.permute.xlu1 %4547 }
 0xf70   : > { %v4516_v32 = vpack.c.bf16 %v4486_v9, %v4484_v43  ;;  %v4518_v10 = vpack.c.bf16 %v4490_v27, %v4488_v4  ;;  %v4513_v44 = vpack.c.bf16 %v4504_v53, %v4503_v29  ;;  %v4514_v63 = vpack.c.bf16 %v4506_v60, %v4505_v8 }
 0xf72   : > { %4639 = vmatprep.subr.bf16.mxu0 %v4516_v32  ;;  %v4553_v32 = vpop.permute.xlu0 %4552 }
 0xf73   : > { %4640 = vmatpush1.bf16.msra.mxu0 %v4515_v18  ;;  %v4558_v60 = vpop.permute.xlu1 %4557 }
 0xf74   : > { %4641 = vmatprep.subr.bf16.mxu0 %v4518_v10 }
 0xf77   : > { %4642 = vmatpush1.bf16.msra.mxu0 %v4517_v55 }
 0xf7a   : > { %5645 = vmatmul.mubr.msk.bf16.vlgmr.msra.gmra.mrb[44].mxu0 %vm1363_vm5, %v4507_v41 }
 0xf7b   : > { %4681 = vmatprep.mubr.bf16.mxu0 %v9632_v17 }
 0xf82   : > { %5646 = vmatmul.mubr.msk.bf16.gmra.mrb[48].mxu0 %vm1363_vm5, %v4508_v51 }
 0xf83   : > { %4691 = vmatprep.mubr.bf16.mxu0 %v9632_v17 }
 0xf8a   : > { %5647 = vmatmul.mubr.msk.bf16.gmra.mrb[52].mxu0 %vm1363_vm5, %v4509_v20 }
 0xf8b   : > { %4701 = vmatprep.mubr.bf16.mxu0 %v9632_v17 }
 0xf92   : > { %5648 = vmatmul.mubr.msk.bf16.gmra.mrb[56].mxu0 %vm1363_vm5, %v4510_v7 }
 0xf93   : > { %4711 = vmatprep.mubr.bf16.mxu0 %v9632_v17 }
 0xf9a   : > { %5649 = vmatmul.mubr.msk.bf16.gmra.mrb[60].mxu0 %vm1363_vm5, %v4511_v38 }
 0xf9b   : > { %4721 = vmatprep.mubr.bf16.mxu0 %v9632_v17 }
 0xfa2   : > { %5650 = vmatmul.mubr.msk.bf16.gmra.mrb[64].mxu0 %vm1363_vm5, %v4512_v21 }
 0xfa3   : > { %4731 = vmatprep.mubr.bf16.mxu0 %v9632_v17 }
 0xfaa   : > { %5651 = vmatmul.mubr.msk.bf16.gmra.mrb[68].mxu0 %vm1363_vm5, %v4513_v44 }
 0xfab   : > { %4741 = vmatprep.mubr.bf16.mxu0 %v9632_v17 }
 0xfb2   : > { %5652 = vmatmul.mubr.msk.bf16.gmra.mrb[72].mxu0 %vm1363_vm5, %v4514_v63 }
0x104d   : > { %v4673_v56 = vpop.f32.mrb[44].mxu0 }
0x104e   : > { %v8775_v54 = vadd.f32 %v4673_v56, %v4538_v13  ;;  %v4675_v11 = vpop.f32.mrb[45].mxu0 }
0x104f   : > { %v8777_v16 = vadd.f32 %v4675_v11, %v4538_v13  ;;  %v4677_v50 = vpop.f32.mrb[46].mxu0 }
0x1050   : > { %v4752_v62 = vand.u32 2147483647, %v8775_v54  ;;  %v8780_v22 = vadd.f32 %v4677_v50, %v4543_v5  ;;  %v4679_v3 = vpop.f32.mrb[47].mxu0  ;;  %vm4944_vm3 = vcmp.ge.f32.partialorder %v8775_v54, 0.0 }
0x1051   : > { %v4753_v0 = vand.u32 2147483647, %v8777_v16  ;;  %v8783_v37 = vadd.f32 %v4679_v3, %v4543_v5  ;;  %vm4945_vm5 = vcmp.ge.f32.partialorder %v8777_v16, 0.0 }
0x1052   : > { %v4784_v14 = vsub.f32 0.0, %v4752_v62  ;;  %v4754_v36 = vand.u32 2147483647, %v8780_v22  ;;  %vm4946_vm8 = vcmp.ge.f32.partialorder %v8780_v22, 0.0 }
0x1053   : > { %v4785_v19 = vsub.f32 0.0, %v4753_v0  ;;  %v4755_v35 = vand.u32 2147483647, %v8783_v37  ;;  %vm4947_vm9 = vcmp.ge.f32.partialorder %v8783_v37, 0.0 }
0x1054   : > { %v4816_v42 = vmul.f32 1.442695, %v4784_v14  ;;  %v4786_v2 = vsub.f32 0.0, %v4754_v36 }
0x1055   : > { %v4818_v34 = vmul.f32 1.442695, %v4785_v19  ;;  %v4787_v57 = vsub.f32 0.0, %v4755_v35  ;;  %v4683_v43 = vpop.f32.mrb[48].mxu0 }
0x1056   : > { %6309 = vpow2.f32 %v4816_v42  ;;  %v4820_v9 = vmul.f32 1.442695, %v4786_v2  ;;  %v8787_v4 = vadd.f32 %v4683_v43, %v4548_v39  ;;  %v4685_v27 = vpop.f32.mrb[49].mxu0 }
0x1057   : > { %6311 = vpow2.f32 %v4818_v34  ;;  %v4822_v18 = vmul.f32 1.442695, %v4787_v57  ;;  %v8789_v59 = vadd.f32 %v4685_v27, %v4548_v39  ;;  %v4687_v31 = vpop.f32.mrb[50].mxu0 }
0x1058   : > { %6313 = vpow2.f32 %v4820_v9  ;;  %v4756_v10 = vand.u32 2147483647, %v8787_v4  ;;  %v8792_v47 = vadd.f32 %v4687_v31, %v4553_v32  ;;  %v4689_v52 = vpop.f32.mrb[51].mxu0  ;;  %vm4948_vm10 = vcmp.ge.f32.partialorder %v8787_v4, 0.0 }
0x1059   : > { %v4757_v55 = vand.u32 2147483647, %v8789_v59  ;;  %v8795_v41 = vadd.f32 %v4689_v52, %v4553_v32  ;;  %6315 = vpow2.f32 %v4822_v18  ;;  %vm4949_vm12 = vcmp.ge.f32.partialorder %v8789_v59, 0.0 }
0x105a   : > { %v4788_v23 = vsub.f32 0.0, %v4756_v10  ;;  %v4758_v46 = vand.u32 2147483647, %v8792_v47  ;;  %vm4950_vm11 = vcmp.ge.f32.partialorder %v8792_v47, 0.0 }
0x105b   : > { %v4789_v51 = vsub.f32 0.0, %v4757_v55  ;;  %v4759_v58 = vand.u32 2147483647, %v8795_v41  ;;  %vm4951_vm13 = vcmp.ge.f32.partialorder %v8795_v41, 0.0 }
0x105c   : > { %v4824_v26 = vmul.f32 1.442695, %v4788_v23  ;;  %v4790_v20 = vsub.f32 0.0, %v4758_v46 }
0x105d   : > { %v4826_v6 = vmul.f32 1.442695, %v4789_v51  ;;  %v4791_v33 = vsub.f32 0.0, %v4759_v58  ;;  %v4693_v7 = vpop.f32.mrb[52].mxu0  ;;  %v8832_v51 = vpop.permute.xlu0 %4562 }
0x105e   : > { %6317 = vpow2.f32 %v4824_v26  ;;  %v4828_v49 = vmul.f32 1.442695, %v4790_v20  ;;  %v4695_v30 = vpop.f32.mrb[53].mxu0  ;;  %v8806_v5 = vadd.f32 %v4693_v7, %v4558_v60 }
0x105f   : > { %6319 = vpow2.f32 %v4826_v6  ;;  %v4697_v38 = vpop.f32.mrb[54].mxu0  ;;  %v4830_v1 = vmul.f32 1.442695, %v4791_v33  ;;  %v8836_v26 = vadd.f32 %v4695_v30, %v4558_v60 }
0x1060   : > { %v6310_v48 = vpop.eup %6309  ;;  %6321 = vpow2.f32 %v4828_v49  ;;  %v8799_v21 = vpop.f32.mrb[55].mxu0  ;;  %v4760_v10 = vand.u32 2147483647, %v8806_v5  ;;  %v8840_v7 = vadd.f32 %v4697_v38, %v8832_v51  ;;  %vm4952_vm14 = vcmp.ge.f32.partialorder %v8806_v5, 0.0 }
0x1061   : > { %v8801_v29 = vpop.eup %6311  ;;  %v4880_v53 = vadd.f32 1.0, %v6310_v48  ;;  %v5072_v13 = vmul.f32 %v6310_v48, %v6310_v48  ;;  %6323 = vpow2.f32 %v4830_v1  ;;  %v4976_v32 = vmul.f32 2.0, %v6310_v48 }
0x1062   : > { %v6314_v44 = vpop.eup %6313  ;;  %v4881_v8 = vadd.f32 1.0, %v8801_v29  ;;  %v5073_v43 = vmul.f32 %v8801_v29, %v8801_v29  ;;  %vm4953_vm15 = vcmp.ge.f32.partialorder %v8836_v26, 0.0  ;;  %vm4954_vm0 = vcmp.ge.f32.partialorder %v8840_v7, 0.0 }
0x1063   : > { %v4912_v63 = vmul.f32 %v4880_v53, %v4880_v53  ;;  %v4882_v56 = vadd.f32 1.0, %v6314_v44  ;;  %v8804_v11 = vpop.eup %6315  ;;  %v5074_v0 = vmul.f32 %v6314_v44, %v6314_v44  ;;  %v4978_v18 = vmul.f32 2.0, %v6314_v44 }
0x1064   : > { %v4913_v36 = vmul.f32 %v4881_v8, %v4881_v8  ;;  %v4883_v39 = vadd.f32 1.0, %v8804_v11  ;;  %v5008_v49 = vmul.f32 %v6310_v48, %v4976_v32  ;;  %v5075_v1 = vmul.f32 %v8804_v11, %v8804_v11 }
0x1065   : > { %v5104_v50 = vadd.f32 %v5072_v13, %v4912_v63  ;;  %v5136_v62 = vadd.f32 1.0, %v4912_v63  ;;  %v4914_v3 = vmul.f32 %v4882_v56, %v4882_v56  ;;  %v8808_v14 = vpop.f32.mrb[56].mxu0  ;;  %v4792_v8 = vsub.f32 0.0, %v4760_v10 }
0x1066   : > { %v8811_v19 = vpop.f32.mrb[57].mxu0  ;;  %v5105_v55 = vadd.f32 %v5073_v43, %v4913_v36  ;;  %v5137_v23 = vadd.f32 1.0, %v4913_v36  ;;  %v4915_v58 = vmul.f32 %v4883_v39, %v4883_v39  ;;  %v5010_v60 = vmul.f32 %v6314_v44, %v4978_v18 }
0x1067   : > { %v5168_v35 = vsel %vm4944_vm3, %v5104_v50, %v5136_v62  ;;  %v5106_v42 = vadd.f32 %v5074_v0, %v4914_v3  ;;  %v5138_v2 = vadd.f32 1.0, %v4914_v3  ;;  %v8816_v34 = vpop.f32.mrb[58].mxu0  ;;  %v5040_v43 = vsel %vm4944_vm3, %v5008_v49, 2.0 }
0x1068   : > { %v6318_v57 = vpop.eup %6317  ;;  %6325 = vrcp.f32 %v5168_v35  ;;  %v8822_v9 = vpop.f32.mrb[59].mxu0  ;;  %v5169_v30 = vsel %vm4945_vm5, %v5105_v55, %v5137_v23  ;;  %v5107_v38 = vadd.f32 %v5075_v1, %v4915_v58  ;;  %v5139_v48 = vadd.f32 1.0, %v4915_v58 }
0x1069   : > { %v8824_v27 = vpop.eup %6319  ;;  %v5170_v31 = vsel %vm4946_vm8, %v5106_v42, %v5138_v2  ;;  %v4884_v46 = vadd.f32 1.0, %v6318_v57  ;;  %v5076_v6 = vmul.f32 %v6318_v57, %v6318_v57  ;;  %v4980_v3 = vmul.f32 2.0, %v6318_v57 }
0x106a   : > { %v8829_v52 = vpop.eup %6321  ;;  %6327 = vrcp.f32 %v5170_v31  ;;  %v4885_v33 = vadd.f32 1.0, %v8824_v27  ;;  %v4977_v35 = vmul.f32 2.0, %v8801_v29  ;;  %v5042_v10 = vsel %vm4946_vm8, %v5010_v60, 2.0 }
0x106b   : > { %v4916_v20 = vmul.f32 %v4884_v46, %v4884_v46  ;;  %v4886_v53 = vadd.f32 1.0, %v8829_v52  ;;  %v8847_v13 = vpop.eup %6323  ;;  %v5078_v44 = vmul.f32 %v8829_v52, %v8829_v52  ;;  %v5077_v55 = vmul.f32 %v8824_v27, %v8824_v27 }
0x106c   : > { %v4917_v2 = vmul.f32 %v4885_v33, %v4885_v33  ;;  %v4887_v18 = vadd.f32 1.0, %v8847_v13  ;;  %v5171_v58 = vsel %vm4947_vm9, %v5107_v38, %v5139_v48  ;;  %v4979_v38 = vmul.f32 2.0, %v8804_v11 }
0x106d   : > { %v8845_v63 = vpop.f32.mrb[60].mxu0  ;;  %v5108_v56 = vadd.f32 %v5076_v6, %v4916_v20  ;;  %v5140_v50 = vadd.f32 1.0, %v4916_v20  ;;  %v4918_v0 = vmul.f32 %v4886_v53, %v4886_v53  ;;  %v5012_v20 = vmul.f32 %v6318_v57, %v4980_v3 }
0x106e   : > { %v8851_v62 = vpop.f32.mrb[61].mxu0  ;;  %v4832_v6 = vmul.f32 1.442695, %v4792_v8  ;;  %v5109_v49 = vadd.f32 %v5077_v55, %v4917_v2  ;;  %v5141_v1 = vadd.f32 1.0, %v4917_v2  ;;  %v4982_v53 = vmul.f32 2.0, %v8829_v52 }
0x106f   : > { %v8854_v36 = vpop.f32.mrb[62].mxu0  ;;  %v5172_v42 = vsel %vm4948_vm10, %v5108_v56, %v5140_v50  ;;  %v5142_v32 = vadd.f32 1.0, %v4918_v0  ;;  %v5110_v23 = vadd.f32 %v5078_v44, %v4918_v0  ;;  %v4919_v50 = vmul.f32 %v4887_v18, %v4887_v18 }
0x1070   : > { %v8861_v39 = vpop.f32.mrb[63].mxu0  ;;  %6329 = vrcp.f32 %v5172_v42  ;;  %v5009_v0 = vmul.f32 %v8801_v29, %v4977_v35  ;;  %v4761_v57 = vand.u32 2147483647, %v8836_v26  ;;  %v5044_v3 = vsel %vm4948_vm10, %v5012_v20, 2.0 }
0x1071   : > { %6331 = vrcp.f32 %v5169_v30  ;;  %v5174_v30 = vsel %vm4950_vm11, %v5110_v23, %v5142_v32  ;;  %v4762_v2 = vand.u32 2147483647, %v8840_v7  ;;  %v5014_v29 = vmul.f32 %v8829_v52, %v4982_v53 }
0x1072   : > { %v6326_v31 = vpop.eup %6325  ;;  %6333 = vrcp.f32 %v5174_v30  ;;  %v5079_v35 = vmul.f32 %v8847_v13, %v8847_v13  ;;  %v4793_v32 = vsub.f32 0.0, %v4761_v57  ;;  %v5143_v23 = vadd.f32 1.0, %v4919_v50 }
0x1073   : > { %v5232_v46 = vmul.f32 %v6326_v31, %v5040_v43  ;;  %6335 = vpow2.f32 %v4832_v6  ;;  %v5173_v43 = vsel %vm4949_vm12, %v5109_v49, %v5141_v1  ;;  %v4568_v31 = vpop.permute.xlu1 %4567  ;;  %v8904_v52 = vadd.f32 %v8799_v21, %v8832_v51 }
0x1074   : > { %v6328_v33 = vpop.eup %6327  ;;  %6337 = vrcp.f32 %v5171_v58  ;;  %v8900_v58 = vpop.permute.xlu0 %4572  ;;  %v4834_v20 = vmul.f32 1.442695, %v4793_v32  ;;  %v8907_v6 = vadd.f32 %v8808_v14, %v4568_v31  ;;  %v5111_v49 = vadd.f32 %v5079_v35, %v4919_v50 }
0x1075   : > { %v5264_v56 = vsub.f32 1.0, %v5232_v46  ;;  %v5234_v60 = vmul.f32 %v6328_v33, %v5042_v10  ;;  %v8875_v42 = vpop.f32.mrb[64].mxu0  ;;  %v4794_v46 = vsub.f32 0.0, %v4762_v2  ;;  %v8910_v33 = vadd.f32 %v8811_v19, %v4568_v31 }
0x1076   : > { %v8880_v8 = vpop.f32.mrb[65].mxu0  ;;  %v8916_v53 = vadd.f32 %v8816_v34, %v8900_v58  ;;  %6339 = vpow2.f32 %v4834_v20  ;;  %v4763_v21 = vand.u32 2147483647, %v8904_v52  ;;  %v5041_v14 = vsel %vm4945_vm5, %v5009_v0, 2.0 }
0x1077   : > { %v5266_v48 = vsub.f32 1.0, %v5234_v60  ;;  %v8885_v44 = vpop.f32.mrb[66].mxu0  ;;  %v8895_v10 = vmul.f32 %v5264_v56, %v8775_v54  ;;  %v4836_v1 = vmul.f32 1.442695, %v4794_v46  ;;  %v5011_v19 = vmul.f32 %v8804_v11, %v4979_v38 }
0x1078   : > { %v8892_v18 = vpop.f32.mrb[67].mxu0  ;;  %v4764_v51 = vand.u32 2147483647, %v8907_v6  ;;  %v4981_v34 = vmul.f32 2.0, %v8824_v27  ;;  %v4795_v50 = vsub.f32 0.0, %v4763_v21  ;;  %v5046_v2 = vsel %vm4950_vm11, %v5014_v29, 2.0 }
0x1079   : > { %v8898_v55 = vmul.f32 %v5266_v48, %v8780_v22  ;;  %6341 = vpow2.f32 %v4836_v1  ;;  %v4765_v57 = vand.u32 2147483647, %v8910_v33  ;;  %v5175_v11 = vsel %vm4951_vm13, %v5111_v49, %v5143_v23 }
0x107a   : > { %v6330_v54 = vpop.eup %6329  ;;  %6343 = vrcp.f32 %v5173_v43  ;;  %v4796_v0 = vsub.f32 0.0, %v4764_v51  ;;  %v4766_v38 = vand.u32 2147483647, %v8916_v53  ;;  %v4838_v46 = vmul.f32 1.442695, %v4795_v50 }
0x107b   : > { %v6332_v30 = vpop.eup %6331  ;;  %v5236_v56 = vmul.f32 %v6330_v54, %v5044_v3  ;;  %v4797_v20 = vsub.f32 0.0, %v4765_v57  ;;  %v5043_v29 = vsel %vm4947_vm9, %v5011_v19, 2.0  ;;  %v4983_v23 = vmul.f32 2.0, %v8847_v13 }
0x107c   : > { %v6334_v3 = vpop.eup %6333  ;;  %v5233_v21 = vmul.f32 %v6332_v30, %v5041_v14  ;;  %6345 = vpow2.f32 %v4838_v46  ;;  %v4840_v22 = vmul.f32 1.442695, %v4796_v0  ;;  %v4798_v57 = vsub.f32 0.0, %v4766_v38 }
0x107d   : > { %v8924_v60 = vpop.f32.mrb[68].mxu0  ;;  %v8937_v32 = vpop.eup %6335  ;;  %v5268_v43 = vsub.f32 1.0, %v5236_v56  ;;  %v5238_v31 = vmul.f32 %v6334_v3, %v5046_v2  ;;  %v4842_v24 = vmul.f32 1.442695, %v4797_v20  ;;  %6347 = vrcp.f32 %v5175_v11 }
0x107e   : > { %v8928_v48 = vpop.f32.mrb[69].mxu0  ;;  %v6338_v1 = vpop.eup %6337  ;;  %v4888_v49 = vadd.f32 1.0, %v8937_v32  ;;  %v5080_v50 = vmul.f32 %v8937_v32, %v8937_v32  ;;  %v5013_v30 = vmul.f32 %v8824_v27, %v4981_v34  ;;  %6349 = vpow2.f32 %v4840_v22 }
0x107f   : > { %v8935_v35 = vpop.f32.mrb[70].mxu0  ;;  %v5270_v51 = vsub.f32 1.0, %v5238_v31  ;;  %v8948_v3 = vmul.f32 %v5268_v43, %v8787_v4  ;;  %v5235_v19 = vmul.f32 %v6338_v1, %v5043_v29  ;;  %6351 = vpow2.f32 %v4842_v24 }
0x1080   : > { %v8939_v54 = vpop.f32.mrb[71].mxu0  ;;  %v4920_v56 = vmul.f32 %v4888_v49, %v4888_v49  ;;  %v8956_v11 = vpop.eup %6339  ;;  %v5015_v4 = vmul.f32 %v8847_v13, %v4983_v23  ;;  %v4844_v27 = vmul.f32 1.442695, %v4798_v57  ;;  %v5265_v22 = vsub.f32 1.0, %v5233_v21 }
0x1081   : > { %v8952_v14 = vmul.f32 %v5270_v51, %v8792_v47  ;;  %v4889_v24 = vadd.f32 1.0, %v8956_v11  ;;  %v8969_v46 = vadd.f32 %v8822_v9, %v8900_v58  ;;  %v5267_v23 = vsub.f32 1.0, %v5235_v19 }
0x1082   : > { %v5112_v2 = vadd.f32 %v5080_v50, %v4920_v56  ;;  %v5144_v31 = vadd.f32 1.0, %v4920_v56  ;;  %v5045_v21 = vsel %vm4949_vm12, %v5013_v30, 2.0  ;;  %v4984_v49 = vmul.f32 2.0, %v8937_v32 }
0x1083   : > { %v6342_v47 = vpop.eup %6341  ;;  %v5047_v51 = vsel %vm4951_vm13, %v5015_v4, 2.0  ;;  %v4921_v56 = vmul.f32 %v4889_v24, %v4889_v24  ;;  %v8981_v50 = vmul.f32 %v5265_v22, %v8777_v16  ;;  %v4767_v57 = vand.u32 2147483647, %v8969_v46 }
0x1084   : > { %v5176_v43 = vsel %vm4952_vm14, %v5112_v2, %v5144_v31  ;;  %v6344_v1 = vpop.eup %6343  ;;  %v4890_v13 = vadd.f32 1.0, %v6342_v47  ;;  %v5082_v58 = vmul.f32 %v6342_v47, %v6342_v47  ;;  %v5081_v30 = vmul.f32 %v8956_v11, %v8956_v11 }
0x1085   : > { %v8954_v0 = vpop.f32.mrb[72].mxu0  ;;  %6353 = vrcp.f32 %v5176_v43  ;;  %v4986_v2 = vmul.f32 2.0, %v6342_v47  ;;  %v4578_v43 = vpop.permute.xlu1 %4577  ;;  %v8991_v24 = vmul.f32 %v5267_v23, %v8783_v37  ;;  %v8993_v16 = vmul.f32 %v6344_v1, %v5045_v21 }
0x1086   : > { %v8962_v34 = vpop.f32.mrb[73].mxu0  ;;  %6355 = vpow2.f32 %v4844_v27  ;;  %v4922_v9 = vmul.f32 %v4890_v13, %v4890_v13  ;;  %v8986_v19 = vpop.eup %6345  ;;  %v5016_v22 = vmul.f32 %v8937_v32, %v4984_v49  ;;  %vm4955_vm1 = vcmp.ge.f32.partialorder %v8904_v52, 0.0 }
0x1087   : > { %v8971_v20 = vpop.f32.mrb[74].mxu0  ;;  %v6348_v27 = vpop.eup %6347  ;;  %v4891_v13 = vadd.f32 1.0, %v8986_v19  ;;  %v5113_v25 = vadd.f32 %v5081_v30, %v4921_v56  ;;  %v5145_v12 = vadd.f32 1.0, %v4921_v56  ;;  %v4799_v23 = vsub.f32 0.0, %v4767_v57 }
0x1088   : > { %v8973_v29 = vpop.f32.mrb[75].mxu0  ;;  %v5114_v31 = vadd.f32 %v5082_v58, %v4922_v9  ;;  %v5146_v4 = vadd.f32 1.0, %v4922_v9  ;;  %v8998_v38 = vpop.eup %6349  ;;  %v9003_v58 = vadd.f32 %v8845_v63, %v4578_v43  ;;  %v9008_v21 = vmul.f32 %v6348_v27, %v5047_v51 }
0x1089   : > { %v9005_v37 = vpop.eup %6351  ;;  %v4923_v1 = vmul.f32 %v4891_v13, %v4891_v13  ;;  %v4892_v32 = vadd.f32 1.0, %v8998_v38  ;;  %v5018_v49 = vmul.f32 %v6342_v47, %v4986_v2  ;;  %v5083_v30 = vmul.f32 %v8986_v19, %v8986_v19 }
0x108a   : > { %v5178_v9 = vsel %vm4954_vm0, %v5114_v31, %v5146_v4  ;;  %v4893_v56 = vadd.f32 1.0, %v9005_v37  ;;  %vm4956_vm2 = vcmp.ge.f32.partialorder %v8907_v6, 0.0  ;;  %v5084_v63 = vmul.f32 %v8998_v38, %v8998_v38 }
0x108b   : > { %6357 = vrcp.f32 %v5178_v9  ;;  %v4924_v4 = vmul.f32 %v4892_v32, %v4892_v32  ;;  %v5177_v57 = vsel %vm4953_vm15, %v5113_v25, %v5145_v12  ;;  %v5115_v51 = vadd.f32 %v5083_v30, %v4923_v1 }
0x108c   : > { %v5147_v27 = vadd.f32 1.0, %v4923_v1  ;;  %vm4958_vm4 = vcmp.ge.f32.partialorder %v8916_v53, 0.0  ;;  %v4768_v47 = vand.u32 2147483647, %v9003_v58  ;;  %v5048_v9 = vsel %vm4952_vm14, %v5016_v22, 2.0 }
0x108d   : > { %v5116_v32 = vadd.f32 %v5084_v63, %v4924_v4  ;;  %v5148_v31 = vadd.f32 1.0, %v4924_v4  ;;  %vm4957_vm6 = vcmp.ge.f32.partialorder %v8910_v33, 0.0  ;;  %v4846_v45 = vmul.f32 1.442695, %v4799_v23 }
0x108e   : > { %v4985_v12 = vmul.f32 2.0, %v8956_v11  ;;  %v5050_v25 = vsel %vm4954_vm0, %v5018_v49, 2.0  ;;  %v4925_v1 = vmul.f32 %v4893_v56, %v4893_v56  ;;  %6359 = vrcp.f32 %v5177_v57  ;;  %v4583_v56 = vpop.permute.xlu0 %4582 }
0x108f   : > { %v6354_v13 = vpop.eup %6353  ;;  %v5180_v30 = vsel %vm4956_vm2, %v5116_v32, %v5148_v31  ;;  %v5085_v22 = vmul.f32 %v9005_v37, %v9005_v37  ;;  %v5179_v23 = vsel %vm4955_vm1, %v5115_v51, %v5147_v27  ;;  %v4800_v28 = vsub.f32 0.0, %v4768_v47 }
0x1090   : > { %v9021_v2 = vpop.eup %6355  ;;  %v5240_v63 = vmul.f32 %v6354_v13, %v5048_v9  ;;  %6361 = vrcp.f32 %v5180_v30  ;;  %v4988_v40 = vmul.f32 2.0, %v8998_v38  ;;  %v5149_v57 = vadd.f32 1.0, %v4925_v1 }
0x1091   : > { %v4894_v4 = vadd.f32 1.0, %v9021_v2  ;;  %v5086_v49 = vmul.f32 %v9021_v2, %v9021_v2  ;;  %6363 = vpow2.f32 %v4846_v45  ;;  %v5117_v31 = vadd.f32 %v5085_v22, %v4925_v1 }
0x1092   : > { %v4848_v32 = vmul.f32 1.442695, %v4800_v28  ;;  %v9041_v15 = vadd.f32 %v8851_v62, %v4578_v43  ;;  %6365 = vrcp.f32 %v5179_v23  ;;  %v9044_v27 = vadd.f32 %v8854_v36, %v4583_v56  ;;  %v4588_v43 = vpop.permute.xlu1 %4587 }
0x1093   : > { %v4926_v61 = vmul.f32 %v4894_v4, %v4894_v4  ;;  %v5272_v47 = vsub.f32 1.0, %v5240_v63  ;;  %v5017_v45 = vmul.f32 %v8956_v11, %v4985_v12  ;;  %v4987_v1 = vmul.f32 2.0, %v8986_v19 }
0x1094   : > { %6367 = vpow2.f32 %v4848_v32  ;;  %v4769_v4 = vand.u32 2147483647, %v9041_v15  ;;  %v4770_v62 = vand.u32 2147483647, %v9044_v27  ;;  %v9056_v23 = vadd.f32 %v8861_v39, %v4583_v56 }
0x1095   : > { %v6358_v13 = vpop.eup %6357  ;;  %v5118_v9 = vadd.f32 %v5086_v49, %v4926_v61  ;;  %v5150_v51 = vadd.f32 1.0, %v4926_v61  ;;  %v5181_v61 = vsel %vm4957_vm6, %v5117_v31, %v5149_v57  ;;  %v9059_v11 = vadd.f32 %v8875_v42, %v4588_v43 }
0x1096   : > { %v5242_v30 = vmul.f32 %v6358_v13, %v5050_v25  ;;  %v4801_v36 = vsub.f32 0.0, %v4769_v4  ;;  %v4990_v25 = vmul.f32 2.0, %v9021_v2  ;;  %v4802_v63 = vsub.f32 0.0, %v4770_v62 }
0x1097   : > { %v5182_v28 = vsel %vm4958_vm4, %v5118_v9, %v5150_v51  ;;  %v9062_v12 = vmul.f32 %v5272_v47, %v8806_v5  ;;  %v5020_v32 = vmul.f32 %v8998_v38, %v4988_v40  ;;  %v4989_v13 = vmul.f32 2.0, %v9005_v37 }
0x1098   : > { %v5274_v22 = vsub.f32 1.0, %v5242_v30  ;;  %6369 = vrcp.f32 %v5182_v28  ;;  %v4850_v31 = vmul.f32 1.442695, %v4801_v36  ;;  %v6360_v57 = vpop.eup %6359  ;;  %v4852_v9 = vmul.f32 1.442695, %v4802_v63  ;;  %v4593_v63 = vpop.permute.xlu0 %4592 }
0x1099   : > { %6371 = vrcp.f32 %v5181_v61  ;;  %v4771_v39 = vand.u32 2147483647, %v9056_v23  ;;  %v4772_v5 = vand.u32 2147483647, %v9059_v11  ;;  %v5019_v40 = vmul.f32 %v8986_v19, %v4987_v1 }
0x109a   : > { %v9065_v49 = vmul.f32 %v5274_v22, %v8840_v7  ;;  %v6362_v56 = vpop.eup %6361  ;;  %6373 = vpow2.f32 %v4850_v31  ;;  %v9074_v7 = vadd.f32 %v8880_v8, %v4588_v43  ;;  %v5022_v38 = vmul.f32 %v9021_v2, %v4990_v25 }
0x109b   : > { %v9076_v51 = vpop.eup %6363  ;;  %6375 = vpow2.f32 %v4852_v9  ;;  %v4803_v47 = vsub.f32 0.0, %v4771_v39  ;;  %v9776_v30 = vsub.f32 1.0, %v8993_v16  ;;  %v5052_v28 = vsel %vm4956_vm2, %v5020_v32, 2.0 }
0x109c   : > { %v5338_v42 = vpack.c.bf16 %v9065_v49, %v9062_v12  ;;  %v4895_v62 = vadd.f32 1.0, %v9076_v51  ;;  %v4804_v8 = vsub.f32 0.0, %v4772_v5  ;;  %v6366_v43 = vpop.eup %6365  ;;  %v9777_v22 = vsub.f32 1.0, %v9008_v21 }
0x109d   : > { %v9083_v4 = vmul.f32 %v9776_v30, %v8789_v59  ;;  %v5049_v2 = vsel %vm4953_vm15, %v5017_v45, 2.0  ;;  %v5244_v1 = vmul.f32 %v6362_v56, %v5052_v28  ;;  %vm4960_vm7 = vcmp.ge.f32.partialorder %v9003_v58, 0.0 }
0x109e   : > { %v9091_v19 = vmul.f32 %v9777_v22, %v8795_v41  ;;  %v9096_v59 = vpop.eup %6367  ;;  %v5241_v16 = vmul.f32 %v6360_v57, %v5049_v2  ;;  %v5021_v61 = vmul.f32 %v9005_v37, %v4989_v13  ;;  %vm4959_vm3 = vcmp.ge.f32.partialorder %v8969_v46, 0.0 }
0x109f   : > { %v4854_v36 = vmul.f32 1.442695, %v4803_v47  ;;  %v4773_v25 = vand.u32 2147483647, %v9074_v7  ;;  %v5051_v41 = vsel %vm4955_vm1, %v5019_v40, 2.0  ;;  %v5054_v21 = vsel %vm4958_vm4, %v5022_v38, 2.0 }
0x10a0   : > { %v4927_v45 = vmul.f32 %v4895_v62, %v4895_v62  ;;  %v4896_v32 = vadd.f32 1.0, %v9096_v59  ;;  %v5243_v9 = vmul.f32 %v6366_v43, %v5051_v41  ;;  %v5087_v37 = vmul.f32 %v9076_v51, %v9076_v51 }
0x10a1   : > { %v4856_v57 = vmul.f32 1.442695, %v4804_v8  ;;  %v9109_v13 = vadd.f32 %v8885_v44, %v4593_v63  ;;  %v5276_v39 = vsub.f32 1.0, %v5244_v1  ;;  %v5088_v40 = vmul.f32 %v9096_v59, %v9096_v59 }
0x10a2   : > { %v6370_v31 = vpop.eup %6369  ;;  %v4928_v5 = vmul.f32 %v4896_v32, %v4896_v32  ;;  %v5273_v47 = vsub.f32 1.0, %v5241_v16  ;;  %v5053_v38 = vsel %vm4957_vm6, %v5021_v61, 2.0  ;;  %6377 = vpow2.f32 %v4854_v36 }
0x10a3   : > { %v5246_v56 = vmul.f32 %v6370_v31, %v5054_v21  ;;  %v4805_v30 = vsub.f32 0.0, %v4773_v25  ;;  %v6372_v28 = vpop.eup %6371  ;;  %v5119_v43 = vadd.f32 %v5087_v37, %v4927_v45  ;;  %v5151_v22 = vadd.f32 1.0, %v4927_v45 }
0x10a4   : > { %v5120_v8 = vadd.f32 %v5088_v40, %v4928_v5  ;;  %v6374_v2 = vpop.eup %6373  ;;  %v5152_v44 = vadd.f32 1.0, %v4928_v5  ;;  %6379 = vpow2.f32 %v4856_v57  ;;  %v4774_v41 = vand.u32 2147483647, %v9109_v13 }
0x10a5   : > { %v5278_v62 = vsub.f32 1.0, %v5246_v56  ;;  %v4858_v1 = vmul.f32 1.442695, %v4805_v30  ;;  %v6376_v21 = vpop.eup %6375  ;;  %v5275_v32 = vsub.f32 1.0, %v5243_v9  ;;  %v9117_v16 = vmul.f32 %v5276_v39, %v8907_v6 }
0x10a6   : > { %v4897_v36 = vadd.f32 1.0, %v6374_v2  ;;  %v4991_v25 = vmul.f32 2.0, %v9076_v51  ;;  %v5184_v45 = vsel %vm4960_vm7, %v5120_v8, %v5152_v44  ;;  %v4898_v31 = vadd.f32 1.0, %v6376_v21 }
0x10a7   : > { %v9120_v61 = vmul.f32 %v5278_v62, %v8916_v53  ;;  %vm4962_vm5 = vcmp.ge.f32.partialorder %v9044_v27, 0.0  ;;  %v5245_v37 = vmul.f32 %v6372_v28, %v5053_v38  ;;  %v5183_v6 = vsel %vm4959_vm3, %v5119_v43, %v5151_v22 }
0x10a8   : > { %6381 = vrcp.f32 %v5184_v45  ;;  %v4930_v9 = vmul.f32 %v4898_v31, %v4898_v31  ;;  %v5090_v53 = vmul.f32 %v6376_v21, %v6376_v21  ;;  %v4806_v39 = vsub.f32 0.0, %v4774_v41  ;;  %v4598_v41 = vpop.permute.xlu1 %4597 }
0x10a9   : > { %v5340_v57 = vpack.c.bf16 %v9120_v61, %v9117_v16  ;;  %6383 = vpow2.f32 %v4858_v1  ;;  %v9131_v56 = vmul.f32 %v5273_v47, %v8836_v26  ;;  %v9134_v5 = vmul.f32 %v5275_v32, %v8904_v52 }
0x10aa   : > { %v4992_v40 = vmul.f32 2.0, %v9096_v59  ;;  %v4929_v38 = vmul.f32 %v4897_v36, %v4897_v36  ;;  %vm4961_vm8 = vcmp.ge.f32.partialorder %v9041_v15, 0.0  ;;  %v5023_v30 = vmul.f32 %v9076_v51, %v4991_v25 }
0x10ab   : > { %v5122_v28 = vadd.f32 %v5090_v53, %v4930_v9  ;;  %v5154_v62 = vadd.f32 1.0, %v4930_v9  ;;  %v4860_v43 = vmul.f32 1.442695, %v4806_v39  ;;  %v5277_v22 = vsub.f32 1.0, %v5245_v37 }
0x10ac   : > { %6385 = vrcp.f32 %v5183_v6  ;;  %v5089_v8 = vmul.f32 %v6374_v2, %v6374_v2  ;;  %vm4963_vm9 = vcmp.ge.f32.partialorder %v9056_v23, 0.0  ;;  %v9141_v26 = vadd.f32 %v8892_v18, %v4593_v63  ;;  %v9143_v52 = vpop.eup %6377 }
0x10ad   : > { %v4993_v47 = vmul.f32 2.0, %v6374_v2  ;;  %v4994_v44 = vmul.f32 2.0, %v6376_v21  ;;  %v5186_v1 = vsel %vm4962_vm5, %v5122_v28, %v5154_v62  ;;  %v5335_v51 = vpack.c.bf16 %v8991_v24, %v8981_v50 }
0x10ae   : > { %v5024_v32 = vmul.f32 %v9096_v59, %v4992_v40  ;;  %v5121_v36 = vadd.f32 %v5089_v8, %v4929_v38  ;;  %6387 = vrcp.f32 %v5186_v1  ;;  %v4899_v25 = vadd.f32 1.0, %v9143_v52  ;;  %v9152_v18 = vpop.eup %6379 }
0x10af   : > { %vm4964_vm10 = vcmp.ge.f32.partialorder %v9059_v11, 0.0  ;;  %v5153_v63 = vadd.f32 1.0, %v4929_v38  ;;  %6389 = vpow2.f32 %v4860_v43  ;;  %v4775_v45 = vand.u32 2147483647, %v9141_v26  ;;  %5374 = vmatprep.subr.bf16.mxu1 %v5335_v51 }
0x10b0   : > { %v9156_v31 = vadd.f32 %v8924_v60, %v4598_v41  ;;  %v5055_v50 = vsel %vm4959_vm3, %v5023_v30, 2.0  ;;  %v4931_v24 = vmul.f32 %v4899_v25, %v4899_v25  ;;  %v5091_v59 = vmul.f32 %v9143_v52, %v9143_v52 }
0x10b1   : > { %v4900_v37 = vadd.f32 1.0, %v9152_v18  ;;  %v9778_v6 = vpack.c.bf16 %v8898_v55, %v8895_v10  ;;  %v9167_v9 = vmul.f32 %v5277_v22, %v8910_v33  ;;  %v5025_v53 = vmul.f32 %v6374_v2, %v4993_v47 }
0x10b2   : > { %v5026_v60 = vmul.f32 %v6376_v21, %v4994_v44  ;;  %v4807_v39 = vsub.f32 0.0, %v4775_v45  ;;  %v6382_v40 = vpop.eup %6381  ;;  %v5123_v38 = vadd.f32 %v5091_v59, %v4931_v24  ;;  %v5155_v28 = vadd.f32 1.0, %v4931_v24  ;;  %v4603_v45 = vpop.permute.xlu0 %4602 }
0x10b3   : > { %5375 = vmatpush1.bf16.msra.mxu1 %v9778_v6  ;;  %v4932_v30 = vmul.f32 %v4900_v37, %v4900_v37  ;;  %v5092_v62 = vmul.f32 %v9152_v18, %v9152_v18  ;;  %v9171_v43 = vpop.eup %6383  ;;  %v5056_v8 = vsel %vm4960_vm7, %v5024_v32, 2.0  ;;  %v5185_v10 = vsel %vm4961_vm8, %v5121_v36, %v5153_v63 }
0x10b4   : > { %v4862_v55 = vmul.f32 1.442695, %v4807_v39  ;;  %v4776_v33 = vand.u32 2147483647, %v9156_v31  ;;  %v5248_v2 = vmul.f32 %v6382_v40, %v5056_v8  ;;  %v4901_v47 = vadd.f32 1.0, %v9171_v43 }
0x10b5   : > { %v5124_v21 = vadd.f32 %v5092_v62, %v4932_v30  ;;  %v5156_v22 = vadd.f32 1.0, %v4932_v30  ;;  %v9181_v44 = vsel %vm4961_vm8, %v5025_v53, 2.0  ;;  %v5187_v1 = vsel %vm4963_vm9, %v5123_v38, %v5155_v28 }
0x10b6   : > { %vm4965_vm11 = vcmp.ge.f32.partialorder %v9074_v7, 0.0  ;;  %v9187_v51 = vadd.f32 %v8928_v48, %v4598_v41  ;;  %v6386_v32 = vpop.eup %6385  ;;  %v5058_v36 = vsel %vm4962_vm5, %v5026_v60, 2.0  ;;  %v4933_v25 = vmul.f32 %v4901_v47, %v4901_v47 }
0x10b7   : > { %v5093_v63 = vmul.f32 %v9171_v43, %v9171_v43  ;;  %6391 = vpow2.f32 %v4862_v55  ;;  %v4995_v24 = vmul.f32 2.0, %v9143_v52  ;;  %v5188_v59 = vsel %vm4964_vm10, %v5124_v21, %v5156_v22 }
0x10b8   : > { %6393 = vrcp.f32 %v5185_v10  ;;  %v4808_v37 = vsub.f32 0.0, %v4776_v33  ;;  %v6388_v6 = vpop.eup %6387  ;;  %v5280_v48 = vsub.f32 1.0, %v5248_v2  ;;  %v9197_v53 = vadd.f32 %v8935_v35, %v4603_v45 }
0x10b9   : > { %6395 = vrcp.f32 %v5187_v1  ;;  %v5125_v41 = vadd.f32 %v5093_v63, %v4933_v25  ;;  %v6390_v60 = vpop.eup %6389  ;;  %v5250_v39 = vmul.f32 %v6388_v6, %v5058_v36  ;;  %v5157_v40 = vadd.f32 1.0, %v4933_v25  ;;  %v4608_v63 = vpop.permute.xlu1 %4607 }
0x10ba   : > { %v4864_v38 = vmul.f32 1.442695, %v4808_v37  ;;  %v4777_v28 = vand.u32 2147483647, %v9187_v51  ;;  %v5247_v30 = vmul.f32 %v6386_v32, %v5055_v50  ;;  %6397 = vrcp.f32 %v5188_v59 }
0x10bb   : > { %v4902_v62 = vadd.f32 1.0, %v6390_v60  ;;  %vm4966_vm12 = vcmp.ge.f32.partialorder %v9109_v13, 0.0  ;;  %v5282_v8 = vsub.f32 1.0, %v5250_v39  ;;  %v5027_v10 = vmul.f32 %v9143_v52, %v4995_v24 }
0x10bc   : > { %v4996_v55 = vmul.f32 2.0, %v9152_v18  ;;  %v4809_v33 = vsub.f32 0.0, %v4777_v28  ;;  %v9204_v35 = vmul.f32 %v5280_v48, %v9003_v58  ;;  %v5094_v21 = vmul.f32 %v6390_v60, %v6390_v60 }
0x10bd   : > { %v4934_v2 = vmul.f32 %v4902_v62, %v4902_v62  ;;  %6399 = vpow2.f32 %v4864_v38  ;;  %v9207_v22 = vmul.f32 %v5282_v8, %v9044_v27  ;;  %v5189_v50 = vsel %vm4965_vm11, %v5125_v41, %v5157_v40 }
0x10be   : > { %v4866_v47 = vmul.f32 1.442695, %v4809_v33  ;;  %v4778_v1 = vand.u32 2147483647, %v9197_v53  ;;  %v5279_v32 = vsub.f32 1.0, %v5247_v30  ;;  %v4997_v52 = vmul.f32 2.0, %v9171_v43 }
0x10bf   : > { %v5126_v36 = vadd.f32 %v5094_v21, %v4934_v2  ;;  %v5158_v25 = vadd.f32 1.0, %v4934_v2  ;;  %v5342_v58 = vpack.c.bf16 %v9207_v22, %v9204_v35  ;;  %v9216_v27 = vadd.f32 %v8939_v54, %v4603_v45 }
0x10c0   : > { %6401 = vpow2.f32 %v4866_v47  ;;  %v4810_v24 = vsub.f32 0.0, %v4778_v1  ;;  %vm4967_vm13 = vcmp.ge.f32.partialorder %v9141_v26, 0.0  ;;  %v9224_v6 = vadd.f32 %v8954_v0, %v4608_v63 }
0x10c1   : > { %v9218_v59 = vpop.eup %6391  ;;  %6403 = vrcp.f32 %v5189_v50  ;;  %v5190_v37 = vsel %vm4966_vm12, %v5126_v36, %v5158_v25  ;;  %v5059_v41 = vsel %vm4963_vm9, %v5027_v10, 2.0  ;;  %v5028_v39 = vmul.f32 %v9152_v18, %v4996_v55 }
0x10c2   : > { %v6394_v48 = vpop.eup %6393  ;;  %6405 = vrcp.f32 %v5190_v37  ;;  %v4903_v54 = vadd.f32 1.0, %v9218_v59  ;;  %v9231_v40 = vmul.f32 %v5279_v32, %v8969_v46  ;;  %v4998_v38 = vmul.f32 2.0, %v6390_v60 }
0x10c3   : > { %v6396_v45 = vpop.eup %6395  ;;  %v4868_v28 = vmul.f32 1.442695, %v4810_v24  ;;  %v4779_v30 = vand.u32 2147483647, %v9216_v27  ;;  %v5029_v0 = vmul.f32 %v9171_v43, %v4997_v52  ;;  %v5095_v8 = vmul.f32 %v9218_v59, %v9218_v59 }
0x10c4   : > { %v4935_v62 = vmul.f32 %v4903_v54, %v4903_v54  ;;  %v4780_v10 = vand.u32 2147483647, %v9224_v6  ;;  %v6398_v18 = vpop.eup %6397  ;;  %v9239_v55 = vmul.f32 %v6394_v48, %v9181_v44  ;;  %v9242_v46 = vadd.f32 %v8962_v34, %v4608_v63 }
0x10c5   : > { %6407 = vpow2.f32 %v4868_v28  ;;  %v4811_v33 = vsub.f32 0.0, %v4779_v30  ;;  %v5060_v2 = vsel %vm4964_vm10, %v5028_v39, 2.0  ;;  %v9248_v1 = vmul.f32 %v6396_v45, %v5059_v41 }
0x10c6   : > { %v5127_v21 = vadd.f32 %v5095_v8, %v4935_v62  ;;  %v5159_v43 = vadd.f32 1.0, %v4935_v62  ;;  %v4812_v50 = vsub.f32 0.0, %v4780_v10  ;;  %v5030_v32 = vmul.f32 %v6390_v60, %v4998_v38  ;;  %v4613_v10 = vpop.permute.xlu0 %4612 }
0x10c7   : > { %v9246_v47 = vpop.eup %6399  ;;  %vm4968_vm14 = vcmp.ge.f32.partialorder %v9156_v31, 0.0  ;;  %v4870_v44 = vmul.f32 1.442695, %v4811_v33  ;;  %v5252_v52 = vmul.f32 %v6398_v18, %v5060_v2  ;;  %v5061_v36 = vsel %vm4965_vm11, %v5029_v0, 2.0 }
0x10c8   : > { %v5191_v34 = vsel %vm4967_vm13, %v5127_v21, %v5159_v43  ;;  %v4904_v25 = vadd.f32 1.0, %v9246_v47  ;;  %v5281_v63 = vsub.f32 1.0, %v9239_v55  ;;  %v4872_v24 = vmul.f32 1.442695, %v4812_v50 }
0x10c9   : > { %6409 = vrcp.f32 %v5191_v34  ;;  %v4781_v37 = vand.u32 2147483647, %v9242_v46  ;;  %v5096_v41 = vmul.f32 %v9246_v47, %v9246_v47  ;;  %vm4969_vm15 = vcmp.ge.f32.partialorder %v9187_v51, 0.0 }
0x10ca   : > { %v9258_v48 = vpop.eup %6401  ;;  %v4936_v60 = vmul.f32 %v4904_v25, %v4904_v25  ;;  %6411 = vpow2.f32 %v4870_v44  ;;  %v5283_v54 = vsub.f32 1.0, %v9248_v1  ;;  %v5062_v45 = vsel %vm4966_vm12, %v5030_v32, 2.0 }
0x10cb   : > { %v6404_v39 = vpop.eup %6403  ;;  %v4999_v38 = vmul.f32 2.0, %v9218_v59  ;;  %v4905_v28 = vadd.f32 1.0, %v9258_v48  ;;  %v5284_v0 = vsub.f32 1.0, %v5252_v52  ;;  %6413 = vpow2.f32 %v4872_v24 }
0x10cc   : > { %v6406_v30 = vpop.eup %6405  ;;  %v5128_v62 = vadd.f32 %v5096_v41, %v4936_v60  ;;  %v5160_v8 = vadd.f32 1.0, %v4936_v60  ;;  %v5097_v2 = vmul.f32 %v9258_v48, %v9258_v48  ;;  %vm4970_vm0 = vcmp.ge.f32.partialorder %v9197_v53, 0.0 }
0x10cd   : > { %v5254_v18 = vmul.f32 %v6406_v30, %v5062_v45  ;;  %v4937_v33 = vmul.f32 %v4905_v28, %v4905_v28  ;;  %v4813_v21 = vsub.f32 0.0, %v4781_v37  ;;  %v5337_v50 = vpack.c.bf16 %v9091_v19, %v9083_v4 }
0x10ce   : > { %v5192_v43 = vsel %vm4968_vm14, %v5128_v62, %v5160_v8  ;;  %v9276_v1 = vadd.f32 %v8971_v20, %v4613_v10  ;;  %v9279_v32 = vadd.f32 %v8973_v29, %v4613_v10  ;;  %v5253_v52 = vmul.f32 %v6404_v39, %v5061_v36 }
0x10cf   : > { %v6408_v44 = vpop.eup %6407  ;;  %v5286_v34 = vsub.f32 1.0, %v5254_v18  ;;  %v5031_v25 = vmul.f32 %v9218_v59, %v4999_v38  ;;  %v5129_v24 = vadd.f32 %v5097_v2, %v4937_v33  ;;  %v9283_v37 = vmul.f32 %v5284_v0, %v9059_v11  ;;  %5376 = vmatprep.subr.bf16.mxu1 %v5337_v50 }
0x10d0   : > { %6415 = vrcp.f32 %v5192_v43  ;;  %v5161_v60 = vadd.f32 1.0, %v4937_v33  ;;  %v4906_v41 = vadd.f32 1.0, %v6408_v44  ;;  %v5000_v20 = vmul.f32 2.0, %v9246_v47 }
0x10d1   : > { %v9286_v4 = vmul.f32 %v5286_v34, %v9109_v13  ;;  %v4874_v29 = vmul.f32 1.442695, %v4813_v21  ;;  %v4782_v19 = vand.u32 2147483647, %v9276_v1  ;;  %v9779_v36 = vpack.c.bf16 %v8952_v14, %v8948_v3 }
0x10d2   : > { %v5193_v11 = vsel %vm4969_vm15, %v5129_v24, %v5161_v60  ;;  %v4938_v59 = vmul.f32 %v4906_v41, %v4906_v41  ;;  %v5098_v39 = vmul.f32 %v6408_v44, %v6408_v44  ;;  %v4783_v45 = vand.u32 2147483647, %v9279_v32 }
0x10d3   : > { %5377 = vmatpush1.bf16.msra.mxu1 %v9779_v36  ;;  %v6410_v38 = vpop.eup %6409  ;;  %v5285_v28 = vsub.f32 1.0, %v5253_v52  ;;  %v5344_v13 = vpack.c.bf16 %v9286_v4, %v9283_v37  ;;  %v5063_v30 = vsel %vm4967_vm13, %v5031_v25, 2.0  ;;  %v4814_v0 = vsub.f32 0.0, %v4782_v19 }
0x10d4   : > { %v6412_v62 = vpop.eup %6411  ;;  %v5255_v8 = vmul.f32 %v6410_v38, %v5063_v30  ;;  %6417 = vrcp.f32 %v5193_v11  ;;  %v5130_v3 = vadd.f32 %v5098_v39, %v4938_v59  ;;  %v5162_v14 = vadd.f32 1.0, %v4938_v59 }
0x10d5   : > { %v5032_v10 = vmul.f32 %v9246_v47, %v5000_v20  ;;  %v5001_v18 = vmul.f32 2.0, %v9258_v48  ;;  %v4907_v33 = vadd.f32 1.0, %v6412_v62  ;;  %6419 = vpow2.f32 %v4874_v29  ;;  %v9302_v2 = vpop.eup %6413 }
0x10d6   : > { %v5287_v21 = vsub.f32 1.0, %v5255_v8  ;;  %v5194_v43 = vsel %vm4970_vm0, %v5130_v3, %v5162_v14  ;;  %v4876_v50 = vmul.f32 1.442695, %v4814_v0  ;;  %v4815_v52 = vsub.f32 0.0, %v4783_v45 }
0x10d7   : > { %6421 = vrcp.f32 %v5194_v43  ;;  %v4939_v34 = vmul.f32 %v4907_v33, %v4907_v33  ;;  %v5099_v25 = vmul.f32 %v6412_v62, %v6412_v62  ;;  %v4908_v24 = vadd.f32 1.0, %v9302_v2 }
0x10d8   : > { %v5313_v47 = vmul.f32 %v5281_v63, %v9041_v15  ;;  %v5315_v60 = vmul.f32 %v5283_v54, %v9056_v23  ;;  %v5002_v41 = vmul.f32 2.0, %v6408_v44  ;;  %6423 = vpow2.f32 %v4876_v50 }
0x10d9   : > { %v5319_v20 = vmul.f32 %v5287_v21, %v9141_v26  ;;  %vm4971_vm1 = vcmp.ge.f32.partialorder %v9216_v27, 0.0  ;;  %v5131_v29 = vadd.f32 %v5099_v25, %v4939_v34  ;;  %v5163_v19 = vadd.f32 1.0, %v4939_v34 }
0x10da   : > { %v6416_v36 = vpop.eup %6415  ;;  %v5317_v11 = vmul.f32 %v5285_v28, %v9074_v7  ;;  %v4940_v59 = vmul.f32 %v4908_v24, %v4908_v24  ;;  %v4878_v39 = vmul.f32 1.442695, %v4815_v52  ;;  %v5339_v45 = vpack.c.bf16 %v9134_v5, %v9131_v56 }
0x10db   : > { %v5064_v15 = vsel %vm4968_vm14, %v5032_v10, 2.0  ;;  %v5033_v23 = vmul.f32 %v9258_v48, %v5001_v18  ;;  %v5195_v26 = vsel %vm4971_vm1, %v5131_v29, %v5163_v19  ;;  %v5341_v55 = vpack.c.bf16 %v9231_v40, %v9167_v9 }
0x10dc   : > { %v5034_v63 = vmul.f32 %v6408_v44, %v5002_v41  ;;  %6425 = vrcp.f32 %v5195_v26  ;;  %v5100_v7 = vmul.f32 %v9302_v2, %v9302_v2  ;;  %5378 = vmatprep.subr.bf16.mxu1 %v5339_v45  ;;  %v5343_v54 = vpack.c.bf16 %v5315_v60, %v5313_v47 }
0x10dd   : > { %v5256_v38 = vmul.f32 %v6416_v36, %v5064_v15  ;;  %v5003_v56 = vmul.f32 2.0, %v6412_v62  ;;  %6427 = vpow2.f32 %v4878_v39  ;;  %5379 = vmatpush1.bf16.msra.mxu1 %v5338_v42  ;;  %v5345_v5 = vpack.c.bf16 %v5319_v20, %v5317_v11 }
0x10de   : > { %v6418_v48 = vpop.eup %6417  ;;  %v5132_v28 = vadd.f32 %v5100_v7, %v4940_v59  ;;  %v5164_v30 = vadd.f32 1.0, %v4940_v59  ;;  %5380 = vmatprep.subr.bf16.mxu1 %v5341_v55  ;;  %vm4972_vm2 = vcmp.ge.f32.partialorder %v9224_v6, 0.0  ;;  %v5065_v8 = vsel %vm4969_vm15, %v5033_v23, 2.0 }
0x10df   : > { %v6420_v9 = vpop.eup %6419  ;;  %v5288_v0 = vsub.f32 1.0, %v5256_v38  ;;  %v5066_v3 = vsel %vm4970_vm0, %v5034_v63, 2.0  ;;  %v5035_v14 = vmul.f32 %v6412_v62, %v5003_v56  ;;  %v5257_v33 = vmul.f32 %v6418_v48, %v5065_v8 }
0x10e0   : > { %v4909_v40 = vadd.f32 1.0, %v6420_v9  ;;  %v5196_v42 = vsel %vm4972_vm2, %v5132_v28, %v5164_v30  ;;  %v5101_v18 = vmul.f32 %v6420_v9, %v6420_v9  ;;  %vm4973_vm4 = vcmp.ge.f32.partialorder %v9242_v46, 0.0 }
0x10e1   : > { %v6422_v44 = vpop.eup %6421  ;;  %5381 = vmatpush1.bf16.msra.mxu1 %v5340_v57  ;;  %6429 = vrcp.f32 %v5196_v42  ;;  %v5320_v61 = vmul.f32 %v5288_v0, %v9156_v31  ;;  %v5067_v25 = vsel %vm4971_vm1, %v5035_v14, 2.0  ;;  %v5289_v60 = vsub.f32 1.0, %v5257_v33  ;;  %v5329_v33 = vld [vmem:[%s9780_s2 + $0x8] sm:$0xff] }
0x10e2   : > { %v6424_v12 = vpop.eup %6423  ;;  %v5258_v49 = vmul.f32 %v6422_v44, %v5066_v3  ;;  %v4941_v10 = vmul.f32 %v4909_v40, %v4909_v40  ;;  %5382 = vmatprep.subr.bf16.mxu1 %v5343_v54  ;;  %vm4974_vm6 = vcmp.ge.f32.partialorder %v9276_v1, 0.0  ;;  %vm4975_vm7 = vcmp.ge.f32.partialorder %v9279_v32, 0.0 }
0x10e3   : > { %v4910_v21 = vadd.f32 1.0, %v6424_v12  ;;  %v5102_v34 = vmul.f32 %v6424_v12, %v6424_v12  ;;  %v5321_v11 = vmul.f32 %v5289_v60, %v9187_v51  ;;  %v5005_v23 = vmul.f32 2.0, %v6420_v9 }
0x10e4   : > { %v5290_v43 = vsub.f32 1.0, %v5258_v49  ;;  %v5133_v50 = vadd.f32 %v5101_v18, %v4941_v10  ;;  %v5165_v52 = vadd.f32 1.0, %v4941_v10  ;;  %v5006_v26 = vmul.f32 2.0, %v6424_v12  ;;  %v5328_v18 = vld [vmem:[%s9780_s2] sm:$0xff] }
0x10e5   : > { %v4942_v62 = vmul.f32 %v4910_v21, %v4910_v21  ;;  %5383 = vmatpush1.bf16.msra.mxu1 %v5342_v58  ;;  %v5004_v58 = vmul.f32 2.0, %v9302_v2 }
0x10e6   : > { %v6426_v16 = vpop.eup %6425  ;;  %v5322_v57 = vmul.f32 %v5290_v43, %v9197_v53  ;;  %v5197_v24 = vsel %vm4973_vm4, %v5133_v50, %v5165_v52  ;;  %5384 = vmatprep.subr.bf16.mxu1 %v5345_v5  ;;  %v5038_v55 = vmul.f32 %v6424_v12, %v5006_v26  ;;  %v5332_v43 = vpack.c.bf16 %v5329_v33, %v5328_v18  ;;  %v5357_v52 = vpop.permute.xlu1 %5356  ;;  %v9787_v26 = vld [vmem:[#allocation24_spill] sm:$0xff] }
0x10e7   : > { %v6428_v47 = vpop.eup %6427  ;;  %v5259_v41 = vmul.f32 %v6426_v16, %v5067_v25  ;;  %v5134_v20 = vadd.f32 %v5102_v34, %v4942_v62  ;;  %v5166_v19 = vadd.f32 1.0, %v4942_v62  ;;  %6431 = vrcp.f32 %v5197_v24 }
0x10e8   : > { %v5346_v29 = vpack.c.bf16 %v5322_v57, %v5320_v61  ;;  %v4911_v35 = vadd.f32 1.0, %v6428_v47  ;;  %v5103_v36 = vmul.f32 %v6428_v47, %v6428_v47  ;;  %v5036_v15 = vmul.f32 %v9302_v2, %v5004_v58  ;;  %v9782_v57 = vld [vmem:[#allocation26_spill] sm:$0xff] }
0x10e9   : > { %v5291_v22 = vsub.f32 1.0, %v5259_v41  ;;  %5385 = vmatpush1.bf16.msra.mxu1 %v5344_v13  ;;  %v5198_v31 = vsel %vm4974_vm6, %v5134_v20, %v5166_v19  ;;  %v5007_v63 = vmul.f32 2.0, %v6428_v47  ;;  %v5070_v56 = vsel %vm4974_vm6, %v5038_v55, 2.0  ;;  %v9784_v20 = vld [vmem:[#allocation69_spill] sm:$0xff]  ;;  %v9785_v19 = vld [vmem:[#allocation70_spill] sm:$0xff] }
0x10ea   : > { %v4943_v53 = vmul.f32 %v4911_v35, %v4911_v35  ;;  %6433 = vrcp.f32 %v5198_v31  ;;  %v5068_v51 = vsel %vm4972_vm2, %v5036_v15, 2.0 }
0x10eb   : > { %v5323_v59 = vmul.f32 %v5291_v22, %v9216_v27  ;;  %v6430_v13 = vpop.eup %6429  ;;  %v5037_v27 = vmul.f32 %v6420_v9, %v5005_v23  ;;  %v5039_v5 = vmul.f32 %v6428_v47, %v5007_v63  ;;  %v9783_v47 = vld [vmem:[#allocation68_spill] sm:$0xff]  ;;  %v5367_v22 = vpop.permute.xlu1 %5366 }
0x10ec   : > { %v5135_v39 = vadd.f32 %v5103_v36, %v4943_v53  ;;  %v5167_v45 = vadd.f32 1.0, %v4943_v53  ;;  %v5260_v7 = vmul.f32 %v6430_v13, %v5068_v51  ;;  %v9788_v13 = vld [vmem:[#allocation30_spill] sm:$0xff] }
0x10ed   : > { %v5347_v37 = vpack.c.bf16 %v5323_v59, %v5321_v11  ;;  %v5069_v2 = vsel %vm4973_vm4, %v5037_v27, 2.0  ;;  %v5071_v9 = vsel %vm4975_vm7, %v5039_v5, 2.0  ;;  %v9789_v27 = vld [vmem:[#allocation75_spill] sm:$0xff] }
0x10ee   : > { %v5199_v4 = vsel %vm4975_vm7, %v5135_v39, %v5167_v45  ;;  %v5292_v48 = vsub.f32 1.0, %v5260_v7  ;;  %v9786_v39 = vld [vmem:[#allocation71_spill] sm:$0xff] }
0x10ef   : > { %6435 = vrcp.f32 %v5199_v4  ;;  %5386 = vmatprep.subr.bf16.mxu1 %v5347_v37 }
0x10f0   : > { %5387 = vmatpush1.bf16.msra.mxu1 %v5346_v29  ;;  %v5324_v0 = vmul.f32 %v5292_v48, %v9224_v6  ;;  %v5330_v6 = vld [vmem:[%s9780_s2 + $0x10] sm:$0xff] }
0x10f1   : > { %v6432_v54 = vpop.eup %6431 }
0x10f2   : > { %v5261_v28 = vmul.f32 %v6432_v54, %v5069_v2 }
0x10f4   : > { %v6434_v38 = vpop.eup %6433  ;;  %v5293_v8 = vsub.f32 1.0, %v5261_v28 }
0x10f5   : > { %v5262_v30 = vmul.f32 %v6434_v38, %v5070_v56 }
0x10f6   : > { %v5325_v42 = vmul.f32 %v5293_v8, %v9242_v46 }
0x10f7   : > { %v5294_v40 = vsub.f32 1.0, %v5262_v30 }
0x10f9   : > { %v6436_v44 = vpop.eup %6435  ;;  %v5326_v3 = vmul.f32 %v5294_v40, %v9276_v1  ;;  %v5331_v1 = vld [vmem:[%s9780_s2 + $0x18] sm:$0xff] }
0x10fa   : > { %v5263_v14 = vmul.f32 %v6436_v44, %v5071_v9  ;;  %v5333_v50 = vpack.c.bf16 %v5331_v1, %v5330_v6 }
0x10fb   : > { %v5348_v12 = vpack.c.bf16 %v5326_v3, %v5324_v0 }
0x10fc   : > { %v5295_v49 = vsub.f32 1.0, %v5263_v14 }
0x10fe   : > { %v5327_v10 = vmul.f32 %v5295_v49, %v9279_v32  ;;  %v5362_v32 = vpop.permute.xlu0 %5361 }
0x1100   : > { %v5349_v21 = vpack.c.bf16 %v5327_v10, %v5325_v42 }
0x1102   : > { %5388 = vmatprep.subr.bf16.mxu1 %v5349_v21  ;;  %v5372_v36 = vpop.permute.xlu0 %5371 }
0x1103   : > { %5389 = vmatpush1.bf16.msra.mxu1 %v5348_v12 }
0x1106   : > { %5407 = vmatmul.mubr.bf16.vlgmr.msra.gmra.mrb[64].mxu1 %v5332_v43 }
0x1107   : > { %5416 = vmatprep.mubr.bf16.mxu1 %v9632_v17 }
0x110e   : > { %5417 = vmatmul.mubr.bf16.gmra.mrb[68].mxu1 %v5333_v50 }
0x11d9   : > { %v5408_v62 = vpop.f32.mrb[64].mxu1 }
0x11da   : > { %v5409_v46 = vadd.f32 %v5408_v62, %v5357_v52  ;;  %v5410_v34 = vpop.f32.mrb[65].mxu1 }
0x11db   : > { %v5411_v16 = vadd.f32 %v5410_v34, %v5357_v52  ;;  %v5412_v61 = vpop.f32.mrb[66].mxu1 }
0x11dc   : > { %v5427_v17 = vadd.f32 %v5409_v46, %v9782_v57  ;;  %v5413_v25 = vadd.f32 %v5412_v61, %v5362_v32  ;;  %v5414_v24 = vpop.f32.mrb[67].mxu1 }
0x11dd   : > { %v5428_v60 = vadd.f32 %v5411_v16, %v9783_v47  ;;  %v5415_v41 = vadd.f32 %v5414_v24, %v5362_v32 }
0x11de   : > { %5435 = vst [vmem:[%s9381_s1] sm:$0xff] %v5427_v17  ;;  %v5429_v29 = vadd.f32 %v5413_v25, %v9784_v20 }
0x11df   : > { %5436 = vst [vmem:[%s9381_s1 + $0x8] sm:$0xff] %v5428_v60  ;;  %v5430_v35 = vadd.f32 %v5415_v41, %v9785_v19 }
0x11e0   : > { %5437 = vst [vmem:[%s9381_s1 + $0x10] sm:$0xff] %v5429_v29 }
0x11e1   : > { %5438 = vst [vmem:[%s9381_s1 + $0x18] sm:$0xff] %v5430_v35  ;;  %v5418_v58 = vpop.f32.mrb[68].mxu1 }
0x11e2   : > { %v5419_v31 = vadd.f32 %v5418_v58, %v5367_v22  ;;  %v5420_v53 = vpop.f32.mrb[69].mxu1 }
0x11e3   : > { %v5421_v11 = vadd.f32 %v5420_v53, %v5367_v22  ;;  %v5422_v59 = vpop.f32.mrb[70].mxu1 }
0x11e4   : > { %v5431_v45 = vadd.f32 %v5419_v31, %v9786_v39  ;;  %v5423_v15 = vadd.f32 %v5422_v59, %v5372_v36  ;;  %v5424_v23 = vpop.f32.mrb[71].mxu1 }
0x11e5   : > { %v5432_v37 = vadd.f32 %v5421_v11, %v9787_v26  ;;  %v5425_v4 = vadd.f32 %v5424_v23, %v5372_v36 }
0x11e6   : > { %5439 = vst [vmem:[%s9381_s1 + $0x20] sm:$0xff] %v5431_v45  ;;  %v5433_v51 = vadd.f32 %v5423_v15, %v9788_v13 }
0x11e7   : > { %5440 = vst [vmem:[%s9381_s1 + $0x28] sm:$0xff] %v5432_v37  ;;  %v5434_v55 = vadd.f32 %v5425_v4, %v9789_v27 }
0x11e8   : > { %5441 = vst [vmem:[%s9381_s1 + $0x30] sm:$0xff] %v5433_v51 }
0x11e9   : > { %5442 = vst [vmem:[%s9381_s1 + $0x38] sm:$0xff] %v5434_v55 }
0x11ea PF: > { %s74_s22 = sadd.s32 1, %s6451_s22  }
0x11eb   : > { %p71_p4 = scmp.ge.s32.totalorder %s74_s22, 4  }
0x11ed   :  { %73 = sbr.rel (!%p71_p4) target bundleno = 56 (0x38), region = 221 }

</bundles_post_ra>
